<compile_context>
chip_gen: v6e
topology: v6e:2x2x1
jax: 0.10.0
libtpu: 0.0.40
codegen_flags: <defaults>
</compile_context>

<pallas_src>
import numpy as np
import jax
import jax.numpy as jnp
from jax import lax
from jax.experimental import pallas as pl
from jax.experimental.pallas import tpu as pltpu

EPS = 1e-5
_VMEM = pl.BlockSpec(memory_space=pltpu.MemorySpace.VMEM)


# ----------------------------------------------------------------------------
# Trace-time (numpy) helpers: flattened-padded layout + projection constants.
#
# An activation at resolution (H, W) is stored as a 2-D f32 array
#   (C, N * L)   with sample-major lanes,
# where L is either
#   L_pad = (H+2)*(W+2) + 2   (zero-padded grid flattened + 2-lane guard,
#                              what a 3x3 'same' conv consumes), or
#   L_mid = H*(W+2)           (conv output domain: W valid + 2 don't-care
#                              columns per row, masked to zero), or
#   M     = H*W               (compact row-major grid).
# ----------------------------------------------------------------------------
def _flat_len(H, W):
    return (H + 2) * (W + 2) + 2


def _col_mask(H, W, N):
    """(1, N*H*(W+2)) f32 mask of valid columns in the conv 'mid' domain."""
    S = W + 2
    m = np.zeros((1, H * S), np.float32)
    for h in range(H):
        m[0, h * S:h * S + W] = 1.0
    return np.tile(m, (1, N))


def _proj_pool_gather(H, W):
    """mid(H, W) -> 4 concatenated 2x2-maxpool operand chunks of size Ho*Wo."""
    S = W + 2
    Ho, Wo = H // 2, W // 2
    M = Ho * Wo
    P = np.zeros((H * S, 4 * M), np.float32)
    for dy in range(2):
        for dx in range(2):
            k = dy * 2 + dx
            for ho in range(Ho):
                for wo in range(Wo):
                    P[(2 * ho + dy) * S + (2 * wo + dx), k * M + ho * Wo + wo] = 1.0
    return P


def _interp_matrix(out_size, in_size):
    """align_corners=True linear interpolation matrix (out_size, in_size)."""
    A = np.zeros((out_size, in_size), np.float32)
    scale = (in_size - 1) / (out_size - 1) if out_size > 1 else 0.0
    for i in range(out_size):
        src = i * scale
        i0 = min(int(np.floor(src)), in_size - 1)
        i1 = min(i0 + 1, in_size - 1)
        w1 = src - i0
        A[i, i0] += 1.0 - w1
        A[i, i1] += w1
    return A


def _proj_upsample(H, W, Hout, Wout):
    """mid(H, W) -> bilinear(align_corners=True) upsample, compact (Hout*Wout)."""
    S = W + 2
    Ah = _interp_matrix(Hout, H)
    Aw = _interp_matrix(Wout, W)
    P = np.zeros((H * S, Hout * Wout), np.float32)
    for ho in range(Hout):
        for wo in range(Wout):
            o = ho * Wout + wo
            for hi in range(H):
                ah = Ah[ho, hi]
                if ah == 0.0:
                    continue
                for wi in range(W):
                    aw = Aw[wo, wi]
                    if aw == 0.0:
                        continue
                    P[hi * S + wi, o] += ah * aw
    return P


# ----------------------------------------------------------------------------
# In-kernel building blocks (pure jnp on 2-D VMEM values — only 2-D slices,
# 2-D concats, 2-D dots, broadcasts and axis reductions; no reshapes).
# ----------------------------------------------------------------------------
def _conv_bn_relu(X, w, g, be, mask, *, N, H, W):
    """Conv2d(3x3, 'same') + BatchNorm2d(train) + ReLU.

    X    : (Cin, N*L_pad) f32   zero-padded flat layout, sample-major lanes
    w    : (Cout, 9*Cin)  bf16  tap-major flattened conv weight
    g,be : (Cout, 1)      f32   BN affine
    mask : (1, N*L_mid)   f32   valid-column mask
    returns (Cout, N*L_mid) f32, masked (don't-care columns are 0).
    """
    S = W + 2
    L_mid = H * S
    L_pad = (H + 2) * S + 2
    Xb = X.astype(jnp.bfloat16)
    taps = []
    for ky in range(3):
        for kx in range(3):
            off = ky * S + kx
            taps.append(jnp.concatenate(
                [Xb[:, n * L_pad + off: n * L_pad + off + L_mid] for n in range(N)],
                axis=1))
    stack = jnp.concatenate(taps, axis=0)                        # (9*Cin, N*L_mid)
    y = jnp.dot(w, stack, preferred_element_type=jnp.float32)    # ONE wide-K matmul
    inv_cnt = 1.0 / float(N * H * W)
    mean = jnp.sum(y * mask, axis=1, keepdims=True) * inv_cnt    # (Cout, 1)
    cen = (y - mean) * mask                                      # two-pass variance
    var = jnp.sum(cen * cen, axis=1, keepdims=True) * inv_cnt
    z = jnp.maximum(cen * (g * lax.rsqrt(var + EPS)) + be, 0.0)
    return z * mask


def _mid_to_padded(Z, *, N, H, W):
    """masked mid(H, W) -> zero-padded flat layout at the same resolution.

    Pure lane concatenation (mid and padded share the row stride S = W+2)."""
    S = W + 2
    L_mid = H * S
    zc = jnp.zeros((Z.shape[0], S + 1), Z.dtype)
    pieces = []
    for n in range(N):
        pieces += [zc, Z[:, n * L_mid:(n + 1) * L_mid], zc]
    return jnp.concatenate(pieces, axis=1)                       # (C, N*L_pad)


def _compact_to_padded(Z, *, N, H, W):
    """compact (C, N*H*W) -> zero-padded flat layout (C, N*L_pad); lane concat."""
    C = Z.shape[0]
    M = H * W
    pieces = []
    for n in range(N):
        pieces.append(jnp.zeros((C, W + 3), Z.dtype))            # top row + left pad
        for h in range(H):
            pieces.append(Z[:, n * M + h * W: n * M + (h + 1) * W])
            pieces.append(jnp.zeros((C, 2 if h < H - 1 else W + 5), Z.dtype))
    return jnp.concatenate(pieces, axis=1)


def _batched_proj(Z, P, *, N):
    """Per-sample lane projection batched into one MXU matmul over N*C rows."""
    C = Z.shape[0]
    L_in = Z.shape[1] // N
    rows = jnp.concatenate([Z[:, n * L_in:(n + 1) * L_in] for n in range(N)],
                           axis=0).astype(jnp.bfloat16)          # (N*C, L_in)
    Y = jnp.dot(rows, P, preferred_element_type=jnp.float32)     # (N*C, L_out)
    return jnp.concatenate([Y[n * C:(n + 1) * C, :] for n in range(N)], axis=1)


def _maxpool2x2(Z, Pg, *, N, H, W):
    """MaxPool2d(2,2): gather projection + elementwise max; compact output."""
    M = (H // 2) * (W // 2)
    G = _batched_proj(Z, Pg, N=N)                                # (C, N*4M)
    outs = []
    for n in range(N):
        g = G[:, n * 4 * M:(n + 1) * 4 * M]
        outs.append(jnp.maximum(jnp.maximum(g[:, :M], g[:, M:2 * M]),
                                jnp.maximum(g[:, 2 * M:3 * M], g[:, 3 * M:])))
    return jnp.concatenate(outs, axis=1)                         # (C, N*M)


def _bn1d_relu(Y, g, be):
    """BatchNorm1d(train) + ReLU on (N, F)."""
    mean = jnp.mean(Y, axis=0, keepdims=True)
    cen = Y - mean
    var = jnp.mean(cen * cen, axis=0, keepdims=True)
    return jnp.maximum(cen * (g * lax.rsqrt(var + EPS)) + be, 0.0)


# ----------------------------------------------------------------------------
# Layout glue (model entry only)
# ----------------------------------------------------------------------------
def _to_padded_flat(x):
    """(N, C, H, W) -> (N, C, (H+2)*(W+2)+2) zero-padded flattened layout."""
    N, C, H, W = x.shape
    xp = jnp.pad(x, ((0, 0), (0, 0), (1, 1), (1, 1)))
    xf = xp.reshape(N, C, (H + 2) * (W + 2))
    return jnp.pad(xf, ((0, 0), (0, 0), (0, 2)))


# ----------------------------------------------------------------------------
# Full forward pass: one fused pallas_call
# ----------------------------------------------------------------------------
def conv_ae_forward(params, x_nchw):
    x_nchw = x_nchw.astype(jnp.float32)
    N, C0, H0, W0 = x_nchw.shape
    enc_blocks = params["enc"]
    dec_blocks = params["dec"]
    n_blocks = len(enc_blocks)

    # static spatial schedule (mirrors torch encode()/decode())
    shapes = []
    h, w = H0, W0
    for _ in range(n_blocks):
        shapes.append((h, w))
        h, w = h // 2, w // 2
    hb, wb = h, w                                   # bottleneck spatial size
    c_last = enc_blocks[-1]["c2"]["w"].shape[0]
    flat_dim = params["bn_w"].shape[0]
    latent = params["bn_w"].shape[1]
    assert flat_dim == c_last * hb * wb

    dec_res, up_pairs = [], []
    tgt = list(shapes)
    cur = (hb, wb)
    for _ in range(len(dec_blocks)):
        dec_res.append(cur)
        nxt = tgt.pop()                              # torch: shapes.pop()
        up_pairs.append((cur, nxt))
        cur = nxt

    # ---- constants (all pre-cast; bf16 for MXU operands) --------------------
    names, consts = [], []

    def add(name, arr):
        if name in names:
            return
        names.append(name)
        consts.append(arr)

    def conv_w_flat(w4):                             # torch (Cout,Cin,3,3) -> (Cout,9*Cin)
        co, ci = w4.shape[0], w4.shape[1]
        return jnp.transpose(w4, (0, 2, 3, 1)).reshape(co, 9 * ci).astype(jnp.bfloat16)

    # conv weights / BN affine (biases intentionally dropped: exactly cancelled
    # by train-mode BatchNorm mean subtraction)
    for tag, blocks in (("enc", enc_blocks), ("dec", dec_blocks)):
        for bi, blk in enumerate(blocks):
            for cn in ("c1", "c2"):
                c = blk[cn]
                co = c["w"].shape[0]
                add(f"{tag}{bi}.{cn}.w", conv_w_flat(c["w"]))
                add(f"{tag}{bi}.{cn}.g", c["g"].reshape(co, 1).astype(jnp.float32))
                add(f"{tag}{bi}.{cn}.be", c["be"].reshape(co, 1).astype(jnp.float32))

    add("bn.w", params["bn_w"].astype(jnp.bfloat16))
    add("bn.g", params["bn_g"].reshape(1, latent).astype(jnp.float32))
    add("bn.be", params["bn_be"].reshape(1, latent).astype(jnp.float32))
    add("fc.w", params["fc_w"].astype(jnp.bfloat16))
    add("fc.g", params["fc_g"].reshape(1, flat_dim).astype(jnp.float32))
    add("fc.be", params["fc_be"].reshape(1, flat_dim).astype(jnp.float32))

    for (H, W) in sorted(set(shapes) | set(dec_res)):
        add(f"mask.{H}x{W}", jnp.asarray(_col_mask(H, W, N)))
    for (H, W) in sorted(set(shapes)):
        add(f"pool.{H}x{W}", jnp.asarray(_proj_pool_gather(H, W), jnp.bfloat16))
    for (Hf, Wf), (Ht, Wt) in up_pairs:
        add(f"up.{Hf}x{Wf}to{Ht}x{Wt}",
            jnp.asarray(_proj_upsample(Hf, Wf, Ht, Wt), jnp.bfloat16))

    n_consts = len(names)
    x_flat = _to_padded_flat(x_nchw)                 # (N, C0, L_pad0)
    L_pad0 = _flat_len(H0, W0)
    assert x_flat.shape == (N, C0, L_pad0)

    # ---- the fused kernel ----------------------------------------------------
    def kernel(*refs):
        x_ref = refs[0]
        cd = dict(zip(names, refs[1:1 + n_consts]))
        o_ref = refs[1 + n_consts]

        def cv(name):
            return cd[name][...]

        # ------------------------------ encode ------------------------------
        X = jnp.concatenate([x_ref[n] for n in range(N)], axis=1)   # (C0, N*L_pad0)
        for bi, (H, W) in enumerate(shapes):
            m = cv(f"mask.{H}x{W}")
            z = _conv_bn_relu(X, cv(f"enc{bi}.c1.w"), cv(f"enc{bi}.c1.g"),
                              cv(f"enc{bi}.c1.be"), m, N=N, H=H, W=W)
            X = _mid_to_padded(z, N=N, H=H, W=W)
            z = _conv_bn_relu(X, cv(f"enc{bi}.c2.w"), cv(f"enc{bi}.c2.g"),
                              cv(f"enc{bi}.c2.be"), m, N=N, H=H, W=W)
            pooled = _maxpool2x2(z, cv(f"pool.{H}x{W}"), N=N, H=H, W=W)
            if bi + 1 < n_blocks:
                X = _compact_to_padded(pooled, N=N, H=H // 2, W=W // 2)
            else:
                X = pooled                                          # (c_last, N*hb*wb)

        # ---------------------------- bottleneck ----------------------------
        Mb = hb * wb
        flat_rows = []
        for n in range(N):
            Xn = X[:, n * Mb:(n + 1) * Mb]                          # (c_last, Mb)
            flat_rows.append(jnp.concatenate(
                [Xn[c:c + 1, :] for c in range(c_last)], axis=1))   # torch Flatten order
        Yf = jnp.concatenate(flat_rows, axis=0)                     # (N, flat_dim)
        z1 = jnp.dot(Yf.astype(jnp.bfloat16), cv("bn.w"),
                     preferred_element_type=jnp.float32)
        z1 = _bn1d_relu(z1, cv("bn.g"), cv("bn.be"))                # (N, latent)
        y2 = jnp.dot(z1.astype(jnp.bfloat16), cv("fc.w"),
                     preferred_element_type=jnp.float32)
        y2 = _bn1d_relu(y2, cv("fc.g"), cv("fc.be"))                # (N, flat_dim)

        # torch .view(N, C, hb, wb): per-sample channel rows via slicing
        comp = []
        for n in range(N):
            comp.append(jnp.concatenate(
                [y2[n:n + 1, c * Mb:(c + 1) * Mb] for c in range(c_last)], axis=0))
        Xc = jnp.concatenate(comp, axis=1)                          # compact (c_last, N*Mb)
        X = _compact_to_padded(Xc, N=N, H=hb, W=wb)

        # ------------------------------ decode ------------------------------
        for bi, (H, W) in enumerate(dec_res):
            m = cv(f"mask.{H}x{W}")
            z = _conv_bn_relu(X, cv(f"dec{bi}.c1.w"), cv(f"dec{bi}.c1.g"),
                              cv(f"dec{bi}.c1.be"), m, N=N, H=H, W=W)
            X = _mid_to_padded(z, N=N, H=H, W=W)
            z = _conv_bn_relu(X, cv(f"dec{bi}.c2.w"), cv(f"dec{bi}.c2.g"),
                              cv(f"dec{bi}.c2.be"), m, N=N, H=H, W=W)
            (Hf, Wf), (Ht, Wt) = up_pairs[bi]
            up = _batched_proj(z, cv(f"up.{Hf}x{Wf}to{Ht}x{Wt}"), N=N)  # (Cout, N*Ht*Wt)
            if bi + 1 < len(dec_blocks):
                X = _compact_to_padded(up, N=N, H=Ht, W=Wt)
            else:
                Mo = Ht * Wt
                for n in range(N):
                    o_ref[n] = up[:, n * Mo:(n + 1) * Mo]

    # ---- cost estimate (advisory) --------------------------------------------
    flops, trans = 0, 0
    conv_plan = [(shapes[bi], enc_blocks[bi][k]) for bi in range(n_blocks)
                 for k in ("c1", "c2")]
    conv_plan += [(dec_res[bi], dec_blocks[bi][k]) for bi in range(len(dec_blocks))
                  for k in ("c1", "c2")]
    for (H, W), c in conv_plan:
        co, ci = c["w"].shape[0], c["w"].shape[1]
        flops += 2 * co * 9 * ci * N * H * (W + 2)
        trans += co
    for bi, (H, W) in enumerate(shapes):
        C = enc_blocks[bi]["c2"]["w"].shape[0]
        flops += 2 * N * C * H * (W + 2) * (H * W)
    for bi, ((Hf, Wf), (Ht, Wt)) in enumerate(up_pairs):
        C = dec_blocks[bi]["c2"]["w"].shape[0]
        flops += 2 * N * C * Hf * (Wf + 2) * (Ht * Wt)
    flops += 4 * N * flat_dim * latent
    trans += latent + flat_dim
    bytes_acc = int(N * C0 * L_pad0 * 4 + N * C0 * H0 * W0 * 4
                    + sum(int(a.size) * a.dtype.itemsize for a in consts))

    out = pl.pallas_call(
        kernel,
        out_shape=jax.ShapeDtypeStruct((N, C0, H0 * W0), jnp.float32),
        in_specs=[_VMEM] * (1 + n_consts),
        out_specs=_VMEM,
        cost_estimate=pl.CostEstimate(flops=flops, transcendentals=trans,
                                      bytes_accessed=bytes_acc),
    )(x_flat, *consts)
    return out.reshape(N, C0, H0, W0)


# ----------------------------------------------------------------------------
# Parameter construction (deterministic, synthetic, torch-shaped weights)
# ----------------------------------------------------------------------------
def init_params(key, channels, latent_dim, hw):
    h, w = hw
    cnt = [0]

    def nk():
        cnt[0] += 1
        return jax.random.fold_in(key, cnt[0])

    def nrm(shape):
        return jax.random.normal(nk(), shape, jnp.float32) * 0.05

    def bn(c):
        return jnp.ones((c,), jnp.float32), jnp.zeros((c,), jnp.float32)

    def conv(cin, cout):
        g, be = bn(cout)
        # bias kept for interface parity with the torch module; it is exactly
        # cancelled by train-mode BatchNorm and is not fed to the kernel.
        return dict(w=nrm((cout, cin, 3, 3)), b=jnp.zeros((cout,), jnp.float32),
                    g=g, be=be)

    params = {"enc": [], "dec": []}
    for i in range(len(channels) - 1):
        cin, cout = channels[i], channels[i + 1]
        params["enc"].append(dict(c1=conv(cin, cout), c2=conv(cout, cout)))
        h, w = h // 2, w // 2

    flat = channels[-1] * h * w
    gl, bel = bn(latent_dim)
    params.update(bn_w=nrm((flat, latent_dim)),
                  bn_b=jnp.zeros((latent_dim,), jnp.float32), bn_g=gl, bn_be=bel)
    gf, bef = bn(flat)
    params.update(fc_w=nrm((latent_dim, flat)),
                  fc_b=jnp.zeros((flat,), jnp.float32), fc_g=gf, fc_be=bef)

    for i in range(len(channels) - 1, 0, -1):
        cin, cout = channels[i], channels[i - 1]
        params["dec"].append(dict(c1=conv(cin, cin), c2=conv(cin, cout)))
    return params


# ----------------------------------------------------------------------------
if __name__ == "__main__":
    key = jax.random.PRNGKey(0)
    kp, kx = jax.random.split(key)

    channels = [4, 8, 8]        # -> 2 encoder blocks, 2 decoder blocks
    latent_dim = 32
    N, H, W = 2, 16, 16

    params = init_params(kp, channels, latent_dim, (H, W))
    x = jax.random.normal(kx, (N, channels[0], H, W), jnp.float32)

    out = jax.jit(conv_ae_forward)(params, x)
    out = jax.block_until_ready(out)

    assert out.shape == (N, channels[0], H, W), out.shape
    assert bool(jnp.all(jnp.isfinite(out)))
    print("KERNEL_OK")
</pallas_src>

<mosaic_0001>
module attributes {stable_mosaic.version = 11 : i64} {
  func.func @kernel(%arg0: memref<2x4x326xf32, #tpu.memory_space<vmem>>, %arg1: memref<8x36xbf16, #tpu.memory_space<vmem>>, %arg2: memref<8x1xf32, #tpu.memory_space<vmem>>, %arg3: memref<8x1xf32, #tpu.memory_space<vmem>>, %arg4: memref<8x72xbf16, #tpu.memory_space<vmem>>, %arg5: memref<8x1xf32, #tpu.memory_space<vmem>>, %arg6: memref<8x1xf32, #tpu.memory_space<vmem>>, %arg7: memref<8x72xbf16, #tpu.memory_space<vmem>>, %arg8: memref<8x1xf32, #tpu.memory_space<vmem>>, %arg9: memref<8x1xf32, #tpu.memory_space<vmem>>, %arg10: memref<8x72xbf16, #tpu.memory_space<vmem>>, %arg11: memref<8x1xf32, #tpu.memory_space<vmem>>, %arg12: memref<8x1xf32, #tpu.memory_space<vmem>>, %arg13: memref<8x72xbf16, #tpu.memory_space<vmem>>, %arg14: memref<8x1xf32, #tpu.memory_space<vmem>>, %arg15: memref<8x1xf32, #tpu.memory_space<vmem>>, %arg16: memref<8x72xbf16, #tpu.memory_space<vmem>>, %arg17: memref<8x1xf32, #tpu.memory_space<vmem>>, %arg18: memref<8x1xf32, #tpu.memory_space<vmem>>, %arg19: memref<8x72xbf16, #tpu.memory_space<vmem>>, %arg20: memref<8x1xf32, #tpu.memory_space<vmem>>, %arg21: memref<8x1xf32, #tpu.memory_space<vmem>>, %arg22: memref<4x72xbf16, #tpu.memory_space<vmem>>, %arg23: memref<4x1xf32, #tpu.memory_space<vmem>>, %arg24: memref<4x1xf32, #tpu.memory_space<vmem>>, %arg25: memref<128x32xbf16, #tpu.memory_space<vmem>>, %arg26: memref<1x32xf32, #tpu.memory_space<vmem>>, %arg27: memref<1x32xf32, #tpu.memory_space<vmem>>, %arg28: memref<32x128xbf16, #tpu.memory_space<vmem>>, %arg29: memref<1x128xf32, #tpu.memory_space<vmem>>, %arg30: memref<1x128xf32, #tpu.memory_space<vmem>>, %arg31: memref<1x48xf32, #tpu.memory_space<vmem>>, %arg32: memref<1x160xf32, #tpu.memory_space<vmem>>, %arg33: memref<1x576xf32, #tpu.memory_space<vmem>>, %arg34: memref<80x64xbf16, #tpu.memory_space<vmem>>, %arg35: memref<288x256xbf16, #tpu.memory_space<vmem>>, %arg36: memref<24x64xbf16, #tpu.memory_space<vmem>>, %arg37: memref<80x256xbf16, #tpu.memory_space<vmem>>, %arg38: memref<2x4x256xf32, #tpu.memory_space<vmem>>) attributes {dimension_semantics = [], scalar_prefetch = 0 : i64, scratch_operands = 0 : i64, tpu.core_type = #tpu.core_type<tc>} {
    %c0 = arith.constant 0 : index
    %c0_0 = arith.constant 0 : index
    %c0_1 = arith.constant 0 : index
    %0 = vector.load %arg0[%c0, %c0_0, %c0_1] : memref<2x4x326xf32, #tpu.memory_space<vmem>>, vector<1x4x326xf32>
    %1 = vector.shape_cast %0 : vector<1x4x326xf32> to vector<4x326xf32>
    %c1 = arith.constant 1 : index
    %c0_2 = arith.constant 0 : index
    %c0_3 = arith.constant 0 : index
    %2 = vector.load %arg0[%c1, %c0_2, %c0_3] : memref<2x4x326xf32, #tpu.memory_space<vmem>>, vector<1x4x326xf32>
    %3 = vector.shape_cast %2 : vector<1x4x326xf32> to vector<4x326xf32>
    %4 = tpu.concatenate %1, %3 in 1 : vector<4x326xf32>, vector<4x326xf32> -> vector<4x652xf32>
    %c0_4 = arith.constant 0 : index
    %c0_5 = arith.constant 0 : index
    %5 = vector.load %arg33[%c0_4, %c0_5] : memref<1x576xf32, #tpu.memory_space<vmem>>, vector<1x576xf32>
    %c0_6 = arith.constant 0 : index
    %c0_7 = arith.constant 0 : index
    %6 = vector.load %arg1[%c0_6, %c0_7] : memref<8x36xbf16, #tpu.memory_space<vmem>>, vector<8x36xbf16>
    %c0_8 = arith.constant 0 : index
    %c0_9 = arith.constant 0 : index
    %7 = vector.load %arg2[%c0_8, %c0_9] : memref<8x1xf32, #tpu.memory_space<vmem>>, vector<8x1xf32>
    %c0_10 = arith.constant 0 : index
    %c0_11 = arith.constant 0 : index
    %8 = vector.load %arg3[%c0_10, %c0_11] : memref<8x1xf32, #tpu.memory_space<vmem>>, vector<8x1xf32>
    %9 = arith.truncf %4 : vector<4x652xf32> to vector<4x652xbf16>
    %10 = vector.extract_strided_slice %9 {offsets = [0, 0], sizes = [4, 288], strides = [1, 1]} : vector<4x652xbf16> to vector<4x288xbf16>
    %11 = vector.extract_strided_slice %9 {offsets = [0, 326], sizes = [4, 288], strides = [1, 1]} : vector<4x652xbf16> to vector<4x288xbf16>
    %12 = tpu.concatenate %10, %11 in 1 : vector<4x288xbf16>, vector<4x288xbf16> -> vector<4x576xbf16>
    %13 = vector.extract_strided_slice %9 {offsets = [0, 1], sizes = [4, 288], strides = [1, 1]} : vector<4x652xbf16> to vector<4x288xbf16>
    %14 = vector.extract_strided_slice %9 {offsets = [0, 327], sizes = [4, 288], strides = [1, 1]} : vector<4x652xbf16> to vector<4x288xbf16>
    %15 = tpu.concatenate %13, %14 in 1 : vector<4x288xbf16>, vector<4x288xbf16> -> vector<4x576xbf16>
    %16 = vector.extract_strided_slice %9 {offsets = [0, 2], sizes = [4, 288], strides = [1, 1]} : vector<4x652xbf16> to vector<4x288xbf16>
    %17 = vector.extract_strided_slice %9 {offsets = [0, 328], sizes = [4, 288], strides = [1, 1]} : vector<4x652xbf16> to vector<4x288xbf16>
    %18 = tpu.concatenate %16, %17 in 1 : vector<4x288xbf16>, vector<4x288xbf16> -> vector<4x576xbf16>
    %19 = vector.extract_strided_slice %9 {offsets = [0, 18], sizes = [4, 288], strides = [1, 1]} : vector<4x652xbf16> to vector<4x288xbf16>
    %20 = vector.extract_strided_slice %9 {offsets = [0, 344], sizes = [4, 288], strides = [1, 1]} : vector<4x652xbf16> to vector<4x288xbf16>
    %21 = tpu.concatenate %19, %20 in 1 : vector<4x288xbf16>, vector<4x288xbf16> -> vector<4x576xbf16>
    %22 = vector.extract_strided_slice %9 {offsets = [0, 19], sizes = [4, 288], strides = [1, 1]} : vector<4x652xbf16> to vector<4x288xbf16>
    %23 = vector.extract_strided_slice %9 {offsets = [0, 345], sizes = [4, 288], strides = [1, 1]} : vector<4x652xbf16> to vector<4x288xbf16>
    %24 = tpu.concatenate %22, %23 in 1 : vector<4x288xbf16>, vector<4x288xbf16> -> vector<4x576xbf16>
    %25 = vector.extract_strided_slice %9 {offsets = [0, 20], sizes = [4, 288], strides = [1, 1]} : vector<4x652xbf16> to vector<4x288xbf16>
    %26 = vector.extract_strided_slice %9 {offsets = [0, 346], sizes = [4, 288], strides = [1, 1]} : vector<4x652xbf16> to vector<4x288xbf16>
    %27 = tpu.concatenate %25, %26 in 1 : vector<4x288xbf16>, vector<4x288xbf16> -> vector<4x576xbf16>
    %28 = vector.extract_strided_slice %9 {offsets = [0, 36], sizes = [4, 288], strides = [1, 1]} : vector<4x652xbf16> to vector<4x288xbf16>
    %29 = vector.extract_strided_slice %9 {offsets = [0, 362], sizes = [4, 288], strides = [1, 1]} : vector<4x652xbf16> to vector<4x288xbf16>
    %30 = tpu.concatenate %28, %29 in 1 : vector<4x288xbf16>, vector<4x288xbf16> -> vector<4x576xbf16>
    %31 = vector.extract_strided_slice %9 {offsets = [0, 37], sizes = [4, 288], strides = [1, 1]} : vector<4x652xbf16> to vector<4x288xbf16>
    %32 = vector.extract_strided_slice %9 {offsets = [0, 363], sizes = [4, 288], strides = [1, 1]} : vector<4x652xbf16> to vector<4x288xbf16>
    %33 = tpu.concatenate %31, %32 in 1 : vector<4x288xbf16>, vector<4x288xbf16> -> vector<4x576xbf16>
    %34 = vector.extract_strided_slice %9 {offsets = [0, 38], sizes = [4, 288], strides = [1, 1]} : vector<4x652xbf16> to vector<4x288xbf16>
    %35 = vector.extract_strided_slice %9 {offsets = [0, 364], sizes = [4, 288], strides = [1, 1]} : vector<4x652xbf16> to vector<4x288xbf16>
    %36 = tpu.concatenate %34, %35 in 1 : vector<4x288xbf16>, vector<4x288xbf16> -> vector<4x576xbf16>
    %37 = tpu.concatenate %12, %15, %18, %21, %24, %27, %30, %33, %36 in 0 : vector<4x576xbf16>, vector<4x576xbf16>, vector<4x576xbf16>, vector<4x576xbf16>, vector<4x576xbf16>, vector<4x576xbf16>, vector<4x576xbf16>, vector<4x576xbf16>, vector<4x576xbf16> -> vector<36x576xbf16>
    %cst = arith.constant dense<0.000000e+00> : vector<8x576xf32>
    %38 = tpu.matmul %6, %37, %cst {dimension_numbers = #tpu.dot_dimension_numbers<[1], [0], [0], [1], [0, 0, 1, 1], [], []>} : vector<8x36xbf16>, vector<36x576xbf16>, vector<8x576xf32> -> vector<8x576xf32>
    %39 = vector.broadcast %5 : vector<1x576xf32> to vector<8x576xf32>
    %40 = arith.mulf %38, %39 : vector<8x576xf32>
    %cst_12 = arith.constant dense<0.000000e+00> : vector<8xf32>
    %41 = vector.multi_reduction <add>, %40, %cst_12 [1] : vector<8x576xf32> to vector<8xf32>
    %42 = vector.shape_cast %41 : vector<8xf32> to vector<8x1xf32>
    %cst_13 = arith.constant 0.001953125 : f32
    %43 = vector.broadcast %cst_13 : f32 to vector<8x1xf32>
    %44 = arith.mulf %42, %43 : vector<8x1xf32>
    %45 = vector.broadcast %44 : vector<8x1xf32> to vector<8x576xf32>
    %46 = arith.subf %38, %45 : vector<8x576xf32>
    %47 = vector.broadcast %5 : vector<1x576xf32> to vector<8x576xf32>
    %48 = arith.mulf %46, %47 : vector<8x576xf32>
    %49 = arith.mulf %48, %48 : vector<8x576xf32>
    %cst_14 = arith.constant dense<0.000000e+00> : vector<8xf32>
    %50 = vector.multi_reduction <add>, %49, %cst_14 [1] : vector<8x576xf32> to vector<8xf32>
    %51 = vector.shape_cast %50 : vector<8xf32> to vector<8x1xf32>
    %cst_15 = arith.constant 0.001953125 : f32
    %52 = vector.broadcast %cst_15 : f32 to vector<8x1xf32>
    %53 = arith.mulf %51, %52 : vector<8x1xf32>
    %cst_16 = arith.constant 9.99999974E-6 : f32
    %54 = vector.broadcast %cst_16 : f32 to vector<8x1xf32>
    %55 = arith.addf %53, %54 : vector<8x1xf32>
    %56 = math.rsqrt %55 : vector<8x1xf32>
    %57 = arith.mulf %7, %56 : vector<8x1xf32>
    %58 = vector.broadcast %57 : vector<8x1xf32> to vector<8x576xf32>
    %59 = arith.mulf %48, %58 : vector<8x576xf32>
    %60 = vector.broadcast %8 : vector<8x1xf32> to vector<8x576xf32>
    %61 = arith.addf %59, %60 : vector<8x576xf32>
    %cst_17 = arith.constant 0.000000e+00 : f32
    %62 = vector.broadcast %cst_17 : f32 to vector<8x576xf32>
    %63 = arith.maximumf %61, %62 : vector<8x576xf32>
    %64 = vector.broadcast %5 : vector<1x576xf32> to vector<8x576xf32>
    %65 = arith.mulf %63, %64 : vector<8x576xf32>
    %cst_18 = arith.constant 0.000000e+00 : f32
    %66 = vector.broadcast %cst_18 : f32 to vector<8x19xf32>
    %67 = vector.extract_strided_slice %65 {offsets = [0, 0], sizes = [8, 288], strides = [1, 1]} : vector<8x576xf32> to vector<8x288xf32>
    %68 = vector.extract_strided_slice %65 {offsets = [0, 288], sizes = [8, 288], strides = [1, 1]} : vector<8x576xf32> to vector<8x288xf32>
    %69 = tpu.concatenate %66, %67, %66, %66, %68, %66 in 1 : vector<8x19xf32>, vector<8x288xf32>, vector<8x19xf32>, vector<8x19xf32>, vector<8x288xf32>, vector<8x19xf32> -> vector<8x652xf32>
    %c0_19 = arith.constant 0 : index
    %c0_20 = arith.constant 0 : index
    %70 = vector.load %arg4[%c0_19, %c0_20] : memref<8x72xbf16, #tpu.memory_space<vmem>>, vector<8x72xbf16>
    %c0_21 = arith.constant 0 : index
    %c0_22 = arith.constant 0 : index
    %71 = vector.load %arg5[%c0_21, %c0_22] : memref<8x1xf32, #tpu.memory_space<vmem>>, vector<8x1xf32>
    %c0_23 = arith.constant 0 : index
    %c0_24 = arith.constant 0 : index
    %72 = vector.load %arg6[%c0_23, %c0_24] : memref<8x1xf32, #tpu.memory_space<vmem>>, vector<8x1xf32>
    %73 = arith.truncf %69 : vector<8x652xf32> to vector<8x652xbf16>
    %74 = vector.extract_strided_slice %73 {offsets = [0, 0], sizes = [8, 288], strides = [1, 1]} : vector<8x652xbf16> to vector<8x288xbf16>
    %75 = vector.extract_strided_slice %73 {offsets = [0, 326], sizes = [8, 288], strides = [1, 1]} : vector<8x652xbf16> to vector<8x288xbf16>
    %76 = tpu.concatenate %74, %75 in 1 : vector<8x288xbf16>, vector<8x288xbf16> -> vector<8x576xbf16>
    %77 = vector.extract_strided_slice %73 {offsets = [0, 1], sizes = [8, 288], strides = [1, 1]} : vector<8x652xbf16> to vector<8x288xbf16>
    %78 = vector.extract_strided_slice %73 {offsets = [0, 327], sizes = [8, 288], strides = [1, 1]} : vector<8x652xbf16> to vector<8x288xbf16>
    %79 = tpu.concatenate %77, %78 in 1 : vector<8x288xbf16>, vector<8x288xbf16> -> vector<8x576xbf16>
    %80 = vector.extract_strided_slice %73 {offsets = [0, 2], sizes = [8, 288], strides = [1, 1]} : vector<8x652xbf16> to vector<8x288xbf16>
    %81 = vector.extract_strided_slice %73 {offsets = [0, 328], sizes = [8, 288], strides = [1, 1]} : vector<8x652xbf16> to vector<8x288xbf16>
    %82 = tpu.concatenate %80, %81 in 1 : vector<8x288xbf16>, vector<8x288xbf16> -> vector<8x576xbf16>
    %83 = vector.extract_strided_slice %73 {offsets = [0, 18], sizes = [8, 288], strides = [1, 1]} : vector<8x652xbf16> to vector<8x288xbf16>
    %84 = vector.extract_strided_slice %73 {offsets = [0, 344], sizes = [8, 288], strides = [1, 1]} : vector<8x652xbf16> to vector<8x288xbf16>
    %85 = tpu.concatenate %83, %84 in 1 : vector<8x288xbf16>, vector<8x288xbf16> -> vector<8x576xbf16>
    %86 = vector.extract_strided_slice %73 {offsets = [0, 19], sizes = [8, 288], strides = [1, 1]} : vector<8x652xbf16> to vector<8x288xbf16>
    %87 = vector.extract_strided_slice %73 {offsets = [0, 345], sizes = [8, 288], strides = [1, 1]} : vector<8x652xbf16> to vector<8x288xbf16>
    %88 = tpu.concatenate %86, %87 in 1 : vector<8x288xbf16>, vector<8x288xbf16> -> vector<8x576xbf16>
    %89 = vector.extract_strided_slice %73 {offsets = [0, 20], sizes = [8, 288], strides = [1, 1]} : vector<8x652xbf16> to vector<8x288xbf16>
    %90 = vector.extract_strided_slice %73 {offsets = [0, 346], sizes = [8, 288], strides = [1, 1]} : vector<8x652xbf16> to vector<8x288xbf16>
    %91 = tpu.concatenate %89, %90 in 1 : vector<8x288xbf16>, vector<8x288xbf16> -> vector<8x576xbf16>
    %92 = vector.extract_strided_slice %73 {offsets = [0, 36], sizes = [8, 288], strides = [1, 1]} : vector<8x652xbf16> to vector<8x288xbf16>
    %93 = vector.extract_strided_slice %73 {offsets = [0, 362], sizes = [8, 288], strides = [1, 1]} : vector<8x652xbf16> to vector<8x288xbf16>
    %94 = tpu.concatenate %92, %93 in 1 : vector<8x288xbf16>, vector<8x288xbf16> -> vector<8x576xbf16>
    %95 = vector.extract_strided_slice %73 {offsets = [0, 37], sizes = [8, 288], strides = [1, 1]} : vector<8x652xbf16> to vector<8x288xbf16>
    %96 = vector.extract_strided_slice %73 {offsets = [0, 363], sizes = [8, 288], strides = [1, 1]} : vector<8x652xbf16> to vector<8x288xbf16>
    %97 = tpu.concatenate %95, %96 in 1 : vector<8x288xbf16>, vector<8x288xbf16> -> vector<8x576xbf16>
    %98 = vector.extract_strided_slice %73 {offsets = [0, 38], sizes = [8, 288], strides = [1, 1]} : vector<8x652xbf16> to vector<8x288xbf16>
    %99 = vector.extract_strided_slice %73 {offsets = [0, 364], sizes = [8, 288], strides = [1, 1]} : vector<8x652xbf16> to vector<8x288xbf16>
    %100 = tpu.concatenate %98, %99 in 1 : vector<8x288xbf16>, vector<8x288xbf16> -> vector<8x576xbf16>
    %101 = tpu.concatenate %76, %79, %82, %85, %88, %91, %94, %97, %100 in 0 : vector<8x576xbf16>, vector<8x576xbf16>, vector<8x576xbf16>, vector<8x576xbf16>, vector<8x576xbf16>, vector<8x576xbf16>, vector<8x576xbf16>, vector<8x576xbf16>, vector<8x576xbf16> -> vector<72x576xbf16>
    %cst_25 = arith.constant dense<0.000000e+00> : vector<8x576xf32>
    %102 = tpu.matmul %70, %101, %cst_25 {dimension_numbers = #tpu.dot_dimension_numbers<[1], [0], [0], [1], [0, 0, 1, 1], [], []>} : vector<8x72xbf16>, vector<72x576xbf16>, vector<8x576xf32> -> vector<8x576xf32>
    %103 = vector.broadcast %5 : vector<1x576xf32> to vector<8x576xf32>
    %104 = arith.mulf %102, %103 : vector<8x576xf32>
    %cst_26 = arith.constant dense<0.000000e+00> : vector<8xf32>
    %105 = vector.multi_reduction <add>, %104, %cst_26 [1] : vector<8x576xf32> to vector<8xf32>
    %106 = vector.shape_cast %105 : vector<8xf32> to vector<8x1xf32>
    %cst_27 = arith.constant 0.001953125 : f32
    %107 = vector.broadcast %cst_27 : f32 to vector<8x1xf32>
    %108 = arith.mulf %106, %107 : vector<8x1xf32>
    %109 = vector.broadcast %108 : vector<8x1xf32> to vector<8x576xf32>
    %110 = arith.subf %102, %109 : vector<8x576xf32>
    %111 = vector.broadcast %5 : vector<1x576xf32> to vector<8x576xf32>
    %112 = arith.mulf %110, %111 : vector<8x576xf32>
    %113 = arith.mulf %112, %112 : vector<8x576xf32>
    %cst_28 = arith.constant dense<0.000000e+00> : vector<8xf32>
    %114 = vector.multi_reduction <add>, %113, %cst_28 [1] : vector<8x576xf32> to vector<8xf32>
    %115 = vector.shape_cast %114 : vector<8xf32> to vector<8x1xf32>
    %cst_29 = arith.constant 0.001953125 : f32
    %116 = vector.broadcast %cst_29 : f32 to vector<8x1xf32>
    %117 = arith.mulf %115, %116 : vector<8x1xf32>
    %cst_30 = arith.constant 9.99999974E-6 : f32
    %118 = vector.broadcast %cst_30 : f32 to vector<8x1xf32>
    %119 = arith.addf %117, %118 : vector<8x1xf32>
    %120 = math.rsqrt %119 : vector<8x1xf32>
    %121 = arith.mulf %71, %120 : vector<8x1xf32>
    %122 = vector.broadcast %121 : vector<8x1xf32> to vector<8x576xf32>
    %123 = arith.mulf %112, %122 : vector<8x576xf32>
    %124 = vector.broadcast %72 : vector<8x1xf32> to vector<8x576xf32>
    %125 = arith.addf %123, %124 : vector<8x576xf32>
    %cst_31 = arith.constant 0.000000e+00 : f32
    %126 = vector.broadcast %cst_31 : f32 to vector<8x576xf32>
    %127 = arith.maximumf %125, %126 : vector<8x576xf32>
    %128 = vector.broadcast %5 : vector<1x576xf32> to vector<8x576xf32>
    %129 = arith.mulf %127, %128 : vector<8x576xf32>
    %c0_32 = arith.constant 0 : index
    %c0_33 = arith.constant 0 : index
    %130 = vector.load %arg35[%c0_32, %c0_33] : memref<288x256xbf16, #tpu.memory_space<vmem>>, vector<288x256xbf16>
    %131 = vector.extract_strided_slice %129 {offsets = [0, 0], sizes = [8, 288], strides = [1, 1]} : vector<8x576xf32> to vector<8x288xf32>
    %132 = vector.extract_strided_slice %129 {offsets = [0, 288], sizes = [8, 288], strides = [1, 1]} : vector<8x576xf32> to vector<8x288xf32>
    %133 = tpu.concatenate %131, %132 in 0 : vector<8x288xf32>, vector<8x288xf32> -> vector<16x288xf32>
    %134 = arith.truncf %133 : vector<16x288xf32> to vector<16x288xbf16>
    %cst_34 = arith.constant dense<0.000000e+00> : vector<16x256xf32>
    %135 = tpu.matmul %134, %130, %cst_34 {dimension_numbers = #tpu.dot_dimension_numbers<[1], [0], [0], [1], [0, 0, 1, 1], [], []>} : vector<16x288xbf16>, vector<288x256xbf16>, vector<16x256xf32> -> vector<16x256xf32>
    %136 = vector.extract_strided_slice %135 {offsets = [0, 0], sizes = [8, 256], strides = [1, 1]} : vector<16x256xf32> to vector<8x256xf32>
    %137 = vector.extract_strided_slice %135 {offsets = [8, 0], sizes = [8, 256], strides = [1, 1]} : vector<16x256xf32> to vector<8x256xf32>
    %138 = tpu.concatenate %136, %137 in 1 : vector<8x256xf32>, vector<8x256xf32> -> vector<8x512xf32>
    %139 = vector.extract_strided_slice %138 {offsets = [0, 0], sizes = [8, 256], strides = [1, 1]} : vector<8x512xf32> to vector<8x256xf32>
    %140 = vector.extract_strided_slice %139 {offsets = [0, 0], sizes = [8, 64], strides = [1, 1]} : vector<8x256xf32> to vector<8x64xf32>
    %141 = vector.extract_strided_slice %139 {offsets = [0, 64], sizes = [8, 64], strides = [1, 1]} : vector<8x256xf32> to vector<8x64xf32>
    %142 = arith.maximumf %140, %141 : vector<8x64xf32>
    %143 = vector.extract_strided_slice %139 {offsets = [0, 128], sizes = [8, 64], strides = [1, 1]} : vector<8x256xf32> to vector<8x64xf32>
    %144 = vector.extract_strided_slice %139 {offsets = [0, 192], sizes = [8, 64], strides = [1, 1]} : vector<8x256xf32> to vector<8x64xf32>
    %145 = arith.maximumf %143, %144 : vector<8x64xf32>
    %146 = arith.maximumf %142, %145 : vector<8x64xf32>
    %147 = vector.extract_strided_slice %138 {offsets = [0, 256], sizes = [8, 256], strides = [1, 1]} : vector<8x512xf32> to vector<8x256xf32>
    %148 = vector.extract_strided_slice %147 {offsets = [0, 0], sizes = [8, 64], strides = [1, 1]} : vector<8x256xf32> to vector<8x64xf32>
    %149 = vector.extract_strided_slice %147 {offsets = [0, 64], sizes = [8, 64], strides = [1, 1]} : vector<8x256xf32> to vector<8x64xf32>
    %150 = arith.maximumf %148, %149 : vector<8x64xf32>
    %151 = vector.extract_strided_slice %147 {offsets = [0, 128], sizes = [8, 64], strides = [1, 1]} : vector<8x256xf32> to vector<8x64xf32>
    %152 = vector.extract_strided_slice %147 {offsets = [0, 192], sizes = [8, 64], strides = [1, 1]} : vector<8x256xf32> to vector<8x64xf32>
    %153 = arith.maximumf %151, %152 : vector<8x64xf32>
    %154 = arith.maximumf %150, %153 : vector<8x64xf32>
    %155 = tpu.concatenate %146, %154 in 1 : vector<8x64xf32>, vector<8x64xf32> -> vector<8x128xf32>
    %cst_35 = arith.constant 0.000000e+00 : f32
    %156 = vector.broadcast %cst_35 : f32 to vector<8x11xf32>
    %157 = vector.extract_strided_slice %155 {offsets = [0, 0], sizes = [8, 8], strides = [1, 1]} : vector<8x128xf32> to vector<8x8xf32>
    %cst_36 = arith.constant 0.000000e+00 : f32
    %158 = vector.broadcast %cst_36 : f32 to vector<8x2xf32>
    %159 = vector.extract_strided_slice %155 {offsets = [0, 8], sizes = [8, 8], strides = [1, 1]} : vector<8x128xf32> to vector<8x8xf32>
    %cst_37 = arith.constant 0.000000e+00 : f32
    %160 = vector.broadcast %cst_37 : f32 to vector<8x2xf32>
    %161 = vector.extract_strided_slice %155 {offsets = [0, 16], sizes = [8, 8], strides = [1, 1]} : vector<8x128xf32> to vector<8x8xf32>
    %cst_38 = arith.constant 0.000000e+00 : f32
    %162 = vector.broadcast %cst_38 : f32 to vector<8x2xf32>
    %163 = vector.extract_strided_slice %155 {offsets = [0, 24], sizes = [8, 8], strides = [1, 1]} : vector<8x128xf32> to vector<8x8xf32>
    %cst_39 = arith.constant 0.000000e+00 : f32
    %164 = vector.broadcast %cst_39 : f32 to vector<8x2xf32>
    %165 = vector.extract_strided_slice %155 {offsets = [0, 32], sizes = [8, 8], strides = [1, 1]} : vector<8x128xf32> to vector<8x8xf32>
    %cst_40 = arith.constant 0.000000e+00 : f32
    %166 = vector.broadcast %cst_40 : f32 to vector<8x2xf32>
    %167 = vector.extract_strided_slice %155 {offsets = [0, 40], sizes = [8, 8], strides = [1, 1]} : vector<8x128xf32> to vector<8x8xf32>
    %cst_41 = arith.constant 0.000000e+00 : f32
    %168 = vector.broadcast %cst_41 : f32 to vector<8x2xf32>
    %169 = vector.extract_strided_slice %155 {offsets = [0, 48], sizes = [8, 8], strides = [1, 1]} : vector<8x128xf32> to vector<8x8xf32>
    %cst_42 = arith.constant 0.000000e+00 : f32
    %170 = vector.broadcast %cst_42 : f32 to vector<8x2xf32>
    %171 = vector.extract_strided_slice %155 {offsets = [0, 56], sizes = [8, 8], strides = [1, 1]} : vector<8x128xf32> to vector<8x8xf32>
    %cst_43 = arith.constant 0.000000e+00 : f32
    %172 = vector.broadcast %cst_43 : f32 to vector<8x13xf32>
    %cst_44 = arith.constant 0.000000e+00 : f32
    %173 = vector.broadcast %cst_44 : f32 to vector<8x11xf32>
    %174 = vector.extract_strided_slice %155 {offsets = [0, 64], sizes = [8, 8], strides = [1, 1]} : vector<8x128xf32> to vector<8x8xf32>
    %cst_45 = arith.constant 0.000000e+00 : f32
    %175 = vector.broadcast %cst_45 : f32 to vector<8x2xf32>
    %176 = vector.extract_strided_slice %155 {offsets = [0, 72], sizes = [8, 8], strides = [1, 1]} : vector<8x128xf32> to vector<8x8xf32>
    %cst_46 = arith.constant 0.000000e+00 : f32
    %177 = vector.broadcast %cst_46 : f32 to vector<8x2xf32>
    %178 = vector.extract_strided_slice %155 {offsets = [0, 80], sizes = [8, 8], strides = [1, 1]} : vector<8x128xf32> to vector<8x8xf32>
    %cst_47 = arith.constant 0.000000e+00 : f32
    %179 = vector.broadcast %cst_47 : f32 to vector<8x2xf32>
    %180 = vector.extract_strided_slice %155 {offsets = [0, 88], sizes = [8, 8], strides = [1, 1]} : vector<8x128xf32> to vector<8x8xf32>
    %cst_48 = arith.constant 0.000000e+00 : f32
    %181 = vector.broadcast %cst_48 : f32 to vector<8x2xf32>
    %182 = vector.extract_strided_slice %155 {offsets = [0, 96], sizes = [8, 8], strides = [1, 1]} : vector<8x128xf32> to vector<8x8xf32>
    %cst_49 = arith.constant 0.000000e+00 : f32
    %183 = vector.broadcast %cst_49 : f32 to vector<8x2xf32>
    %184 = vector.extract_strided_slice %155 {offsets = [0, 104], sizes = [8, 8], strides = [1, 1]} : vector<8x128xf32> to vector<8x8xf32>
    %cst_50 = arith.constant 0.000000e+00 : f32
    %185 = vector.broadcast %cst_50 : f32 to vector<8x2xf32>
    %186 = vector.extract_strided_slice %155 {offsets = [0, 112], sizes = [8, 8], strides = [1, 1]} : vector<8x128xf32> to vector<8x8xf32>
    %cst_51 = arith.constant 0.000000e+00 : f32
    %187 = vector.broadcast %cst_51 : f32 to vector<8x2xf32>
    %188 = vector.extract_strided_slice %155 {offsets = [0, 120], sizes = [8, 8], strides = [1, 1]} : vector<8x128xf32> to vector<8x8xf32>
    %cst_52 = arith.constant 0.000000e+00 : f32
    %189 = vector.broadcast %cst_52 : f32 to vector<8x13xf32>
    %190 = tpu.concatenate %156, %157, %158, %159, %160, %161, %162, %163, %164, %165, %166, %167, %168, %169, %170, %171 in 1 : vector<8x11xf32>, vector<8x8xf32>, vector<8x2xf32>, vector<8x8xf32>, vector<8x2xf32>, vector<8x8xf32>, vector<8x2xf32>, vector<8x8xf32>, vector<8x2xf32>, vector<8x8xf32>, vector<8x2xf32>, vector<8x8xf32>, vector<8x2xf32>, vector<8x8xf32>, vector<8x2xf32>, vector<8x8xf32> -> vector<8x89xf32>
    %191 = tpu.concatenate %172, %173, %174, %175, %176, %177, %178, %179, %180, %181, %182, %183, %184, %185, %186, %187 in 1 : vector<8x13xf32>, vector<8x11xf32>, vector<8x8xf32>, vector<8x2xf32>, vector<8x8xf32>, vector<8x2xf32>, vector<8x8xf32>, vector<8x2xf32>, vector<8x8xf32>, vector<8x2xf32>, vector<8x8xf32>, vector<8x2xf32>, vector<8x8xf32>, vector<8x2xf32>, vector<8x8xf32>, vector<8x2xf32> -> vector<8x94xf32>
    %192 = tpu.concatenate %188, %189 in 1 : vector<8x8xf32>, vector<8x13xf32> -> vector<8x21xf32>
    %193 = tpu.concatenate %190, %191, %192 in 1 : vector<8x89xf32>, vector<8x94xf32>, vector<8x21xf32> -> vector<8x204xf32>
    %c0_53 = arith.constant 0 : index
    %c0_54 = arith.constant 0 : index
    %194 = vector.load %arg32[%c0_53, %c0_54] : memref<1x160xf32, #tpu.memory_space<vmem>>, vector<1x160xf32>
    %c0_55 = arith.constant 0 : index
    %c0_56 = arith.constant 0 : index
    %195 = vector.load %arg7[%c0_55, %c0_56] : memref<8x72xbf16, #tpu.memory_space<vmem>>, vector<8x72xbf16>
    %c0_57 = arith.constant 0 : index
    %c0_58 = arith.constant 0 : index
    %196 = vector.load %arg8[%c0_57, %c0_58] : memref<8x1xf32, #tpu.memory_space<vmem>>, vector<8x1xf32>
    %c0_59 = arith.constant 0 : index
    %c0_60 = arith.constant 0 : index
    %197 = vector.load %arg9[%c0_59, %c0_60] : memref<8x1xf32, #tpu.memory_space<vmem>>, vector<8x1xf32>
    %198 = arith.truncf %193 : vector<8x204xf32> to vector<8x204xbf16>
    %199 = vector.extract_strided_slice %198 {offsets = [0, 0], sizes = [8, 80], strides = [1, 1]} : vector<8x204xbf16> to vector<8x80xbf16>
    %200 = vector.extract_strided_slice %198 {offsets = [0, 102], sizes = [8, 80], strides = [1, 1]} : vector<8x204xbf16> to vector<8x80xbf16>
    %201 = tpu.concatenate %199, %200 in 1 : vector<8x80xbf16>, vector<8x80xbf16> -> vector<8x160xbf16>
    %202 = vector.extract_strided_slice %198 {offsets = [0, 1], sizes = [8, 80], strides = [1, 1]} : vector<8x204xbf16> to vector<8x80xbf16>
    %203 = vector.extract_strided_slice %198 {offsets = [0, 103], sizes = [8, 80], strides = [1, 1]} : vector<8x204xbf16> to vector<8x80xbf16>
    %204 = tpu.concatenate %202, %203 in 1 : vector<8x80xbf16>, vector<8x80xbf16> -> vector<8x160xbf16>
    %205 = vector.extract_strided_slice %198 {offsets = [0, 2], sizes = [8, 80], strides = [1, 1]} : vector<8x204xbf16> to vector<8x80xbf16>
    %206 = vector.extract_strided_slice %198 {offsets = [0, 104], sizes = [8, 80], strides = [1, 1]} : vector<8x204xbf16> to vector<8x80xbf16>
    %207 = tpu.concatenate %205, %206 in 1 : vector<8x80xbf16>, vector<8x80xbf16> -> vector<8x160xbf16>
    %208 = vector.extract_strided_slice %198 {offsets = [0, 10], sizes = [8, 80], strides = [1, 1]} : vector<8x204xbf16> to vector<8x80xbf16>
    %209 = vector.extract_strided_slice %198 {offsets = [0, 112], sizes = [8, 80], strides = [1, 1]} : vector<8x204xbf16> to vector<8x80xbf16>
    %210 = tpu.concatenate %208, %209 in 1 : vector<8x80xbf16>, vector<8x80xbf16> -> vector<8x160xbf16>
    %211 = vector.extract_strided_slice %198 {offsets = [0, 11], sizes = [8, 80], strides = [1, 1]} : vector<8x204xbf16> to vector<8x80xbf16>
    %212 = vector.extract_strided_slice %198 {offsets = [0, 113], sizes = [8, 80], strides = [1, 1]} : vector<8x204xbf16> to vector<8x80xbf16>
    %213 = tpu.concatenate %211, %212 in 1 : vector<8x80xbf16>, vector<8x80xbf16> -> vector<8x160xbf16>
    %214 = vector.extract_strided_slice %198 {offsets = [0, 12], sizes = [8, 80], strides = [1, 1]} : vector<8x204xbf16> to vector<8x80xbf16>
    %215 = vector.extract_strided_slice %198 {offsets = [0, 114], sizes = [8, 80], strides = [1, 1]} : vector<8x204xbf16> to vector<8x80xbf16>
    %216 = tpu.concatenate %214, %215 in 1 : vector<8x80xbf16>, vector<8x80xbf16> -> vector<8x160xbf16>
    %217 = vector.extract_strided_slice %198 {offsets = [0, 20], sizes = [8, 80], strides = [1, 1]} : vector<8x204xbf16> to vector<8x80xbf16>
    %218 = vector.extract_strided_slice %198 {offsets = [0, 122], sizes = [8, 80], strides = [1, 1]} : vector<8x204xbf16> to vector<8x80xbf16>
    %219 = tpu.concatenate %217, %218 in 1 : vector<8x80xbf16>, vector<8x80xbf16> -> vector<8x160xbf16>
    %220 = vector.extract_strided_slice %198 {offsets = [0, 21], sizes = [8, 80], strides = [1, 1]} : vector<8x204xbf16> to vector<8x80xbf16>
    %221 = vector.extract_strided_slice %198 {offsets = [0, 123], sizes = [8, 80], strides = [1, 1]} : vector<8x204xbf16> to vector<8x80xbf16>
    %222 = tpu.concatenate %220, %221 in 1 : vector<8x80xbf16>, vector<8x80xbf16> -> vector<8x160xbf16>
    %223 = vector.extract_strided_slice %198 {offsets = [0, 22], sizes = [8, 80], strides = [1, 1]} : vector<8x204xbf16> to vector<8x80xbf16>
    %224 = vector.extract_strided_slice %198 {offsets = [0, 124], sizes = [8, 80], strides = [1, 1]} : vector<8x204xbf16> to vector<8x80xbf16>
    %225 = tpu.concatenate %223, %224 in 1 : vector<8x80xbf16>, vector<8x80xbf16> -> vector<8x160xbf16>
    %226 = tpu.concatenate %201, %204, %207, %210, %213, %216, %219, %222, %225 in 0 : vector<8x160xbf16>, vector<8x160xbf16>, vector<8x160xbf16>, vector<8x160xbf16>, vector<8x160xbf16>, vector<8x160xbf16>, vector<8x160xbf16>, vector<8x160xbf16>, vector<8x160xbf16> -> vector<72x160xbf16>
    %cst_61 = arith.constant dense<0.000000e+00> : vector<8x160xf32>
    %227 = tpu.matmul %195, %226, %cst_61 {dimension_numbers = #tpu.dot_dimension_numbers<[1], [0], [0], [1], [0, 0, 1, 1], [], []>} : vector<8x72xbf16>, vector<72x160xbf16>, vector<8x160xf32> -> vector<8x160xf32>
    %228 = vector.broadcast %194 : vector<1x160xf32> to vector<8x160xf32>
    %229 = arith.mulf %227, %228 : vector<8x160xf32>
    %cst_62 = arith.constant dense<0.000000e+00> : vector<8xf32>
    %230 = vector.multi_reduction <add>, %229, %cst_62 [1] : vector<8x160xf32> to vector<8xf32>
    %231 = vector.shape_cast %230 : vector<8xf32> to vector<8x1xf32>
    %cst_63 = arith.constant 7.812500e-03 : f32
    %232 = vector.broadcast %cst_63 : f32 to vector<8x1xf32>
    %233 = arith.mulf %231, %232 : vector<8x1xf32>
    %234 = vector.broadcast %233 : vector<8x1xf32> to vector<8x160xf32>
    %235 = arith.subf %227, %234 : vector<8x160xf32>
    %236 = vector.broadcast %194 : vector<1x160xf32> to vector<8x160xf32>
    %237 = arith.mulf %235, %236 : vector<8x160xf32>
    %238 = arith.mulf %237, %237 : vector<8x160xf32>
    %cst_64 = arith.constant dense<0.000000e+00> : vector<8xf32>
    %239 = vector.multi_reduction <add>, %238, %cst_64 [1] : vector<8x160xf32> to vector<8xf32>
    %240 = vector.shape_cast %239 : vector<8xf32> to vector<8x1xf32>
    %cst_65 = arith.constant 7.812500e-03 : f32
    %241 = vector.broadcast %cst_65 : f32 to vector<8x1xf32>
    %242 = arith.mulf %240, %241 : vector<8x1xf32>
    %cst_66 = arith.constant 9.99999974E-6 : f32
    %243 = vector.broadcast %cst_66 : f32 to vector<8x1xf32>
    %244 = arith.addf %242, %243 : vector<8x1xf32>
    %245 = math.rsqrt %244 : vector<8x1xf32>
    %246 = arith.mulf %196, %245 : vector<8x1xf32>
    %247 = vector.broadcast %246 : vector<8x1xf32> to vector<8x160xf32>
    %248 = arith.mulf %237, %247 : vector<8x160xf32>
    %249 = vector.broadcast %197 : vector<8x1xf32> to vector<8x160xf32>
    %250 = arith.addf %248, %249 : vector<8x160xf32>
    %cst_67 = arith.constant 0.000000e+00 : f32
    %251 = vector.broadcast %cst_67 : f32 to vector<8x160xf32>
    %252 = arith.maximumf %250, %251 : vector<8x160xf32>
    %253 = vector.broadcast %194 : vector<1x160xf32> to vector<8x160xf32>
    %254 = arith.mulf %252, %253 : vector<8x160xf32>
    %cst_68 = arith.constant 0.000000e+00 : f32
    %255 = vector.broadcast %cst_68 : f32 to vector<8x11xf32>
    %256 = vector.extract_strided_slice %254 {offsets = [0, 0], sizes = [8, 80], strides = [1, 1]} : vector<8x160xf32> to vector<8x80xf32>
    %257 = vector.extract_strided_slice %254 {offsets = [0, 80], sizes = [8, 80], strides = [1, 1]} : vector<8x160xf32> to vector<8x80xf32>
    %258 = tpu.concatenate %255, %256, %255, %255, %257, %255 in 1 : vector<8x11xf32>, vector<8x80xf32>, vector<8x11xf32>, vector<8x11xf32>, vector<8x80xf32>, vector<8x11xf32> -> vector<8x204xf32>
    %c0_69 = arith.constant 0 : index
    %c0_70 = arith.constant 0 : index
    %259 = vector.load %arg10[%c0_69, %c0_70] : memref<8x72xbf16, #tpu.memory_space<vmem>>, vector<8x72xbf16>
    %c0_71 = arith.constant 0 : index
    %c0_72 = arith.constant 0 : index
    %260 = vector.load %arg11[%c0_71, %c0_72] : memref<8x1xf32, #tpu.memory_space<vmem>>, vector<8x1xf32>
    %c0_73 = arith.constant 0 : index
    %c0_74 = arith.constant 0 : index
    %261 = vector.load %arg12[%c0_73, %c0_74] : memref<8x1xf32, #tpu.memory_space<vmem>>, vector<8x1xf32>
    %262 = arith.truncf %258 : vector<8x204xf32> to vector<8x204xbf16>
    %263 = vector.extract_strided_slice %262 {offsets = [0, 0], sizes = [8, 80], strides = [1, 1]} : vector<8x204xbf16> to vector<8x80xbf16>
    %264 = vector.extract_strided_slice %262 {offsets = [0, 102], sizes = [8, 80], strides = [1, 1]} : vector<8x204xbf16> to vector<8x80xbf16>
    %265 = tpu.concatenate %263, %264 in 1 : vector<8x80xbf16>, vector<8x80xbf16> -> vector<8x160xbf16>
    %266 = vector.extract_strided_slice %262 {offsets = [0, 1], sizes = [8, 80], strides = [1, 1]} : vector<8x204xbf16> to vector<8x80xbf16>
    %267 = vector.extract_strided_slice %262 {offsets = [0, 103], sizes = [8, 80], strides = [1, 1]} : vector<8x204xbf16> to vector<8x80xbf16>
    %268 = tpu.concatenate %266, %267 in 1 : vector<8x80xbf16>, vector<8x80xbf16> -> vector<8x160xbf16>
    %269 = vector.extract_strided_slice %262 {offsets = [0, 2], sizes = [8, 80], strides = [1, 1]} : vector<8x204xbf16> to vector<8x80xbf16>
    %270 = vector.extract_strided_slice %262 {offsets = [0, 104], sizes = [8, 80], strides = [1, 1]} : vector<8x204xbf16> to vector<8x80xbf16>
    %271 = tpu.concatenate %269, %270 in 1 : vector<8x80xbf16>, vector<8x80xbf16> -> vector<8x160xbf16>
    %272 = vector.extract_strided_slice %262 {offsets = [0, 10], sizes = [8, 80], strides = [1, 1]} : vector<8x204xbf16> to vector<8x80xbf16>
    %273 = vector.extract_strided_slice %262 {offsets = [0, 112], sizes = [8, 80], strides = [1, 1]} : vector<8x204xbf16> to vector<8x80xbf16>
    %274 = tpu.concatenate %272, %273 in 1 : vector<8x80xbf16>, vector<8x80xbf16> -> vector<8x160xbf16>
    %275 = vector.extract_strided_slice %262 {offsets = [0, 11], sizes = [8, 80], strides = [1, 1]} : vector<8x204xbf16> to vector<8x80xbf16>
    %276 = vector.extract_strided_slice %262 {offsets = [0, 113], sizes = [8, 80], strides = [1, 1]} : vector<8x204xbf16> to vector<8x80xbf16>
    %277 = tpu.concatenate %275, %276 in 1 : vector<8x80xbf16>, vector<8x80xbf16> -> vector<8x160xbf16>
    %278 = vector.extract_strided_slice %262 {offsets = [0, 12], sizes = [8, 80], strides = [1, 1]} : vector<8x204xbf16> to vector<8x80xbf16>
    %279 = vector.extract_strided_slice %262 {offsets = [0, 114], sizes = [8, 80], strides = [1, 1]} : vector<8x204xbf16> to vector<8x80xbf16>
    %280 = tpu.concatenate %278, %279 in 1 : vector<8x80xbf16>, vector<8x80xbf16> -> vector<8x160xbf16>
    %281 = vector.extract_strided_slice %262 {offsets = [0, 20], sizes = [8, 80], strides = [1, 1]} : vector<8x204xbf16> to vector<8x80xbf16>
    %282 = vector.extract_strided_slice %262 {offsets = [0, 122], sizes = [8, 80], strides = [1, 1]} : vector<8x204xbf16> to vector<8x80xbf16>
    %283 = tpu.concatenate %281, %282 in 1 : vector<8x80xbf16>, vector<8x80xbf16> -> vector<8x160xbf16>
    %284 = vector.extract_strided_slice %262 {offsets = [0, 21], sizes = [8, 80], strides = [1, 1]} : vector<8x204xbf16> to vector<8x80xbf16>
    %285 = vector.extract_strided_slice %262 {offsets = [0, 123], sizes = [8, 80], strides = [1, 1]} : vector<8x204xbf16> to vector<8x80xbf16>
    %286 = tpu.concatenate %284, %285 in 1 : vector<8x80xbf16>, vector<8x80xbf16> -> vector<8x160xbf16>
    %287 = vector.extract_strided_slice %262 {offsets = [0, 22], sizes = [8, 80], strides = [1, 1]} : vector<8x204xbf16> to vector<8x80xbf16>
    %288 = vector.extract_strided_slice %262 {offsets = [0, 124], sizes = [8, 80], strides = [1, 1]} : vector<8x204xbf16> to vector<8x80xbf16>
    %289 = tpu.concatenate %287, %288 in 1 : vector<8x80xbf16>, vector<8x80xbf16> -> vector<8x160xbf16>
    %290 = tpu.concatenate %265, %268, %271, %274, %277, %280, %283, %286, %289 in 0 : vector<8x160xbf16>, vector<8x160xbf16>, vector<8x160xbf16>, vector<8x160xbf16>, vector<8x160xbf16>, vector<8x160xbf16>, vector<8x160xbf16>, vector<8x160xbf16>, vector<8x160xbf16> -> vector<72x160xbf16>
    %cst_75 = arith.constant dense<0.000000e+00> : vector<8x160xf32>
    %291 = tpu.matmul %259, %290, %cst_75 {dimension_numbers = #tpu.dot_dimension_numbers<[1], [0], [0], [1], [0, 0, 1, 1], [], []>} : vector<8x72xbf16>, vector<72x160xbf16>, vector<8x160xf32> -> vector<8x160xf32>
    %292 = vector.broadcast %194 : vector<1x160xf32> to vector<8x160xf32>
    %293 = arith.mulf %291, %292 : vector<8x160xf32>
    %cst_76 = arith.constant dense<0.000000e+00> : vector<8xf32>
    %294 = vector.multi_reduction <add>, %293, %cst_76 [1] : vector<8x160xf32> to vector<8xf32>
    %295 = vector.shape_cast %294 : vector<8xf32> to vector<8x1xf32>
    %cst_77 = arith.constant 7.812500e-03 : f32
    %296 = vector.broadcast %cst_77 : f32 to vector<8x1xf32>
    %297 = arith.mulf %295, %296 : vector<8x1xf32>
    %298 = vector.broadcast %297 : vector<8x1xf32> to vector<8x160xf32>
    %299 = arith.subf %291, %298 : vector<8x160xf32>
    %300 = vector.broadcast %194 : vector<1x160xf32> to vector<8x160xf32>
    %301 = arith.mulf %299, %300 : vector<8x160xf32>
    %302 = arith.mulf %301, %301 : vector<8x160xf32>
    %cst_78 = arith.constant dense<0.000000e+00> : vector<8xf32>
    %303 = vector.multi_reduction <add>, %302, %cst_78 [1] : vector<8x160xf32> to vector<8xf32>
    %304 = vector.shape_cast %303 : vector<8xf32> to vector<8x1xf32>
    %cst_79 = arith.constant 7.812500e-03 : f32
    %305 = vector.broadcast %cst_79 : f32 to vector<8x1xf32>
    %306 = arith.mulf %304, %305 : vector<8x1xf32>
    %cst_80 = arith.constant 9.99999974E-6 : f32
    %307 = vector.broadcast %cst_80 : f32 to vector<8x1xf32>
    %308 = arith.addf %306, %307 : vector<8x1xf32>
    %309 = math.rsqrt %308 : vector<8x1xf32>
    %310 = arith.mulf %260, %309 : vector<8x1xf32>
    %311 = vector.broadcast %310 : vector<8x1xf32> to vector<8x160xf32>
    %312 = arith.mulf %301, %311 : vector<8x160xf32>
    %313 = vector.broadcast %261 : vector<8x1xf32> to vector<8x160xf32>
    %314 = arith.addf %312, %313 : vector<8x160xf32>
    %cst_81 = arith.constant 0.000000e+00 : f32
    %315 = vector.broadcast %cst_81 : f32 to vector<8x160xf32>
    %316 = arith.maximumf %314, %315 : vector<8x160xf32>
    %317 = vector.broadcast %194 : vector<1x160xf32> to vector<8x160xf32>
    %318 = arith.mulf %316, %317 : vector<8x160xf32>
    %c0_82 = arith.constant 0 : index
    %c0_83 = arith.constant 0 : index
    %319 = vector.load %arg34[%c0_82, %c0_83] : memref<80x64xbf16, #tpu.memory_space<vmem>>, vector<80x64xbf16>
    %320 = vector.extract_strided_slice %318 {offsets = [0, 0], sizes = [8, 80], strides = [1, 1]} : vector<8x160xf32> to vector<8x80xf32>
    %321 = vector.extract_strided_slice %318 {offsets = [0, 80], sizes = [8, 80], strides = [1, 1]} : vector<8x160xf32> to vector<8x80xf32>
    %322 = tpu.concatenate %320, %321 in 0 : vector<8x80xf32>, vector<8x80xf32> -> vector<16x80xf32>
    %323 = arith.truncf %322 : vector<16x80xf32> to vector<16x80xbf16>
    %cst_84 = arith.constant dense<0.000000e+00> : vector<16x64xf32>
    %324 = tpu.matmul %323, %319, %cst_84 {dimension_numbers = #tpu.dot_dimension_numbers<[1], [0], [0], [1], [0, 0, 1, 1], [], []>} : vector<16x80xbf16>, vector<80x64xbf16>, vector<16x64xf32> -> vector<16x64xf32>
    %325 = vector.extract_strided_slice %324 {offsets = [0, 0], sizes = [8, 64], strides = [1, 1]} : vector<16x64xf32> to vector<8x64xf32>
    %326 = vector.extract_strided_slice %324 {offsets = [8, 0], sizes = [8, 64], strides = [1, 1]} : vector<16x64xf32> to vector<8x64xf32>
    %327 = tpu.concatenate %325, %326 in 1 : vector<8x64xf32>, vector<8x64xf32> -> vector<8x128xf32>
    %328 = vector.extract_strided_slice %327 {offsets = [0, 0], sizes = [8, 64], strides = [1, 1]} : vector<8x128xf32> to vector<8x64xf32>
    %329 = vector.extract_strided_slice %328 {offsets = [0, 0], sizes = [8, 16], strides = [1, 1]} : vector<8x64xf32> to vector<8x16xf32>
    %330 = vector.extract_strided_slice %328 {offsets = [0, 16], sizes = [8, 16], strides = [1, 1]} : vector<8x64xf32> to vector<8x16xf32>
    %331 = arith.maximumf %329, %330 : vector<8x16xf32>
    %332 = vector.extract_strided_slice %328 {offsets = [0, 32], sizes = [8, 16], strides = [1, 1]} : vector<8x64xf32> to vector<8x16xf32>
    %333 = vector.extract_strided_slice %328 {offsets = [0, 48], sizes = [8, 16], strides = [1, 1]} : vector<8x64xf32> to vector<8x16xf32>
    %334 = arith.maximumf %332, %333 : vector<8x16xf32>
    %335 = arith.maximumf %331, %334 : vector<8x16xf32>
    %336 = vector.extract_strided_slice %327 {offsets = [0, 64], sizes = [8, 64], strides = [1, 1]} : vector<8x128xf32> to vector<8x64xf32>
    %337 = vector.extract_strided_slice %336 {offsets = [0, 0], sizes = [8, 16], strides = [1, 1]} : vector<8x64xf32> to vector<8x16xf32>
    %338 = vector.extract_strided_slice %336 {offsets = [0, 16], sizes = [8, 16], strides = [1, 1]} : vector<8x64xf32> to vector<8x16xf32>
    %339 = arith.maximumf %337, %338 : vector<8x16xf32>
    %340 = vector.extract_strided_slice %336 {offsets = [0, 32], sizes = [8, 16], strides = [1, 1]} : vector<8x64xf32> to vector<8x16xf32>
    %341 = vector.extract_strided_slice %336 {offsets = [0, 48], sizes = [8, 16], strides = [1, 1]} : vector<8x64xf32> to vector<8x16xf32>
    %342 = arith.maximumf %340, %341 : vector<8x16xf32>
    %343 = arith.maximumf %339, %342 : vector<8x16xf32>
    %344 = tpu.concatenate %335, %343 in 1 : vector<8x16xf32>, vector<8x16xf32> -> vector<8x32xf32>
    %345 = vector.extract_strided_slice %344 {offsets = [0, 0], sizes = [8, 16], strides = [1, 1]} : vector<8x32xf32> to vector<8x16xf32>
    %346 = vector.extract_strided_slice %345 {offsets = [0, 0], sizes = [1, 16], strides = [1, 1]} : vector<8x16xf32> to vector<1x16xf32>
    %347 = vector.extract_strided_slice %345 {offsets = [1, 0], sizes = [1, 16], strides = [1, 1]} : vector<8x16xf32> to vector<1x16xf32>
    %348 = vector.extract_strided_slice %345 {offsets = [2, 0], sizes = [1, 16], strides = [1, 1]} : vector<8x16xf32> to vector<1x16xf32>
    %349 = vector.extract_strided_slice %345 {offsets = [3, 0], sizes = [1, 16], strides = [1, 1]} : vector<8x16xf32> to vector<1x16xf32>
    %350 = vector.extract_strided_slice %345 {offsets = [4, 0], sizes = [1, 16], strides = [1, 1]} : vector<8x16xf32> to vector<1x16xf32>
    %351 = vector.extract_strided_slice %345 {offsets = [5, 0], sizes = [1, 16], strides = [1, 1]} : vector<8x16xf32> to vector<1x16xf32>
    %352 = vector.extract_strided_slice %345 {offsets = [6, 0], sizes = [1, 16], strides = [1, 1]} : vector<8x16xf32> to vector<1x16xf32>
    %353 = vector.extract_strided_slice %345 {offsets = [7, 0], sizes = [1, 16], strides = [1, 1]} : vector<8x16xf32> to vector<1x16xf32>
    %354 = tpu.concatenate %346, %347, %348, %349, %350, %351, %352, %353 in 1 : vector<1x16xf32>, vector<1x16xf32>, vector<1x16xf32>, vector<1x16xf32>, vector<1x16xf32>, vector<1x16xf32>, vector<1x16xf32>, vector<1x16xf32> -> vector<1x128xf32>
    %355 = vector.extract_strided_slice %344 {offsets = [0, 16], sizes = [8, 16], strides = [1, 1]} : vector<8x32xf32> to vector<8x16xf32>
    %356 = vector.extract_strided_slice %355 {offsets = [0, 0], sizes = [1, 16], strides = [1, 1]} : vector<8x16xf32> to vector<1x16xf32>
    %357 = vector.extract_strided_slice %355 {offsets = [1, 0], sizes = [1, 16], strides = [1, 1]} : vector<8x16xf32> to vector<1x16xf32>
    %358 = vector.extract_strided_slice %355 {offsets = [2, 0], sizes = [1, 16], strides = [1, 1]} : vector<8x16xf32> to vector<1x16xf32>
    %359 = vector.extract_strided_slice %355 {offsets = [3, 0], sizes = [1, 16], strides = [1, 1]} : vector<8x16xf32> to vector<1x16xf32>
    %360 = vector.extract_strided_slice %355 {offsets = [4, 0], sizes = [1, 16], strides = [1, 1]} : vector<8x16xf32> to vector<1x16xf32>
    %361 = vector.extract_strided_slice %355 {offsets = [5, 0], sizes = [1, 16], strides = [1, 1]} : vector<8x16xf32> to vector<1x16xf32>
    %362 = vector.extract_strided_slice %355 {offsets = [6, 0], sizes = [1, 16], strides = [1, 1]} : vector<8x16xf32> to vector<1x16xf32>
    %363 = vector.extract_strided_slice %355 {offsets = [7, 0], sizes = [1, 16], strides = [1, 1]} : vector<8x16xf32> to vector<1x16xf32>
    %364 = tpu.concatenate %356, %357, %358, %359, %360, %361, %362, %363 in 1 : vector<1x16xf32>, vector<1x16xf32>, vector<1x16xf32>, vector<1x16xf32>, vector<1x16xf32>, vector<1x16xf32>, vector<1x16xf32>, vector<1x16xf32> -> vector<1x128xf32>
    %365 = tpu.concatenate %354, %364 in 0 : vector<1x128xf32>, vector<1x128xf32> -> vector<2x128xf32>
    %366 = arith.truncf %365 : vector<2x128xf32> to vector<2x128xbf16>
    %c0_85 = arith.constant 0 : index
    %c0_86 = arith.constant 0 : index
    %367 = vector.load %arg25[%c0_85, %c0_86] : memref<128x32xbf16, #tpu.memory_space<vmem>>, vector<128x32xbf16>
    %cst_87 = arith.constant dense<0.000000e+00> : vector<2x32xf32>
    %368 = tpu.matmul %366, %367, %cst_87 {dimension_numbers = #tpu.dot_dimension_numbers<[1], [0], [0], [1], [0, 0, 1, 1], [], []>} : vector<2x128xbf16>, vector<128x32xbf16>, vector<2x32xf32> -> vector<2x32xf32>
    %c0_88 = arith.constant 0 : index
    %c0_89 = arith.constant 0 : index
    %369 = vector.load %arg26[%c0_88, %c0_89] : memref<1x32xf32, #tpu.memory_space<vmem>>, vector<1x32xf32>
    %c0_90 = arith.constant 0 : index
    %c0_91 = arith.constant 0 : index
    %370 = vector.load %arg27[%c0_90, %c0_91] : memref<1x32xf32, #tpu.memory_space<vmem>>, vector<1x32xf32>
    %cst_92 = arith.constant dense<0.000000e+00> : vector<32xf32>
    %371 = vector.multi_reduction <add>, %368, %cst_92 [0] : vector<2x32xf32> to vector<32xf32>
    %372 = vector.shape_cast %371 : vector<32xf32> to vector<1x32xf32>
    %cst_93 = arith.constant 2.000000e+00 : f32
    %373 = vector.broadcast %cst_93 : f32 to vector<1x32xf32>
    %374 = arith.divf %372, %373 : vector<1x32xf32>
    %375 = vector.broadcast %374 : vector<1x32xf32> to vector<2x32xf32>
    %376 = arith.subf %368, %375 : vector<2x32xf32>
    %377 = arith.mulf %376, %376 : vector<2x32xf32>
    %cst_94 = arith.constant dense<0.000000e+00> : vector<32xf32>
    %378 = vector.multi_reduction <add>, %377, %cst_94 [0] : vector<2x32xf32> to vector<32xf32>
    %379 = vector.shape_cast %378 : vector<32xf32> to vector<1x32xf32>
    %cst_95 = arith.constant 2.000000e+00 : f32
    %380 = vector.broadcast %cst_95 : f32 to vector<1x32xf32>
    %381 = arith.divf %379, %380 : vector<1x32xf32>
    %cst_96 = arith.constant 9.99999974E-6 : f32
    %382 = vector.broadcast %cst_96 : f32 to vector<1x32xf32>
    %383 = arith.addf %381, %382 : vector<1x32xf32>
    %384 = math.rsqrt %383 : vector<1x32xf32>
    %385 = arith.mulf %369, %384 : vector<1x32xf32>
    %386 = vector.broadcast %385 : vector<1x32xf32> to vector<2x32xf32>
    %387 = arith.mulf %376, %386 : vector<2x32xf32>
    %388 = vector.broadcast %370 : vector<1x32xf32> to vector<2x32xf32>
    %389 = arith.addf %387, %388 : vector<2x32xf32>
    %cst_97 = arith.constant 0.000000e+00 : f32
    %390 = vector.broadcast %cst_97 : f32 to vector<2x32xf32>
    %391 = arith.maximumf %389, %390 : vector<2x32xf32>
    %392 = arith.truncf %391 : vector<2x32xf32> to vector<2x32xbf16>
    %c0_98 = arith.constant 0 : index
    %c0_99 = arith.constant 0 : index
    %393 = vector.load %arg28[%c0_98, %c0_99] : memref<32x128xbf16, #tpu.memory_space<vmem>>, vector<32x128xbf16>
    %cst_100 = arith.constant dense<0.000000e+00> : vector<2x128xf32>
    %394 = tpu.matmul %392, %393, %cst_100 {dimension_numbers = #tpu.dot_dimension_numbers<[1], [0], [0], [1], [0, 0, 1, 1], [], []>} : vector<2x32xbf16>, vector<32x128xbf16>, vector<2x128xf32> -> vector<2x128xf32>
    %c0_101 = arith.constant 0 : index
    %c0_102 = arith.constant 0 : index
    %395 = vector.load %arg29[%c0_101, %c0_102] : memref<1x128xf32, #tpu.memory_space<vmem>>, vector<1x128xf32>
    %c0_103 = arith.constant 0 : index
    %c0_104 = arith.constant 0 : index
    %396 = vector.load %arg30[%c0_103, %c0_104] : memref<1x128xf32, #tpu.memory_space<vmem>>, vector<1x128xf32>
    %cst_105 = arith.constant dense<0.000000e+00> : vector<128xf32>
    %397 = vector.multi_reduction <add>, %394, %cst_105 [0] : vector<2x128xf32> to vector<128xf32>
    %398 = vector.shape_cast %397 : vector<128xf32> to vector<1x128xf32>
    %cst_106 = arith.constant 2.000000e+00 : f32
    %399 = vector.broadcast %cst_106 : f32 to vector<1x128xf32>
    %400 = arith.divf %398, %399 : vector<1x128xf32>
    %401 = vector.broadcast %400 : vector<1x128xf32> to vector<2x128xf32>
    %402 = arith.subf %394, %401 : vector<2x128xf32>
    %403 = arith.mulf %402, %402 : vector<2x128xf32>
    %cst_107 = arith.constant dense<0.000000e+00> : vector<128xf32>
    %404 = vector.multi_reduction <add>, %403, %cst_107 [0] : vector<2x128xf32> to vector<128xf32>
    %405 = vector.shape_cast %404 : vector<128xf32> to vector<1x128xf32>
    %cst_108 = arith.constant 2.000000e+00 : f32
    %406 = vector.broadcast %cst_108 : f32 to vector<1x128xf32>
    %407 = arith.divf %405, %406 : vector<1x128xf32>
    %cst_109 = arith.constant 9.99999974E-6 : f32
    %408 = vector.broadcast %cst_109 : f32 to vector<1x128xf32>
    %409 = arith.addf %407, %408 : vector<1x128xf32>
    %410 = math.rsqrt %409 : vector<1x128xf32>
    %411 = arith.mulf %395, %410 : vector<1x128xf32>
    %412 = vector.broadcast %411 : vector<1x128xf32> to vector<2x128xf32>
    %413 = arith.mulf %402, %412 : vector<2x128xf32>
    %414 = vector.broadcast %396 : vector<1x128xf32> to vector<2x128xf32>
    %415 = arith.addf %413, %414 : vector<2x128xf32>
    %cst_110 = arith.constant 0.000000e+00 : f32
    %416 = vector.broadcast %cst_110 : f32 to vector<2x128xf32>
    %417 = arith.maximumf %415, %416 : vector<2x128xf32>
    %418 = vector.extract_strided_slice %417 {offsets = [0, 0], sizes = [1, 16], strides = [1, 1]} : vector<2x128xf32> to vector<1x16xf32>
    %419 = vector.extract_strided_slice %417 {offsets = [0, 16], sizes = [1, 16], strides = [1, 1]} : vector<2x128xf32> to vector<1x16xf32>
    %420 = vector.extract_strided_slice %417 {offsets = [0, 32], sizes = [1, 16], strides = [1, 1]} : vector<2x128xf32> to vector<1x16xf32>
    %421 = vector.extract_strided_slice %417 {offsets = [0, 48], sizes = [1, 16], strides = [1, 1]} : vector<2x128xf32> to vector<1x16xf32>
    %422 = vector.extract_strided_slice %417 {offsets = [0, 64], sizes = [1, 16], strides = [1, 1]} : vector<2x128xf32> to vector<1x16xf32>
    %423 = vector.extract_strided_slice %417 {offsets = [0, 80], sizes = [1, 16], strides = [1, 1]} : vector<2x128xf32> to vector<1x16xf32>
    %424 = vector.extract_strided_slice %417 {offsets = [0, 96], sizes = [1, 16], strides = [1, 1]} : vector<2x128xf32> to vector<1x16xf32>
    %425 = vector.extract_strided_slice %417 {offsets = [0, 112], sizes = [1, 16], strides = [1, 1]} : vector<2x128xf32> to vector<1x16xf32>
    %426 = tpu.concatenate %418, %419, %420, %421, %422, %423, %424, %425 in 0 : vector<1x16xf32>, vector<1x16xf32>, vector<1x16xf32>, vector<1x16xf32>, vector<1x16xf32>, vector<1x16xf32>, vector<1x16xf32>, vector<1x16xf32> -> vector<8x16xf32>
    %427 = vector.extract_strided_slice %417 {offsets = [1, 0], sizes = [1, 16], strides = [1, 1]} : vector<2x128xf32> to vector<1x16xf32>
    %428 = vector.extract_strided_slice %417 {offsets = [1, 16], sizes = [1, 16], strides = [1, 1]} : vector<2x128xf32> to vector<1x16xf32>
    %429 = vector.extract_strided_slice %417 {offsets = [1, 32], sizes = [1, 16], strides = [1, 1]} : vector<2x128xf32> to vector<1x16xf32>
    %430 = vector.extract_strided_slice %417 {offsets = [1, 48], sizes = [1, 16], strides = [1, 1]} : vector<2x128xf32> to vector<1x16xf32>
    %431 = vector.extract_strided_slice %417 {offsets = [1, 64], sizes = [1, 16], strides = [1, 1]} : vector<2x128xf32> to vector<1x16xf32>
    %432 = vector.extract_strided_slice %417 {offsets = [1, 80], sizes = [1, 16], strides = [1, 1]} : vector<2x128xf32> to vector<1x16xf32>
    %433 = vector.extract_strided_slice %417 {offsets = [1, 96], sizes = [1, 16], strides = [1, 1]} : vector<2x128xf32> to vector<1x16xf32>
    %434 = vector.extract_strided_slice %417 {offsets = [1, 112], sizes = [1, 16], strides = [1, 1]} : vector<2x128xf32> to vector<1x16xf32>
    %435 = tpu.concatenate %427, %428, %429, %430, %431, %432, %433, %434 in 0 : vector<1x16xf32>, vector<1x16xf32>, vector<1x16xf32>, vector<1x16xf32>, vector<1x16xf32>, vector<1x16xf32>, vector<1x16xf32>, vector<1x16xf32> -> vector<8x16xf32>
    %436 = tpu.concatenate %426, %435 in 1 : vector<8x16xf32>, vector<8x16xf32> -> vector<8x32xf32>
    %cst_111 = arith.constant 0.000000e+00 : f32
    %437 = vector.broadcast %cst_111 : f32 to vector<8x7xf32>
    %438 = vector.extract_strided_slice %436 {offsets = [0, 0], sizes = [8, 4], strides = [1, 1]} : vector<8x32xf32> to vector<8x4xf32>
    %cst_112 = arith.constant 0.000000e+00 : f32
    %439 = vector.broadcast %cst_112 : f32 to vector<8x2xf32>
    %440 = vector.extract_strided_slice %436 {offsets = [0, 4], sizes = [8, 4], strides = [1, 1]} : vector<8x32xf32> to vector<8x4xf32>
    %cst_113 = arith.constant 0.000000e+00 : f32
    %441 = vector.broadcast %cst_113 : f32 to vector<8x2xf32>
    %442 = vector.extract_strided_slice %436 {offsets = [0, 8], sizes = [8, 4], strides = [1, 1]} : vector<8x32xf32> to vector<8x4xf32>
    %cst_114 = arith.constant 0.000000e+00 : f32
    %443 = vector.broadcast %cst_114 : f32 to vector<8x2xf32>
    %444 = vector.extract_strided_slice %436 {offsets = [0, 12], sizes = [8, 4], strides = [1, 1]} : vector<8x32xf32> to vector<8x4xf32>
    %cst_115 = arith.constant 0.000000e+00 : f32
    %445 = vector.broadcast %cst_115 : f32 to vector<8x9xf32>
    %cst_116 = arith.constant 0.000000e+00 : f32
    %446 = vector.broadcast %cst_116 : f32 to vector<8x7xf32>
    %447 = vector.extract_strided_slice %436 {offsets = [0, 16], sizes = [8, 4], strides = [1, 1]} : vector<8x32xf32> to vector<8x4xf32>
    %cst_117 = arith.constant 0.000000e+00 : f32
    %448 = vector.broadcast %cst_117 : f32 to vector<8x2xf32>
    %449 = vector.extract_strided_slice %436 {offsets = [0, 20], sizes = [8, 4], strides = [1, 1]} : vector<8x32xf32> to vector<8x4xf32>
    %cst_118 = arith.constant 0.000000e+00 : f32
    %450 = vector.broadcast %cst_118 : f32 to vector<8x2xf32>
    %451 = vector.extract_strided_slice %436 {offsets = [0, 24], sizes = [8, 4], strides = [1, 1]} : vector<8x32xf32> to vector<8x4xf32>
    %cst_119 = arith.constant 0.000000e+00 : f32
    %452 = vector.broadcast %cst_119 : f32 to vector<8x2xf32>
    %453 = vector.extract_strided_slice %436 {offsets = [0, 28], sizes = [8, 4], strides = [1, 1]} : vector<8x32xf32> to vector<8x4xf32>
    %cst_120 = arith.constant 0.000000e+00 : f32
    %454 = vector.broadcast %cst_120 : f32 to vector<8x9xf32>
    %455 = tpu.concatenate %437, %438, %439, %440, %441, %442, %443, %444, %445, %446, %447, %448, %449, %450, %451, %452 in 1 : vector<8x7xf32>, vector<8x4xf32>, vector<8x2xf32>, vector<8x4xf32>, vector<8x2xf32>, vector<8x4xf32>, vector<8x2xf32>, vector<8x4xf32>, vector<8x9xf32>, vector<8x7xf32>, vector<8x4xf32>, vector<8x2xf32>, vector<8x4xf32>, vector<8x2xf32>, vector<8x4xf32>, vector<8x2xf32> -> vector<8x63xf32>
    %456 = tpu.concatenate %453, %454 in 1 : vector<8x4xf32>, vector<8x9xf32> -> vector<8x13xf32>
    %457 = tpu.concatenate %455, %456 in 1 : vector<8x63xf32>, vector<8x13xf32> -> vector<8x76xf32>
    %c0_121 = arith.constant 0 : index
    %c0_122 = arith.constant 0 : index
    %458 = vector.load %arg31[%c0_121, %c0_122] : memref<1x48xf32, #tpu.memory_space<vmem>>, vector<1x48xf32>
    %c0_123 = arith.constant 0 : index
    %c0_124 = arith.constant 0 : index
    %459 = vector.load %arg13[%c0_123, %c0_124] : memref<8x72xbf16, #tpu.memory_space<vmem>>, vector<8x72xbf16>
    %c0_125 = arith.constant 0 : index
    %c0_126 = arith.constant 0 : index
    %460 = vector.load %arg14[%c0_125, %c0_126] : memref<8x1xf32, #tpu.memory_space<vmem>>, vector<8x1xf32>
    %c0_127 = arith.constant 0 : index
    %c0_128 = arith.constant 0 : index
    %461 = vector.load %arg15[%c0_127, %c0_128] : memref<8x1xf32, #tpu.memory_space<vmem>>, vector<8x1xf32>
    %462 = arith.truncf %457 : vector<8x76xf32> to vector<8x76xbf16>
    %463 = vector.extract_strided_slice %462 {offsets = [0, 0], sizes = [8, 24], strides = [1, 1]} : vector<8x76xbf16> to vector<8x24xbf16>
    %464 = vector.extract_strided_slice %462 {offsets = [0, 38], sizes = [8, 24], strides = [1, 1]} : vector<8x76xbf16> to vector<8x24xbf16>
    %465 = tpu.concatenate %463, %464 in 1 : vector<8x24xbf16>, vector<8x24xbf16> -> vector<8x48xbf16>
    %466 = vector.extract_strided_slice %462 {offsets = [0, 1], sizes = [8, 24], strides = [1, 1]} : vector<8x76xbf16> to vector<8x24xbf16>
    %467 = vector.extract_strided_slice %462 {offsets = [0, 39], sizes = [8, 24], strides = [1, 1]} : vector<8x76xbf16> to vector<8x24xbf16>
    %468 = tpu.concatenate %466, %467 in 1 : vector<8x24xbf16>, vector<8x24xbf16> -> vector<8x48xbf16>
    %469 = vector.extract_strided_slice %462 {offsets = [0, 2], sizes = [8, 24], strides = [1, 1]} : vector<8x76xbf16> to vector<8x24xbf16>
    %470 = vector.extract_strided_slice %462 {offsets = [0, 40], sizes = [8, 24], strides = [1, 1]} : vector<8x76xbf16> to vector<8x24xbf16>
    %471 = tpu.concatenate %469, %470 in 1 : vector<8x24xbf16>, vector<8x24xbf16> -> vector<8x48xbf16>
    %472 = vector.extract_strided_slice %462 {offsets = [0, 6], sizes = [8, 24], strides = [1, 1]} : vector<8x76xbf16> to vector<8x24xbf16>
    %473 = vector.extract_strided_slice %462 {offsets = [0, 44], sizes = [8, 24], strides = [1, 1]} : vector<8x76xbf16> to vector<8x24xbf16>
    %474 = tpu.concatenate %472, %473 in 1 : vector<8x24xbf16>, vector<8x24xbf16> -> vector<8x48xbf16>
    %475 = vector.extract_strided_slice %462 {offsets = [0, 7], sizes = [8, 24], strides = [1, 1]} : vector<8x76xbf16> to vector<8x24xbf16>
    %476 = vector.extract_strided_slice %462 {offsets = [0, 45], sizes = [8, 24], strides = [1, 1]} : vector<8x76xbf16> to vector<8x24xbf16>
    %477 = tpu.concatenate %475, %476 in 1 : vector<8x24xbf16>, vector<8x24xbf16> -> vector<8x48xbf16>
    %478 = vector.extract_strided_slice %462 {offsets = [0, 8], sizes = [8, 24], strides = [1, 1]} : vector<8x76xbf16> to vector<8x24xbf16>
    %479 = vector.extract_strided_slice %462 {offsets = [0, 46], sizes = [8, 24], strides = [1, 1]} : vector<8x76xbf16> to vector<8x24xbf16>
    %480 = tpu.concatenate %478, %479 in 1 : vector<8x24xbf16>, vector<8x24xbf16> -> vector<8x48xbf16>
    %481 = vector.extract_strided_slice %462 {offsets = [0, 12], sizes = [8, 24], strides = [1, 1]} : vector<8x76xbf16> to vector<8x24xbf16>
    %482 = vector.extract_strided_slice %462 {offsets = [0, 50], sizes = [8, 24], strides = [1, 1]} : vector<8x76xbf16> to vector<8x24xbf16>
    %483 = tpu.concatenate %481, %482 in 1 : vector<8x24xbf16>, vector<8x24xbf16> -> vector<8x48xbf16>
    %484 = vector.extract_strided_slice %462 {offsets = [0, 13], sizes = [8, 24], strides = [1, 1]} : vector<8x76xbf16> to vector<8x24xbf16>
    %485 = vector.extract_strided_slice %462 {offsets = [0, 51], sizes = [8, 24], strides = [1, 1]} : vector<8x76xbf16> to vector<8x24xbf16>
    %486 = tpu.concatenate %484, %485 in 1 : vector<8x24xbf16>, vector<8x24xbf16> -> vector<8x48xbf16>
    %487 = vector.extract_strided_slice %462 {offsets = [0, 14], sizes = [8, 24], strides = [1, 1]} : vector<8x76xbf16> to vector<8x24xbf16>
    %488 = vector.extract_strided_slice %462 {offsets = [0, 52], sizes = [8, 24], strides = [1, 1]} : vector<8x76xbf16> to vector<8x24xbf16>
    %489 = tpu.concatenate %487, %488 in 1 : vector<8x24xbf16>, vector<8x24xbf16> -> vector<8x48xbf16>
    %490 = tpu.concatenate %465, %468, %471, %474, %477, %480, %483, %486, %489 in 0 : vector<8x48xbf16>, vector<8x48xbf16>, vector<8x48xbf16>, vector<8x48xbf16>, vector<8x48xbf16>, vector<8x48xbf16>, vector<8x48xbf16>, vector<8x48xbf16>, vector<8x48xbf16> -> vector<72x48xbf16>
    %cst_129 = arith.constant dense<0.000000e+00> : vector<8x48xf32>
    %491 = tpu.matmul %459, %490, %cst_129 {dimension_numbers = #tpu.dot_dimension_numbers<[1], [0], [0], [1], [0, 0, 1, 1], [], []>} : vector<8x72xbf16>, vector<72x48xbf16>, vector<8x48xf32> -> vector<8x48xf32>
    %492 = vector.broadcast %458 : vector<1x48xf32> to vector<8x48xf32>
    %493 = arith.mulf %491, %492 : vector<8x48xf32>
    %cst_130 = arith.constant dense<0.000000e+00> : vector<8xf32>
    %494 = vector.multi_reduction <add>, %493, %cst_130 [1] : vector<8x48xf32> to vector<8xf32>
    %495 = vector.shape_cast %494 : vector<8xf32> to vector<8x1xf32>
    %cst_131 = arith.constant 3.125000e-02 : f32
    %496 = vector.broadcast %cst_131 : f32 to vector<8x1xf32>
    %497 = arith.mulf %495, %496 : vector<8x1xf32>
    %498 = vector.broadcast %497 : vector<8x1xf32> to vector<8x48xf32>
    %499 = arith.subf %491, %498 : vector<8x48xf32>
    %500 = vector.broadcast %458 : vector<1x48xf32> to vector<8x48xf32>
    %501 = arith.mulf %499, %500 : vector<8x48xf32>
    %502 = arith.mulf %501, %501 : vector<8x48xf32>
    %cst_132 = arith.constant dense<0.000000e+00> : vector<8xf32>
    %503 = vector.multi_reduction <add>, %502, %cst_132 [1] : vector<8x48xf32> to vector<8xf32>
    %504 = vector.shape_cast %503 : vector<8xf32> to vector<8x1xf32>
    %cst_133 = arith.constant 3.125000e-02 : f32
    %505 = vector.broadcast %cst_133 : f32 to vector<8x1xf32>
    %506 = arith.mulf %504, %505 : vector<8x1xf32>
    %cst_134 = arith.constant 9.99999974E-6 : f32
    %507 = vector.broadcast %cst_134 : f32 to vector<8x1xf32>
    %508 = arith.addf %506, %507 : vector<8x1xf32>
    %509 = math.rsqrt %508 : vector<8x1xf32>
    %510 = arith.mulf %460, %509 : vector<8x1xf32>
    %511 = vector.broadcast %510 : vector<8x1xf32> to vector<8x48xf32>
    %512 = arith.mulf %501, %511 : vector<8x48xf32>
    %513 = vector.broadcast %461 : vector<8x1xf32> to vector<8x48xf32>
    %514 = arith.addf %512, %513 : vector<8x48xf32>
    %cst_135 = arith.constant 0.000000e+00 : f32
    %515 = vector.broadcast %cst_135 : f32 to vector<8x48xf32>
    %516 = arith.maximumf %514, %515 : vector<8x48xf32>
    %517 = vector.broadcast %458 : vector<1x48xf32> to vector<8x48xf32>
    %518 = arith.mulf %516, %517 : vector<8x48xf32>
    %cst_136 = arith.constant 0.000000e+00 : f32
    %519 = vector.broadcast %cst_136 : f32 to vector<8x7xf32>
    %520 = vector.extract_strided_slice %518 {offsets = [0, 0], sizes = [8, 24], strides = [1, 1]} : vector<8x48xf32> to vector<8x24xf32>
    %521 = vector.extract_strided_slice %518 {offsets = [0, 24], sizes = [8, 24], strides = [1, 1]} : vector<8x48xf32> to vector<8x24xf32>
    %522 = tpu.concatenate %519, %520, %519, %519, %521, %519 in 1 : vector<8x7xf32>, vector<8x24xf32>, vector<8x7xf32>, vector<8x7xf32>, vector<8x24xf32>, vector<8x7xf32> -> vector<8x76xf32>
    %c0_137 = arith.constant 0 : index
    %c0_138 = arith.constant 0 : index
    %523 = vector.load %arg16[%c0_137, %c0_138] : memref<8x72xbf16, #tpu.memory_space<vmem>>, vector<8x72xbf16>
    %c0_139 = arith.constant 0 : index
    %c0_140 = arith.constant 0 : index
    %524 = vector.load %arg17[%c0_139, %c0_140] : memref<8x1xf32, #tpu.memory_space<vmem>>, vector<8x1xf32>
    %c0_141 = arith.constant 0 : index
    %c0_142 = arith.constant 0 : index
    %525 = vector.load %arg18[%c0_141, %c0_142] : memref<8x1xf32, #tpu.memory_space<vmem>>, vector<8x1xf32>
    %526 = arith.truncf %522 : vector<8x76xf32> to vector<8x76xbf16>
    %527 = vector.extract_strided_slice %526 {offsets = [0, 0], sizes = [8, 24], strides = [1, 1]} : vector<8x76xbf16> to vector<8x24xbf16>
    %528 = vector.extract_strided_slice %526 {offsets = [0, 38], sizes = [8, 24], strides = [1, 1]} : vector<8x76xbf16> to vector<8x24xbf16>
    %529 = tpu.concatenate %527, %528 in 1 : vector<8x24xbf16>, vector<8x24xbf16> -> vector<8x48xbf16>
    %530 = vector.extract_strided_slice %526 {offsets = [0, 1], sizes = [8, 24], strides = [1, 1]} : vector<8x76xbf16> to vector<8x24xbf16>
    %531 = vector.extract_strided_slice %526 {offsets = [0, 39], sizes = [8, 24], strides = [1, 1]} : vector<8x76xbf16> to vector<8x24xbf16>
    %532 = tpu.concatenate %530, %531 in 1 : vector<8x24xbf16>, vector<8x24xbf16> -> vector<8x48xbf16>
    %533 = vector.extract_strided_slice %526 {offsets = [0, 2], sizes = [8, 24], strides = [1, 1]} : vector<8x76xbf16> to vector<8x24xbf16>
    %534 = vector.extract_strided_slice %526 {offsets = [0, 40], sizes = [8, 24], strides = [1, 1]} : vector<8x76xbf16> to vector<8x24xbf16>
    %535 = tpu.concatenate %533, %534 in 1 : vector<8x24xbf16>, vector<8x24xbf16> -> vector<8x48xbf16>
    %536 = vector.extract_strided_slice %526 {offsets = [0, 6], sizes = [8, 24], strides = [1, 1]} : vector<8x76xbf16> to vector<8x24xbf16>
    %537 = vector.extract_strided_slice %526 {offsets = [0, 44], sizes = [8, 24], strides = [1, 1]} : vector<8x76xbf16> to vector<8x24xbf16>
    %538 = tpu.concatenate %536, %537 in 1 : vector<8x24xbf16>, vector<8x24xbf16> -> vector<8x48xbf16>
    %539 = vector.extract_strided_slice %526 {offsets = [0, 7], sizes = [8, 24], strides = [1, 1]} : vector<8x76xbf16> to vector<8x24xbf16>
    %540 = vector.extract_strided_slice %526 {offsets = [0, 45], sizes = [8, 24], strides = [1, 1]} : vector<8x76xbf16> to vector<8x24xbf16>
    %541 = tpu.concatenate %539, %540 in 1 : vector<8x24xbf16>, vector<8x24xbf16> -> vector<8x48xbf16>
    %542 = vector.extract_strided_slice %526 {offsets = [0, 8], sizes = [8, 24], strides = [1, 1]} : vector<8x76xbf16> to vector<8x24xbf16>
    %543 = vector.extract_strided_slice %526 {offsets = [0, 46], sizes = [8, 24], strides = [1, 1]} : vector<8x76xbf16> to vector<8x24xbf16>
    %544 = tpu.concatenate %542, %543 in 1 : vector<8x24xbf16>, vector<8x24xbf16> -> vector<8x48xbf16>
    %545 = vector.extract_strided_slice %526 {offsets = [0, 12], sizes = [8, 24], strides = [1, 1]} : vector<8x76xbf16> to vector<8x24xbf16>
    %546 = vector.extract_strided_slice %526 {offsets = [0, 50], sizes = [8, 24], strides = [1, 1]} : vector<8x76xbf16> to vector<8x24xbf16>
    %547 = tpu.concatenate %545, %546 in 1 : vector<8x24xbf16>, vector<8x24xbf16> -> vector<8x48xbf16>
    %548 = vector.extract_strided_slice %526 {offsets = [0, 13], sizes = [8, 24], strides = [1, 1]} : vector<8x76xbf16> to vector<8x24xbf16>
    %549 = vector.extract_strided_slice %526 {offsets = [0, 51], sizes = [8, 24], strides = [1, 1]} : vector<8x76xbf16> to vector<8x24xbf16>
    %550 = tpu.concatenate %548, %549 in 1 : vector<8x24xbf16>, vector<8x24xbf16> -> vector<8x48xbf16>
    %551 = vector.extract_strided_slice %526 {offsets = [0, 14], sizes = [8, 24], strides = [1, 1]} : vector<8x76xbf16> to vector<8x24xbf16>
    %552 = vector.extract_strided_slice %526 {offsets = [0, 52], sizes = [8, 24], strides = [1, 1]} : vector<8x76xbf16> to vector<8x24xbf16>
    %553 = tpu.concatenate %551, %552 in 1 : vector<8x24xbf16>, vector<8x24xbf16> -> vector<8x48xbf16>
    %554 = tpu.concatenate %529, %532, %535, %538, %541, %544, %547, %550, %553 in 0 : vector<8x48xbf16>, vector<8x48xbf16>, vector<8x48xbf16>, vector<8x48xbf16>, vector<8x48xbf16>, vector<8x48xbf16>, vector<8x48xbf16>, vector<8x48xbf16>, vector<8x48xbf16> -> vector<72x48xbf16>
    %cst_143 = arith.constant dense<0.000000e+00> : vector<8x48xf32>
    %555 = tpu.matmul %523, %554, %cst_143 {dimension_numbers = #tpu.dot_dimension_numbers<[1], [0], [0], [1], [0, 0, 1, 1], [], []>} : vector<8x72xbf16>, vector<72x48xbf16>, vector<8x48xf32> -> vector<8x48xf32>
    %556 = vector.broadcast %458 : vector<1x48xf32> to vector<8x48xf32>
    %557 = arith.mulf %555, %556 : vector<8x48xf32>
    %cst_144 = arith.constant dense<0.000000e+00> : vector<8xf32>
    %558 = vector.multi_reduction <add>, %557, %cst_144 [1] : vector<8x48xf32> to vector<8xf32>
    %559 = vector.shape_cast %558 : vector<8xf32> to vector<8x1xf32>
    %cst_145 = arith.constant 3.125000e-02 : f32
    %560 = vector.broadcast %cst_145 : f32 to vector<8x1xf32>
    %561 = arith.mulf %559, %560 : vector<8x1xf32>
    %562 = vector.broadcast %561 : vector<8x1xf32> to vector<8x48xf32>
    %563 = arith.subf %555, %562 : vector<8x48xf32>
    %564 = vector.broadcast %458 : vector<1x48xf32> to vector<8x48xf32>
    %565 = arith.mulf %563, %564 : vector<8x48xf32>
    %566 = arith.mulf %565, %565 : vector<8x48xf32>
    %cst_146 = arith.constant dense<0.000000e+00> : vector<8xf32>
    %567 = vector.multi_reduction <add>, %566, %cst_146 [1] : vector<8x48xf32> to vector<8xf32>
    %568 = vector.shape_cast %567 : vector<8xf32> to vector<8x1xf32>
    %cst_147 = arith.constant 3.125000e-02 : f32
    %569 = vector.broadcast %cst_147 : f32 to vector<8x1xf32>
    %570 = arith.mulf %568, %569 : vector<8x1xf32>
    %cst_148 = arith.constant 9.99999974E-6 : f32
    %571 = vector.broadcast %cst_148 : f32 to vector<8x1xf32>
    %572 = arith.addf %570, %571 : vector<8x1xf32>
    %573 = math.rsqrt %572 : vector<8x1xf32>
    %574 = arith.mulf %524, %573 : vector<8x1xf32>
    %575 = vector.broadcast %574 : vector<8x1xf32> to vector<8x48xf32>
    %576 = arith.mulf %565, %575 : vector<8x48xf32>
    %577 = vector.broadcast %525 : vector<8x1xf32> to vector<8x48xf32>
    %578 = arith.addf %576, %577 : vector<8x48xf32>
    %cst_149 = arith.constant 0.000000e+00 : f32
    %579 = vector.broadcast %cst_149 : f32 to vector<8x48xf32>
    %580 = arith.maximumf %578, %579 : vector<8x48xf32>
    %581 = vector.broadcast %458 : vector<1x48xf32> to vector<8x48xf32>
    %582 = arith.mulf %580, %581 : vector<8x48xf32>
    %c0_150 = arith.constant 0 : index
    %c0_151 = arith.constant 0 : index
    %583 = vector.load %arg36[%c0_150, %c0_151] : memref<24x64xbf16, #tpu.memory_space<vmem>>, vector<24x64xbf16>
    %584 = vector.extract_strided_slice %582 {offsets = [0, 0], sizes = [8, 24], strides = [1, 1]} : vector<8x48xf32> to vector<8x24xf32>
    %585 = vector.extract_strided_slice %582 {offsets = [0, 24], sizes = [8, 24], strides = [1, 1]} : vector<8x48xf32> to vector<8x24xf32>
    %586 = tpu.concatenate %584, %585 in 0 : vector<8x24xf32>, vector<8x24xf32> -> vector<16x24xf32>
    %587 = arith.truncf %586 : vector<16x24xf32> to vector<16x24xbf16>
    %cst_152 = arith.constant dense<0.000000e+00> : vector<16x64xf32>
    %588 = tpu.matmul %587, %583, %cst_152 {dimension_numbers = #tpu.dot_dimension_numbers<[1], [0], [0], [1], [0, 0, 1, 1], [], []>} : vector<16x24xbf16>, vector<24x64xbf16>, vector<16x64xf32> -> vector<16x64xf32>
    %589 = vector.extract_strided_slice %588 {offsets = [0, 0], sizes = [8, 64], strides = [1, 1]} : vector<16x64xf32> to vector<8x64xf32>
    %590 = vector.extract_strided_slice %588 {offsets = [8, 0], sizes = [8, 64], strides = [1, 1]} : vector<16x64xf32> to vector<8x64xf32>
    %591 = tpu.concatenate %589, %590 in 1 : vector<8x64xf32>, vector<8x64xf32> -> vector<8x128xf32>
    %cst_153 = arith.constant 0.000000e+00 : f32
    %592 = vector.broadcast %cst_153 : f32 to vector<8x11xf32>
    %593 = vector.extract_strided_slice %591 {offsets = [0, 0], sizes = [8, 8], strides = [1, 1]} : vector<8x128xf32> to vector<8x8xf32>
    %cst_154 = arith.constant 0.000000e+00 : f32
    %594 = vector.broadcast %cst_154 : f32 to vector<8x2xf32>
    %595 = vector.extract_strided_slice %591 {offsets = [0, 8], sizes = [8, 8], strides = [1, 1]} : vector<8x128xf32> to vector<8x8xf32>
    %cst_155 = arith.constant 0.000000e+00 : f32
    %596 = vector.broadcast %cst_155 : f32 to vector<8x2xf32>
    %597 = vector.extract_strided_slice %591 {offsets = [0, 16], sizes = [8, 8], strides = [1, 1]} : vector<8x128xf32> to vector<8x8xf32>
    %cst_156 = arith.constant 0.000000e+00 : f32
    %598 = vector.broadcast %cst_156 : f32 to vector<8x2xf32>
    %599 = vector.extract_strided_slice %591 {offsets = [0, 24], sizes = [8, 8], strides = [1, 1]} : vector<8x128xf32> to vector<8x8xf32>
    %cst_157 = arith.constant 0.000000e+00 : f32
    %600 = vector.broadcast %cst_157 : f32 to vector<8x2xf32>
    %601 = vector.extract_strided_slice %591 {offsets = [0, 32], sizes = [8, 8], strides = [1, 1]} : vector<8x128xf32> to vector<8x8xf32>
    %cst_158 = arith.constant 0.000000e+00 : f32
    %602 = vector.broadcast %cst_158 : f32 to vector<8x2xf32>
    %603 = vector.extract_strided_slice %591 {offsets = [0, 40], sizes = [8, 8], strides = [1, 1]} : vector<8x128xf32> to vector<8x8xf32>
    %cst_159 = arith.constant 0.000000e+00 : f32
    %604 = vector.broadcast %cst_159 : f32 to vector<8x2xf32>
    %605 = vector.extract_strided_slice %591 {offsets = [0, 48], sizes = [8, 8], strides = [1, 1]} : vector<8x128xf32> to vector<8x8xf32>
    %cst_160 = arith.constant 0.000000e+00 : f32
    %606 = vector.broadcast %cst_160 : f32 to vector<8x2xf32>
    %607 = vector.extract_strided_slice %591 {offsets = [0, 56], sizes = [8, 8], strides = [1, 1]} : vector<8x128xf32> to vector<8x8xf32>
    %cst_161 = arith.constant 0.000000e+00 : f32
    %608 = vector.broadcast %cst_161 : f32 to vector<8x13xf32>
    %cst_162 = arith.constant 0.000000e+00 : f32
    %609 = vector.broadcast %cst_162 : f32 to vector<8x11xf32>
    %610 = vector.extract_strided_slice %591 {offsets = [0, 64], sizes = [8, 8], strides = [1, 1]} : vector<8x128xf32> to vector<8x8xf32>
    %cst_163 = arith.constant 0.000000e+00 : f32
    %611 = vector.broadcast %cst_163 : f32 to vector<8x2xf32>
    %612 = vector.extract_strided_slice %591 {offsets = [0, 72], sizes = [8, 8], strides = [1, 1]} : vector<8x128xf32> to vector<8x8xf32>
    %cst_164 = arith.constant 0.000000e+00 : f32
    %613 = vector.broadcast %cst_164 : f32 to vector<8x2xf32>
    %614 = vector.extract_strided_slice %591 {offsets = [0, 80], sizes = [8, 8], strides = [1, 1]} : vector<8x128xf32> to vector<8x8xf32>
    %cst_165 = arith.constant 0.000000e+00 : f32
    %615 = vector.broadcast %cst_165 : f32 to vector<8x2xf32>
    %616 = vector.extract_strided_slice %591 {offsets = [0, 88], sizes = [8, 8], strides = [1, 1]} : vector<8x128xf32> to vector<8x8xf32>
    %cst_166 = arith.constant 0.000000e+00 : f32
    %617 = vector.broadcast %cst_166 : f32 to vector<8x2xf32>
    %618 = vector.extract_strided_slice %591 {offsets = [0, 96], sizes = [8, 8], strides = [1, 1]} : vector<8x128xf32> to vector<8x8xf32>
    %cst_167 = arith.constant 0.000000e+00 : f32
    %619 = vector.broadcast %cst_167 : f32 to vector<8x2xf32>
    %620 = vector.extract_strided_slice %591 {offsets = [0, 104], sizes = [8, 8], strides = [1, 1]} : vector<8x128xf32> to vector<8x8xf32>
    %cst_168 = arith.constant 0.000000e+00 : f32
    %621 = vector.broadcast %cst_168 : f32 to vector<8x2xf32>
    %622 = vector.extract_strided_slice %591 {offsets = [0, 112], sizes = [8, 8], strides = [1, 1]} : vector<8x128xf32> to vector<8x8xf32>
    %cst_169 = arith.constant 0.000000e+00 : f32
    %623 = vector.broadcast %cst_169 : f32 to vector<8x2xf32>
    %624 = vector.extract_strided_slice %591 {offsets = [0, 120], sizes = [8, 8], strides = [1, 1]} : vector<8x128xf32> to vector<8x8xf32>
    %cst_170 = arith.constant 0.000000e+00 : f32
    %625 = vector.broadcast %cst_170 : f32 to vector<8x13xf32>
    %626 = tpu.concatenate %592, %593, %594, %595, %596, %597, %598, %599, %600, %601, %602, %603, %604, %605, %606, %607 in 1 : vector<8x11xf32>, vector<8x8xf32>, vector<8x2xf32>, vector<8x8xf32>, vector<8x2xf32>, vector<8x8xf32>, vector<8x2xf32>, vector<8x8xf32>, vector<8x2xf32>, vector<8x8xf32>, vector<8x2xf32>, vector<8x8xf32>, vector<8x2xf32>, vector<8x8xf32>, vector<8x2xf32>, vector<8x8xf32> -> vector<8x89xf32>
    %627 = tpu.concatenate %608, %609, %610, %611, %612, %613, %614, %615, %616, %617, %618, %619, %620, %621, %622, %623 in 1 : vector<8x13xf32>, vector<8x11xf32>, vector<8x8xf32>, vector<8x2xf32>, vector<8x8xf32>, vector<8x2xf32>, vector<8x8xf32>, vector<8x2xf32>, vector<8x8xf32>, vector<8x2xf32>, vector<8x8xf32>, vector<8x2xf32>, vector<8x8xf32>, vector<8x2xf32>, vector<8x8xf32>, vector<8x2xf32> -> vector<8x94xf32>
    %628 = tpu.concatenate %624, %625 in 1 : vector<8x8xf32>, vector<8x13xf32> -> vector<8x21xf32>
    %629 = tpu.concatenate %626, %627, %628 in 1 : vector<8x89xf32>, vector<8x94xf32>, vector<8x21xf32> -> vector<8x204xf32>
    %c0_171 = arith.constant 0 : index
    %c0_172 = arith.constant 0 : index
    %630 = vector.load %arg32[%c0_171, %c0_172] : memref<1x160xf32, #tpu.memory_space<vmem>>, vector<1x160xf32>
    %c0_173 = arith.constant 0 : index
    %c0_174 = arith.constant 0 : index
    %631 = vector.load %arg19[%c0_173, %c0_174] : memref<8x72xbf16, #tpu.memory_space<vmem>>, vector<8x72xbf16>
    %c0_175 = arith.constant 0 : index
    %c0_176 = arith.constant 0 : index
    %632 = vector.load %arg20[%c0_175, %c0_176] : memref<8x1xf32, #tpu.memory_space<vmem>>, vector<8x1xf32>
    %c0_177 = arith.constant 0 : index
    %c0_178 = arith.constant 0 : index
    %633 = vector.load %arg21[%c0_177, %c0_178] : memref<8x1xf32, #tpu.memory_space<vmem>>, vector<8x1xf32>
    %634 = arith.truncf %629 : vector<8x204xf32> to vector<8x204xbf16>
    %635 = vector.extract_strided_slice %634 {offsets = [0, 0], sizes = [8, 80], strides = [1, 1]} : vector<8x204xbf16> to vector<8x80xbf16>
    %636 = vector.extract_strided_slice %634 {offsets = [0, 102], sizes = [8, 80], strides = [1, 1]} : vector<8x204xbf16> to vector<8x80xbf16>
    %637 = tpu.concatenate %635, %636 in 1 : vector<8x80xbf16>, vector<8x80xbf16> -> vector<8x160xbf16>
    %638 = vector.extract_strided_slice %634 {offsets = [0, 1], sizes = [8, 80], strides = [1, 1]} : vector<8x204xbf16> to vector<8x80xbf16>
    %639 = vector.extract_strided_slice %634 {offsets = [0, 103], sizes = [8, 80], strides = [1, 1]} : vector<8x204xbf16> to vector<8x80xbf16>
    %640 = tpu.concatenate %638, %639 in 1 : vector<8x80xbf16>, vector<8x80xbf16> -> vector<8x160xbf16>
    %641 = vector.extract_strided_slice %634 {offsets = [0, 2], sizes = [8, 80], strides = [1, 1]} : vector<8x204xbf16> to vector<8x80xbf16>
    %642 = vector.extract_strided_slice %634 {offsets = [0, 104], sizes = [8, 80], strides = [1, 1]} : vector<8x204xbf16> to vector<8x80xbf16>
    %643 = tpu.concatenate %641, %642 in 1 : vector<8x80xbf16>, vector<8x80xbf16> -> vector<8x160xbf16>
    %644 = vector.extract_strided_slice %634 {offsets = [0, 10], sizes = [8, 80], strides = [1, 1]} : vector<8x204xbf16> to vector<8x80xbf16>
    %645 = vector.extract_strided_slice %634 {offsets = [0, 112], sizes = [8, 80], strides = [1, 1]} : vector<8x204xbf16> to vector<8x80xbf16>
    %646 = tpu.concatenate %644, %645 in 1 : vector<8x80xbf16>, vector<8x80xbf16> -> vector<8x160xbf16>
    %647 = vector.extract_strided_slice %634 {offsets = [0, 11], sizes = [8, 80], strides = [1, 1]} : vector<8x204xbf16> to vector<8x80xbf16>
    %648 = vector.extract_strided_slice %634 {offsets = [0, 113], sizes = [8, 80], strides = [1, 1]} : vector<8x204xbf16> to vector<8x80xbf16>
    %649 = tpu.concatenate %647, %648 in 1 : vector<8x80xbf16>, vector<8x80xbf16> -> vector<8x160xbf16>
    %650 = vector.extract_strided_slice %634 {offsets = [0, 12], sizes = [8, 80], strides = [1, 1]} : vector<8x204xbf16> to vector<8x80xbf16>
    %651 = vector.extract_strided_slice %634 {offsets = [0, 114], sizes = [8, 80], strides = [1, 1]} : vector<8x204xbf16> to vector<8x80xbf16>
    %652 = tpu.concatenate %650, %651 in 1 : vector<8x80xbf16>, vector<8x80xbf16> -> vector<8x160xbf16>
    %653 = vector.extract_strided_slice %634 {offsets = [0, 20], sizes = [8, 80], strides = [1, 1]} : vector<8x204xbf16> to vector<8x80xbf16>
    %654 = vector.extract_strided_slice %634 {offsets = [0, 122], sizes = [8, 80], strides = [1, 1]} : vector<8x204xbf16> to vector<8x80xbf16>
    %655 = tpu.concatenate %653, %654 in 1 : vector<8x80xbf16>, vector<8x80xbf16> -> vector<8x160xbf16>
    %656 = vector.extract_strided_slice %634 {offsets = [0, 21], sizes = [8, 80], strides = [1, 1]} : vector<8x204xbf16> to vector<8x80xbf16>
    %657 = vector.extract_strided_slice %634 {offsets = [0, 123], sizes = [8, 80], strides = [1, 1]} : vector<8x204xbf16> to vector<8x80xbf16>
    %658 = tpu.concatenate %656, %657 in 1 : vector<8x80xbf16>, vector<8x80xbf16> -> vector<8x160xbf16>
    %659 = vector.extract_strided_slice %634 {offsets = [0, 22], sizes = [8, 80], strides = [1, 1]} : vector<8x204xbf16> to vector<8x80xbf16>
    %660 = vector.extract_strided_slice %634 {offsets = [0, 124], sizes = [8, 80], strides = [1, 1]} : vector<8x204xbf16> to vector<8x80xbf16>
    %661 = tpu.concatenate %659, %660 in 1 : vector<8x80xbf16>, vector<8x80xbf16> -> vector<8x160xbf16>
    %662 = tpu.concatenate %637, %640, %643, %646, %649, %652, %655, %658, %661 in 0 : vector<8x160xbf16>, vector<8x160xbf16>, vector<8x160xbf16>, vector<8x160xbf16>, vector<8x160xbf16>, vector<8x160xbf16>, vector<8x160xbf16>, vector<8x160xbf16>, vector<8x160xbf16> -> vector<72x160xbf16>
    %cst_179 = arith.constant dense<0.000000e+00> : vector<8x160xf32>
    %663 = tpu.matmul %631, %662, %cst_179 {dimension_numbers = #tpu.dot_dimension_numbers<[1], [0], [0], [1], [0, 0, 1, 1], [], []>} : vector<8x72xbf16>, vector<72x160xbf16>, vector<8x160xf32> -> vector<8x160xf32>
    %664 = vector.broadcast %630 : vector<1x160xf32> to vector<8x160xf32>
    %665 = arith.mulf %663, %664 : vector<8x160xf32>
    %cst_180 = arith.constant dense<0.000000e+00> : vector<8xf32>
    %666 = vector.multi_reduction <add>, %665, %cst_180 [1] : vector<8x160xf32> to vector<8xf32>
    %667 = vector.shape_cast %666 : vector<8xf32> to vector<8x1xf32>
    %cst_181 = arith.constant 7.812500e-03 : f32
    %668 = vector.broadcast %cst_181 : f32 to vector<8x1xf32>
    %669 = arith.mulf %667, %668 : vector<8x1xf32>
    %670 = vector.broadcast %669 : vector<8x1xf32> to vector<8x160xf32>
    %671 = arith.subf %663, %670 : vector<8x160xf32>
    %672 = vector.broadcast %630 : vector<1x160xf32> to vector<8x160xf32>
    %673 = arith.mulf %671, %672 : vector<8x160xf32>
    %674 = arith.mulf %673, %673 : vector<8x160xf32>
    %cst_182 = arith.constant dense<0.000000e+00> : vector<8xf32>
    %675 = vector.multi_reduction <add>, %674, %cst_182 [1] : vector<8x160xf32> to vector<8xf32>
    %676 = vector.shape_cast %675 : vector<8xf32> to vector<8x1xf32>
    %cst_183 = arith.constant 7.812500e-03 : f32
    %677 = vector.broadcast %cst_183 : f32 to vector<8x1xf32>
    %678 = arith.mulf %676, %677 : vector<8x1xf32>
    %cst_184 = arith.constant 9.99999974E-6 : f32
    %679 = vector.broadcast %cst_184 : f32 to vector<8x1xf32>
    %680 = arith.addf %678, %679 : vector<8x1xf32>
    %681 = math.rsqrt %680 : vector<8x1xf32>
    %682 = arith.mulf %632, %681 : vector<8x1xf32>
    %683 = vector.broadcast %682 : vector<8x1xf32> to vector<8x160xf32>
    %684 = arith.mulf %673, %683 : vector<8x160xf32>
    %685 = vector.broadcast %633 : vector<8x1xf32> to vector<8x160xf32>
    %686 = arith.addf %684, %685 : vector<8x160xf32>
    %cst_185 = arith.constant 0.000000e+00 : f32
    %687 = vector.broadcast %cst_185 : f32 to vector<8x160xf32>
    %688 = arith.maximumf %686, %687 : vector<8x160xf32>
    %689 = vector.broadcast %630 : vector<1x160xf32> to vector<8x160xf32>
    %690 = arith.mulf %688, %689 : vector<8x160xf32>
    %cst_186 = arith.constant 0.000000e+00 : f32
    %691 = vector.broadcast %cst_186 : f32 to vector<8x11xf32>
    %692 = vector.extract_strided_slice %690 {offsets = [0, 0], sizes = [8, 80], strides = [1, 1]} : vector<8x160xf32> to vector<8x80xf32>
    %693 = vector.extract_strided_slice %690 {offsets = [0, 80], sizes = [8, 80], strides = [1, 1]} : vector<8x160xf32> to vector<8x80xf32>
    %694 = tpu.concatenate %691, %692, %691, %691, %693, %691 in 1 : vector<8x11xf32>, vector<8x80xf32>, vector<8x11xf32>, vector<8x11xf32>, vector<8x80xf32>, vector<8x11xf32> -> vector<8x204xf32>
    %c0_187 = arith.constant 0 : index
    %c0_188 = arith.constant 0 : index
    %695 = vector.load %arg22[%c0_187, %c0_188] : memref<4x72xbf16, #tpu.memory_space<vmem>>, vector<4x72xbf16>
    %c0_189 = arith.constant 0 : index
    %c0_190 = arith.constant 0 : index
    %696 = vector.load %arg23[%c0_189, %c0_190] : memref<4x1xf32, #tpu.memory_space<vmem>>, vector<4x1xf32>
    %c0_191 = arith.constant 0 : index
    %c0_192 = arith.constant 0 : index
    %697 = vector.load %arg24[%c0_191, %c0_192] : memref<4x1xf32, #tpu.memory_space<vmem>>, vector<4x1xf32>
    %698 = arith.truncf %694 : vector<8x204xf32> to vector<8x204xbf16>
    %699 = vector.extract_strided_slice %698 {offsets = [0, 0], sizes = [8, 80], strides = [1, 1]} : vector<8x204xbf16> to vector<8x80xbf16>
    %700 = vector.extract_strided_slice %698 {offsets = [0, 102], sizes = [8, 80], strides = [1, 1]} : vector<8x204xbf16> to vector<8x80xbf16>
    %701 = tpu.concatenate %699, %700 in 1 : vector<8x80xbf16>, vector<8x80xbf16> -> vector<8x160xbf16>
    %702 = vector.extract_strided_slice %698 {offsets = [0, 1], sizes = [8, 80], strides = [1, 1]} : vector<8x204xbf16> to vector<8x80xbf16>
    %703 = vector.extract_strided_slice %698 {offsets = [0, 103], sizes = [8, 80], strides = [1, 1]} : vector<8x204xbf16> to vector<8x80xbf16>
    %704 = tpu.concatenate %702, %703 in 1 : vector<8x80xbf16>, vector<8x80xbf16> -> vector<8x160xbf16>
    %705 = vector.extract_strided_slice %698 {offsets = [0, 2], sizes = [8, 80], strides = [1, 1]} : vector<8x204xbf16> to vector<8x80xbf16>
    %706 = vector.extract_strided_slice %698 {offsets = [0, 104], sizes = [8, 80], strides = [1, 1]} : vector<8x204xbf16> to vector<8x80xbf16>
    %707 = tpu.concatenate %705, %706 in 1 : vector<8x80xbf16>, vector<8x80xbf16> -> vector<8x160xbf16>
    %708 = vector.extract_strided_slice %698 {offsets = [0, 10], sizes = [8, 80], strides = [1, 1]} : vector<8x204xbf16> to vector<8x80xbf16>
    %709 = vector.extract_strided_slice %698 {offsets = [0, 112], sizes = [8, 80], strides = [1, 1]} : vector<8x204xbf16> to vector<8x80xbf16>
    %710 = tpu.concatenate %708, %709 in 1 : vector<8x80xbf16>, vector<8x80xbf16> -> vector<8x160xbf16>
    %711 = vector.extract_strided_slice %698 {offsets = [0, 11], sizes = [8, 80], strides = [1, 1]} : vector<8x204xbf16> to vector<8x80xbf16>
    %712 = vector.extract_strided_slice %698 {offsets = [0, 113], sizes = [8, 80], strides = [1, 1]} : vector<8x204xbf16> to vector<8x80xbf16>
    %713 = tpu.concatenate %711, %712 in 1 : vector<8x80xbf16>, vector<8x80xbf16> -> vector<8x160xbf16>
    %714 = vector.extract_strided_slice %698 {offsets = [0, 12], sizes = [8, 80], strides = [1, 1]} : vector<8x204xbf16> to vector<8x80xbf16>
    %715 = vector.extract_strided_slice %698 {offsets = [0, 114], sizes = [8, 80], strides = [1, 1]} : vector<8x204xbf16> to vector<8x80xbf16>
    %716 = tpu.concatenate %714, %715 in 1 : vector<8x80xbf16>, vector<8x80xbf16> -> vector<8x160xbf16>
    %717 = vector.extract_strided_slice %698 {offsets = [0, 20], sizes = [8, 80], strides = [1, 1]} : vector<8x204xbf16> to vector<8x80xbf16>
    %718 = vector.extract_strided_slice %698 {offsets = [0, 122], sizes = [8, 80], strides = [1, 1]} : vector<8x204xbf16> to vector<8x80xbf16>
    %719 = tpu.concatenate %717, %718 in 1 : vector<8x80xbf16>, vector<8x80xbf16> -> vector<8x160xbf16>
    %720 = vector.extract_strided_slice %698 {offsets = [0, 21], sizes = [8, 80], strides = [1, 1]} : vector<8x204xbf16> to vector<8x80xbf16>
    %721 = vector.extract_strided_slice %698 {offsets = [0, 123], sizes = [8, 80], strides = [1, 1]} : vector<8x204xbf16> to vector<8x80xbf16>
    %722 = tpu.concatenate %720, %721 in 1 : vector<8x80xbf16>, vector<8x80xbf16> -> vector<8x160xbf16>
    %723 = vector.extract_strided_slice %698 {offsets = [0, 22], sizes = [8, 80], strides = [1, 1]} : vector<8x204xbf16> to vector<8x80xbf16>
    %724 = vector.extract_strided_slice %698 {offsets = [0, 124], sizes = [8, 80], strides = [1, 1]} : vector<8x204xbf16> to vector<8x80xbf16>
    %725 = tpu.concatenate %723, %724 in 1 : vector<8x80xbf16>, vector<8x80xbf16> -> vector<8x160xbf16>
    %726 = tpu.concatenate %701, %704, %707, %710, %713, %716, %719, %722, %725 in 0 : vector<8x160xbf16>, vector<8x160xbf16>, vector<8x160xbf16>, vector<8x160xbf16>, vector<8x160xbf16>, vector<8x160xbf16>, vector<8x160xbf16>, vector<8x160xbf16>, vector<8x160xbf16> -> vector<72x160xbf16>
    %cst_193 = arith.constant dense<0.000000e+00> : vector<4x160xf32>
    %727 = tpu.matmul %695, %726, %cst_193 {dimension_numbers = #tpu.dot_dimension_numbers<[1], [0], [0], [1], [0, 0, 1, 1], [], []>} : vector<4x72xbf16>, vector<72x160xbf16>, vector<4x160xf32> -> vector<4x160xf32>
    %728 = vector.broadcast %630 : vector<1x160xf32> to vector<4x160xf32>
    %729 = arith.mulf %727, %728 : vector<4x160xf32>
    %cst_194 = arith.constant dense<0.000000e+00> : vector<4xf32>
    %730 = vector.multi_reduction <add>, %729, %cst_194 [1] : vector<4x160xf32> to vector<4xf32>
    %731 = vector.shape_cast %730 : vector<4xf32> to vector<4x1xf32>
    %cst_195 = arith.constant 7.812500e-03 : f32
    %732 = vector.broadcast %cst_195 : f32 to vector<4x1xf32>
    %733 = arith.mulf %731, %732 : vector<4x1xf32>
    %734 = vector.broadcast %733 : vector<4x1xf32> to vector<4x160xf32>
    %735 = arith.subf %727, %734 : vector<4x160xf32>
    %736 = vector.broadcast %630 : vector<1x160xf32> to vector<4x160xf32>
    %737 = arith.mulf %735, %736 : vector<4x160xf32>
    %738 = arith.mulf %737, %737 : vector<4x160xf32>
    %cst_196 = arith.constant dense<0.000000e+00> : vector<4xf32>
    %739 = vector.multi_reduction <add>, %738, %cst_196 [1] : vector<4x160xf32> to vector<4xf32>
    %740 = vector.shape_cast %739 : vector<4xf32> to vector<4x1xf32>
    %cst_197 = arith.constant 7.812500e-03 : f32
    %741 = vector.broadcast %cst_197 : f32 to vector<4x1xf32>
    %742 = arith.mulf %740, %741 : vector<4x1xf32>
    %cst_198 = arith.constant 9.99999974E-6 : f32
    %743 = vector.broadcast %cst_198 : f32 to vector<4x1xf32>
    %744 = arith.addf %742, %743 : vector<4x1xf32>
    %745 = math.rsqrt %744 : vector<4x1xf32>
    %746 = arith.mulf %696, %745 : vector<4x1xf32>
    %747 = vector.broadcast %746 : vector<4x1xf32> to vector<4x160xf32>
    %748 = arith.mulf %737, %747 : vector<4x160xf32>
    %749 = vector.broadcast %697 : vector<4x1xf32> to vector<4x160xf32>
    %750 = arith.addf %748, %749 : vector<4x160xf32>
    %cst_199 = arith.constant 0.000000e+00 : f32
    %751 = vector.broadcast %cst_199 : f32 to vector<4x160xf32>
    %752 = arith.maximumf %750, %751 : vector<4x160xf32>
    %753 = vector.broadcast %630 : vector<1x160xf32> to vector<4x160xf32>
    %754 = arith.mulf %752, %753 : vector<4x160xf32>
    %c0_200 = arith.constant 0 : index
    %c0_201 = arith.constant 0 : index
    %755 = vector.load %arg37[%c0_200, %c0_201] : memref<80x256xbf16, #tpu.memory_space<vmem>>, vector<80x256xbf16>
    %756 = vector.extract_strided_slice %754 {offsets = [0, 0], sizes = [4, 80], strides = [1, 1]} : vector<4x160xf32> to vector<4x80xf32>
    %757 = vector.extract_strided_slice %754 {offsets = [0, 80], sizes = [4, 80], strides = [1, 1]} : vector<4x160xf32> to vector<4x80xf32>
    %758 = tpu.concatenate %756, %757 in 0 : vector<4x80xf32>, vector<4x80xf32> -> vector<8x80xf32>
    %759 = arith.truncf %758 : vector<8x80xf32> to vector<8x80xbf16>
    %cst_202 = arith.constant dense<0.000000e+00> : vector<8x256xf32>
    %760 = tpu.matmul %759, %755, %cst_202 {dimension_numbers = #tpu.dot_dimension_numbers<[1], [0], [0], [1], [0, 0, 1, 1], [], []>} : vector<8x80xbf16>, vector<80x256xbf16>, vector<8x256xf32> -> vector<8x256xf32>
    %761 = vector.extract_strided_slice %760 {offsets = [0, 0], sizes = [4, 256], strides = [1, 1]} : vector<8x256xf32> to vector<4x256xf32>
    %762 = vector.extract_strided_slice %760 {offsets = [4, 0], sizes = [4, 256], strides = [1, 1]} : vector<8x256xf32> to vector<4x256xf32>
    %763 = tpu.concatenate %761, %762 in 1 : vector<4x256xf32>, vector<4x256xf32> -> vector<4x512xf32>
    %764 = vector.extract_strided_slice %763 {offsets = [0, 0], sizes = [4, 256], strides = [1, 1]} : vector<4x512xf32> to vector<4x256xf32>
    %c0_203 = arith.constant 0 : index
    %c0_204 = arith.constant 0 : index
    %c0_205 = arith.constant 0 : index
    %765 = vector.load %arg38[%c0_203, %c0_204, %c0_205] : memref<2x4x256xf32, #tpu.memory_space<vmem>>, vector<1x4x256xf32>
    %766 = vector.shape_cast %765 : vector<1x4x256xf32> to vector<4x256xf32>
    %767 = vector.shape_cast %764 : vector<4x256xf32> to vector<1x4x256xf32>
    tpu.vector_store %arg38[%c0_203, %c0_204, %c0_205], %767 {strides = array<i32>} : memref<2x4x256xf32, #tpu.memory_space<vmem>>, vector<1x4x256xf32>,
    %768 = vector.extract_strided_slice %763 {offsets = [0, 256], sizes = [4, 256], strides = [1, 1]} : vector<4x512xf32> to vector<4x256xf32>
    %c1_206 = arith.constant 1 : index
    %c0_207 = arith.constant 0 : index
    %c0_208 = arith.constant 0 : index
    %769 = vector.load %arg38[%c1_206, %c0_207, %c0_208] : memref<2x4x256xf32, #tpu.memory_space<vmem>>, vector<1x4x256xf32>
    %770 = vector.shape_cast %769 : vector<1x4x256xf32> to vector<4x256xf32>
    %771 = vector.shape_cast %768 : vector<4x256xf32> to vector<1x4x256xf32>
    tpu.vector_store %arg38[%c1_206, %c0_207, %c0_208], %771 {strides = array<i32>} : memref<2x4x256xf32, #tpu.memory_space<vmem>>, vector<1x4x256xf32>,
    return
  }
}

</mosaic_0001>

<bundles_post_ra>
// kernel: conv_ae_forward.1
= control target key start
LH: loop header
LB: loop body
LE: loop exit
PB: predicated region body
PF: predicated region fallthrough
CT: control target
= control target key end

     0   :  { %s4423_s6 = smov 70   ;;  %s4424_s7 = smov 108   ;;  %vm176_vm0 = vcmask 572416   ;;  %v4436_v19 = vmov 0   ;;  %vm302_vm1 = vcmask 883712   ;;  %vm203_vm2 = vcmask 736256   ;;  %s6027_s0 = inlined_call_operand.smem [shape: u32[39], index: -1, kind: input, shape index: {}] }
   0x1   :  { %s4519_s5 = sld [smem:[%s6027_s0]]   ;;  %s6076_s8 = smov 90   ;;  %554 = vmatprep.mubr.bf16.mxu0 %v4436_v19  ;;  %595 = vmatprep.mubr.bf16.mxu1 %v4436_v19  ;;  %vm6049_vm3 = vcmask 752640   ;;  %vm6034_vm4 = vcmask 891904   ;;  %vm6036_vm5 = vcmask 1041408   ;;  %vm6030_vm6 = vcmask 1039360  }
   0x2   :  { %s6074_s9 = smov 92   ;;  %s4427_s10 = smov 91   ;;  %4233 = vset.pattern.permute.xlu0 %v4436_v19  ;;  %4234 = vset.pattern.permute.xlu1 %v4436_v19  ;;  %vm6040_vm7 = vcmask 744448   ;;  %vm6031_vm8 = vcmask 1031168   ;;  %vm438_vm9 = vcmask 1043456   ;;  %vm6033_vm10 = vcmask 900096  }
   0x3   :  { %s4428_s11 = smov 109   ;;  %s4429_s12 = smov 127   ;;  %vm6035_vm11 = vcmask 1045504   ;;  %vm504_vm12 = vcmask 293888   ;;  %vm6028_vm13 = vmmov 0   ;;  %vm6052_vm14 = vcmask 424960  }
   0x4   :  { %s4430_s13 = smov 126   ;;  %s4431_s14 = smov 110   ;;  %vm6042_vm15 = vcmask 261120  }
   0x5   :  { %s4432_s15 = smov 52   ;;  %s4433_s16 = smov 54  }
   0x6   :  { %s4434_s17 = smov 53   ;;  %s4435_s18 = smov 71  }
   0x7   :  { %v3902_v0 = vld [vmem:[%s4519_s5 + $0x14] sm:$0xf]  ;;  %v3901_v1 = vld [vmem:[%s4519_s5 + $0xc] sm:$0xff]  ;;  %v159_v2 = vld [vmem:[%s4519_s5] sm:$0xff]  ;;  %s6059_s19 = smov 89   ;;  %s6075_s20 = smov 88  }
   0x8   :  { %174 = vrot.lane.b32.xlu0 %v3902_v0, %s4423_s6  ;;  %v169_v3 = vcombine.high %v3901_v1, %v3901_v1  ;;  %v4525_v4 = vpack.c.bf16 %v159_v2, %v159_v2  ;;  %v165_v5 = vcombine.high %v159_v2, %v159_v2  ;;  %v160_v11 = vld [vmem:[%s4519_s5 + $0x8] sm:$0xf]  ;;  %s4439_s21 = smov 72   ;;  %s4440_s22 = smov 1  }
   0x9   :  { %s3863_s25 = sld [smem:[%s6027_s0 + %s4440_s22]]   ;;  %s6113_s26 = smov 33  }
   0xa   :  { %v4228_v6 = vpack.i.bf16 %v169_v3, %v3901_v1  ;;  %296 = vrot.lane.b32.xlu1 %v4525_v4, %s4424_s7  ;;  %v4529_v7 = vpack.c.bf16 %v165_v5, %v165_v5  ;;  %s3895_s29 = sld [smem:[%s6027_s0 + %s6113_s26]]   ;;  %s4444_s30 = smov 3  }
   0xb   :  { %s3865_s3 = sld [smem:[%s6027_s0 + %s4444_s30]]   ;;  %s4445_s4 = smov 2  }
   0xc   :  { %4229 = vrot.lane.b32.xlu0 %v4228_v6, %s4423_s6  ;;  %s3864_s23 = sld [smem:[%s6027_s0 + %s4445_s4]]   ;;  %s6064_s24 = smov 19  }
   0xd   :  { %s4452_s30 = smov 35   ;;  %s6121_s4 = smov 96  }
   0xe   :  { %298 = vrot.lane.b32.xlu1 %v4529_v7, %s4424_s7  ;;  %s4454_s5 = smov 64   ;;  %s6063_s22 = smov 25  }
   0xf   :  { %s6079_s27 = smov 21   ;;  %s6061_s28 = smov 23  }
  0x10   :  { %366 = vrot.lane.b32.xlu0 %v4525_v4, %s6076_s8  ;;  %s6114_s1 = smov 85   ;;  %s4469_s2 = smov 106  }
  0x12   :  { %368 = vrot.lane.b32.xlu1 %v4529_v7, %s6076_s8 }
  0x14   :  { %319 = vrot.lane.b32.xlu0 %v4529_v7, %s6074_s9 }
  0x16   :  { %344 = vrot.lane.b32.xlu1 %v4529_v7, %s4427_s10 }
  0x18   :  { %277 = vrot.lane.b32.xlu0 %v4529_v7, %s4428_s11 }
  0x1a   :  { %275 = vrot.lane.b32.xlu1 %v4525_v4, %s4428_s11 }
  0x1c   :  { %317 = vrot.lane.b32.xlu0 %v4525_v4, %s6074_s9 }
  0x1e   :  { %214 = vrot.lane.b32.xlu1 %v4529_v7, %s4429_s12 }
  0x20   :  { %342 = vrot.lane.b32.xlu0 %v4525_v4, %s4427_s10 }
  0x22   :  { %212 = vrot.lane.b32.xlu1 %v4525_v4, %s4429_s12 }
  0x24   :  { %235 = vrot.lane.b32.xlu0 %v4529_v7, %s4430_s13 }
  0x26   :  { %256 = vrot.lane.b32.xlu1 %v4529_v7, %s4431_s14 }
  0x28   :  { %233 = vrot.lane.b32.xlu0 %v4525_v4, %s4430_s13 }
  0x2a   :  { %254 = vrot.lane.b32.xlu1 %v4525_v4, %s4431_s14 }
  0x7a   :  { %v175_v8 = vpop.permute.xlu0 %174 }
  0x7b   :  { %v193_v9 = vpack.c.bf16 %v175_v8, %v175_v8 }
  0x7c   :  { %v297_v21 = vpop.permute.xlu1 %296 }
  0x7d   :  { %378 = vrot.lane.b32.xlu0 %v193_v9, %s4432_s15 }
  0x7e   :  { %v4230_v10 = vpop.permute.xlu0 %4229 }
  0x7f   :  { %v4231_v12 = vunpack.i.l.bf16 %v4230_v10  ;;  %v4232_v15 = vunpack.i.h.bf16 %v4230_v10 }
  0x80   :  { %v299_v23 = vpop.permute.xlu1 %298 }
  0x81   :  { %v183_v13 = vsel %vm176_vm0, %v160_v11, %v4231_v12  ;;  %333 = vrot.lane.b32.xlu0 %v193_v9, %s4433_s16  ;;  %v178_v16 = vsel %vm176_vm0, %v4232_v15, %v175_v8  ;;  %v177_v18 = vsel %vm176_vm0, %v4231_v12, %v4232_v15  ;;  %v303_v39 = vsel %vm302_vm1, %v297_v21, %v299_v23 }
  0x82   :  { %v4566_v14 = vpack.c.bf16 %v183_v13, %v183_v13  ;;  %v192_v17 = vpack.c.bf16 %v178_v16, %v178_v16  ;;  %v191_v20 = vpack.c.bf16 %v177_v18, %v177_v18  ;;  %v367_v22 = vpop.permute.xlu0 %366  ;;  %v406_v44 = vrot.slane %v303_v39, 6 }
  0x84   :  { %300 = vrot.lane.b32.xlu1 %v4566_v14, %s4424_s7  ;;  %v369_v25 = vpop.permute.xlu1 %368 }
  0x85   :  { %197 = vrot.lane.b32.xlu0 %v4566_v14, %s6076_s8  ;;  %v370_v41 = vsel %vm203_vm2, %v367_v22, %v369_v25 }
  0x86   :  { %v320_v24 = vpop.permute.xlu0 %319  ;;  %v509_v46 = vsel %vm6036_vm5, %v370_v41, 0 }
  0x88   :  { %321 = vrot.lane.b32.xlu1 %v4566_v14, %s6074_s9  ;;  %v345_v27 = vpop.permute.xlu1 %344 }
  0x89   :  { %346 = vrot.lane.b32.xlu0 %v4566_v14, %s4427_s10 }
  0x8a   :  { %v278_v26 = vpop.permute.xlu0 %277 }
  0x8c   :  { %279 = vrot.lane.b32.xlu1 %v4566_v14, %s4428_s11  ;;  %v276_v29 = vpop.permute.xlu1 %275 }
  0x8d   :  { %216 = vrot.lane.b32.xlu0 %v4566_v14, %s4429_s12  ;;  %v282_v47 = vsel %vm6034_vm4, %v276_v29, %v278_v26  ;;  %v4692_v29 = vld [vmem:[%s3863_s25] sm:$0xf]  ;;  %s4448_s25 = smov 57  }
  0x8e   :  { %v318_v28 = vpop.permute.xlu0 %317  ;;  %v467_v55 = vsel %vm6036_vm5, %v282_v47, %v406_v44 }
  0x8f   :  { %v324_v45 = vsel %vm6049_vm3, %v318_v28, %v320_v24 }
  0x90   :  { %237 = vrot.lane.b32.xlu1 %v4566_v14, %s4430_s13  ;;  %v215_v30 = vpop.permute.xlu1 %214  ;;  %v412_v52 = vrot.slane %v324_v45, 4 }
  0x91   :  { %258 = vrot.lane.b32.xlu0 %v4566_v14, %s4431_s14 }
  0x92   :  { %v343_v31 = vpop.permute.xlu0 %342  ;;  %v480_v5 = vsel %vm438_vm9, %v467_v55, %v412_v52 }
  0x93   :  { %v349_v53 = vsel %vm6040_vm7, %v343_v31, %v345_v27  ;;  %v4441_v31 = vmov 0.0  }
  0x94   :  { %372 = vrot.lane.b32.xlu1 %v4566_v14, %s4432_s15  ;;  %v213_v33 = vpop.permute.xlu1 %212  ;;  %v418_v61 = vrot.slane %v349_v53, 2 }
  0x95   :  { %305 = vrot.lane.b32.xlu0 %v4566_v14, %s4423_s6  ;;  %v219_v49 = vsel %vm6030_vm6, %v213_v33, %v215_v30 }
  0x96   :  { %v236_v32 = vpop.permute.xlu0 %235  ;;  %v388_v57 = vrot.slane %v219_v49, 6 }
  0x98   :  { %327 = vrot.lane.b32.xlu1 %v4566_v14, %s4433_s16  ;;  %v4625_v35 = vpop.permute.xlu1 %256  ;;  %v426_v13 = vsel %vm6036_vm5, %v4525_v4, %v388_v57 }
  0x99   :  { %351 = vrot.lane.b32.xlu0 %v4566_v14, %s4434_s17 }
  0x9a   :  { %v234_v34 = vpop.permute.xlu0 %233 }
  0x9b   :  { %v240_v58 = vsel %vm6031_vm8, %v234_v34, %v236_v32 }
  0x9c   :  { %284 = vrot.lane.b32.xlu1 %v4566_v14, %s4435_s18  ;;  %v255_v37 = vpop.permute.xlu1 %254  ;;  %v394_v6 = vrot.slane %v240_v58, 4 }
  0x9d   :  { %309 = vrot.lane.b32.xlu0 %v192_v17, %s4423_s6  ;;  %v261_v8 = vsel %vm6033_vm10, %v255_v37, %v4625_v35 }
  0x9e   :  { %v400_v18 = vrot.slane %v261_v8, 2  ;;  %v440_v4 = vsel %vm438_vm9, %v426_v13, %v394_v6 }
  0xa0   :  { %221 = vrot.lane.b32.xlu1 %v4566_v14, %s6059_s19  ;;  %v451_v28 = vsel %vm6035_vm11, %v440_v4, %v400_v18 }
  0xa1   :  { %374 = vrot.lane.b32.xlu0 %v191_v20, %s4432_s15 }
  0xa4   :  { %242 = vrot.lane.b32.xlu1 %v4566_v14, %s6075_s20 }
  0xa5   :  { %329 = vrot.lane.b32.xlu0 %v191_v20, %s4433_s16 }
  0xa8   :  { %263 = vrot.lane.b32.xlu1 %v4566_v14, %s4439_s21 }
  0xa9   :  { %376 = vrot.lane.b32.xlu0 %v192_v17, %s4432_s15 }
  0xac   :  { %307 = vrot.lane.b32.xlu1 %v191_v20, %s4423_s6 }
  0xad   :  { %286 = vrot.lane.b32.xlu0 %v191_v20, %s4435_s18 }
  0xb0   :  { %331 = vrot.lane.b32.xlu1 %v192_v17, %s4433_s16 }
  0xb1   :  { %355 = vrot.lane.b32.xlu0 %v192_v17, %s4434_s17 }
  0xb4   :  { %288 = vrot.lane.b32.xlu1 %v192_v17, %s4435_s18 }
  0xb5   :  { %223 = vrot.lane.b32.xlu0 %v191_v20, %s6059_s19 }
  0xb8   :  { %353 = vrot.lane.b32.xlu1 %v191_v20, %s4434_s17 }
  0xb9   :  { %244 = vrot.lane.b32.xlu0 %v191_v20, %s6075_s20 }
  0xbc   :  { %225 = vrot.lane.b32.xlu1 %v192_v17, %s6059_s19 }
  0xbd   :  { %201 = vrot.lane.b32.xlu0 %v192_v17, %s6076_s8 }
  0xc0   :  { %246 = vrot.lane.b32.xlu1 %v192_v17, %s6075_s20 }
  0xc1   :  { %265 = vrot.lane.b32.xlu0 %v191_v20, %s4439_s21 }
  0xc4   :  { %199 = vrot.lane.b32.xlu1 %v191_v20, %s6076_s8 }
  0xc5   :  { %357 = vrot.lane.b32.xlu0 %v193_v9, %s4434_s17 }
  0xc8   :  { %267 = vrot.lane.b32.xlu1 %v192_v17, %s4439_s21  ;;  %v490_v17 = vsel %vm6035_vm11, %v480_v5, %v418_v61 }
  0xef   :  { %v4627_v36 = vpop.permute.xlu0 %378 }
  0xf3   :  { %v4629_v38 = vpop.permute.xlu0 %333 }
  0xf6   :  { %v4632_v40 = vpop.permute.xlu1 %300 }
  0xf7   :  { %v4635_v42 = vpop.permute.xlu0 %197  ;;  %v304_v50 = vsel %vm302_vm1, %v299_v23, %v4632_v40 }
  0xf8   :  { %v371_v43 = vsel %vm203_vm2, %v369_v25, %v4635_v42  ;;  %v407_v59 = vrot.slane %v304_v50, 6 }
  0xf9   :  { %3903 = vmatprep.subr.msk.bf16.mxu0 %vm6036_vm5, %v371_v43 }
  0xfa   :  { %533 = vmatpush1.bf16.msra.mxu0 %v509_v46  ;;  %v4643_v48 = vpop.permute.xlu1 %321 }
  0xfb   :  { %v4648_v51 = vpop.permute.xlu0 %346  ;;  %v325_v54 = vsel %vm6049_vm3, %v320_v24, %v4643_v48 }
  0xfc   :  { %v350_v56 = vsel %vm6040_vm7, %v345_v27, %v4648_v51  ;;  %v413_v62 = vrot.slane %v325_v54, 4 }
  0xfd   :  { %v419_v1 = vrot.slane %v350_v56, 2 }
  0xfe   :  { %v4657_v60 = vpop.permute.xlu1 %279 }
  0xff   :  { %v283_v63 = vsel %vm6034_vm4, %v278_v26, %v4657_v60  ;;  %v4661_v0 = vpop.permute.xlu0 %216  ;;  %vm6090_vm4 = vcmask 588800  }
 0x100   :  { %v470_v2 = vsel %vm6036_vm5, %v283_v63, %v407_v59  ;;  %v220_v3 = vsel %vm6030_vm6, %v215_v30, %v4661_v0  ;;  %vm6051_vm6 = vcmask 441344  }
 0x101   :  { %v389_v9 = vrot.slane %v220_v3, 6  ;;  %v482_v10 = vsel %vm438_vm9, %v470_v2, %v413_v62 }
 0x102   :  { %v4673_v11 = vpop.permute.xlu1 %237  ;;  %v493_v12 = vsel %vm6035_vm11, %v482_v10, %v419_v1 }
 0x103   :  { %v241_v15 = vsel %vm6031_vm8, %v236_v32, %v4673_v11  ;;  %v4680_v16 = vpop.permute.xlu0 %258  ;;  %534 = vmatprep.subr.bf16.mxu0 %v493_v12  ;;  %v429_v23 = vsel %vm6036_vm5, %v4529_v7, %v389_v9  ;;  %vm359_vm8 = vcmask 433152  }
 0x104   :  { %v395_v20 = vrot.slane %v241_v15, 4  ;;  %v262_v21 = vsel %vm6033_vm10, %v4625_v35, %v4680_v16  ;;  %535 = vmatpush1.bf16.msra.mxu0 %v490_v17  ;;  %vm6038_vm10 = vcmask 719872  }
 0x105   :  { %v401_v22 = vrot.slane %v262_v21, 2 }
 0x106   :  { %v373_v24 = vpop.permute.xlu1 %372  ;;  %v442_v25 = vsel %vm438_vm9, %v429_v23, %v395_v20 }
 0x107   :  { %v306_v26 = vpop.permute.xlu0 %305  ;;  %v454_v27 = vsel %vm6035_vm11, %v442_v25, %v401_v22 }
 0x108   :  { %536 = vmatprep.subr.bf16.mxu0 %v454_v27 }
 0x109   :  { %537 = vmatpush1.bf16.msra.mxu0 %v451_v28 }
 0x10a   :  { %v328_v30 = vpop.permute.xlu1 %327  ;;  %4038 = vmatprep.subr.bf16.mxu0 %v4441_v31 }
 0x10b   :  { %v352_v7 = vpop.permute.xlu0 %351 }
 0x10c   :  { %3904 = vmatmul.mubr.msk.bf16.vlgmr.msra.gmra.mxu0 %vm504_vm12, %v4692_v29 }
 0x10d   :  { %4044 = vmatprep.mubr.msk.bf16.mxu0 %vm6028_vm13, %v4441_v31  ;;  %vm6032_vm13 = vcmask 580608  }
 0x10e   :  { %v285_v32 = vpop.permute.xlu1 %284 }
 0x10f   :  { %v4699_v33 = vpop.permute.xlu0 %309 }
 0x112   :  { %v222_v34 = vpop.permute.xlu1 %221 }
 0x113   :  { %v375_v35 = vpop.permute.xlu0 %374 }
 0x114   :  { %v381_v39 = vsel %vm6052_vm14, %v373_v24, %v375_v35 }
 0x115   :  { %v386_v44 = vsel %vm6042_vm15, %v4635_v42, %v381_v39 }
 0x116   :  { %v4701_v37 = vpop.permute.xlu1 %242  ;;  %v514_v49 = vsel %vm6036_vm5, %v386_v44, 0 }
 0x117   :  { %v330_v41 = vpop.permute.xlu0 %329 }
 0x118   :  { %v336_v59 = vsel %vm6051_vm6, %v328_v30, %v330_v41  ;;  %v410_v30 = vrot.slane %v4699_v33, 6 }
 0x11a   :  { %v4704_v43 = vpop.permute.xlu1 %263 }
 0x11b   :  { %v377_v45 = vpop.permute.xlu0 %376 }
 0x11c   :  { %v383_v46 = vsel %vm6052_vm14, %v377_v45, %v4627_v36  ;;  %v382_v47 = vsel %vm6052_vm14, %v375_v35, %v377_v45 }
 0x11d   :  { %3905 = vmatprep.subr.msk.bf16.mxu1 %vm6036_vm5, %v382_v47  ;;  %v520_v50 = vsel %vm6036_vm5, %v383_v46, 0 }
 0x11e   :  { %574 = vmatpush1.bf16.msra.mxu1 %v514_v49  ;;  %4039 = vmatpush3.bf16.msra.mxu0 %v520_v50  ;;  %v308_v52 = vpop.permute.xlu1 %307 }
 0x11f   :  { %v287_v53 = vpop.permute.xlu0 %286  ;;  %4040 = vmatprep.subr.bf16.mxu0 %v4441_v31  ;;  %v312_v54 = vsel %vm176_vm0, %v306_v26, %v308_v52  ;;  %v313_v57 = vsel %vm176_vm0, %v308_v52, %v4699_v33 }
 0x120   :  { %v316_v56 = vsel %vm6042_vm15, %v4632_v40, %v312_v54  ;;  %v291_v58 = vsel %vm6032_vm13, %v285_v32, %v287_v53  ;;  %v409_v2 = vrot.slane %v313_v57, 6  ;;  %v341_v40 = vsel %vm6042_vm15, %v4643_v48, %v336_v59 }
 0x121   :  { %v408_v62 = vrot.slane %v316_v56, 6  ;;  %v295_v3 = vsel %vm6042_vm15, %v4657_v60, %v291_v58  ;;  %v414_v17 = vrot.slane %v341_v40, 4 }
 0x122   :  { %v332_v55 = vpop.permute.xlu1 %331 }
 0x123   :  { %v356_v36 = vpop.permute.xlu0 %355  ;;  %v337_v5 = vsel %vm6051_vm6, %v330_v41, %v332_v55  ;;  %v472_v15 = vsel %vm6036_vm5, %v295_v3, %v408_v62 }
 0x124   :  { %v415_v9 = vrot.slane %v337_v5, 4  ;;  %v484_v23 = vsel %vm438_vm9, %v472_v15, %v414_v17  ;;  %v184_v15 = vld [vmem:[%s3895_s29] sm:$0x1f] }
 0x126   :  { %v289_v61 = vpop.permute.xlu1 %288 }
 0x127   :  { %v292_v63 = vsel %vm6032_vm13, %v287_v53, %v289_v61  ;;  %v224_v1 = vpop.permute.xlu0 %223  ;;  %vm6066_vm13 = vcmask 728064  }
 0x128   :  { %v475_v6 = vsel %vm6036_vm5, %v292_v63, %v409_v2  ;;  %v228_v25 = vsel %vm6066_vm13, %v222_v34, %v224_v1  ;;  %v478_v34 = vsel %vm6036_vm5, %v289_v61, %v410_v30 }
 0x129   :  { %v486_v48 = vsel %vm438_vm9, %v475_v6, %v415_v9  ;;  %v232_v27 = vsel %vm6042_vm15, %v4661_v0, %v228_v25 }
 0x12a   :  { %v354_v8 = vpop.permute.xlu1 %353  ;;  %v390_v39 = vrot.slane %v232_v27, 6 }
 0x12b   :  { %v360_v10 = vsel %vm359_vm8, %v352_v7, %v354_v8  ;;  %v361_v12 = vsel %vm359_vm8, %v354_v8, %v356_v36  ;;  %v245_v13 = vpop.permute.xlu0 %244 }
 0x12c   :  { %v365_v60 = vsel %vm6042_vm15, %v4648_v51, %v360_v10  ;;  %v421_v18 = vrot.slane %v361_v12, 2  ;;  %v338_v51 = vsel %vm6051_vm6, %v332_v55, %v4629_v38  ;;  %v249_v7 = vsel %vm6038_vm10, %v4701_v37, %v245_v13 }
 0x12d   :  { %v420_v20 = vrot.slane %v365_v60, 2  ;;  %v416_v35 = vrot.slane %v338_v51, 4  ;;  %v253_v38 = vsel %vm6042_vm15, %v4673_v11, %v249_v7  ;;  %v645_v10 = vlaneseq }
 0x12e   :  { %v226_v21 = vpop.permute.xlu1 %225  ;;  %v499_v22 = vsel %vm6035_vm11, %v486_v48, %v421_v18  ;;  %v396_v53 = vrot.slane %v253_v38, 4 }
 0x12f   :  { %v202_v4 = vpop.permute.xlu0 %201  ;;  %575 = vmatprep.subr.bf16.mxu1 %v499_v22  ;;  %v496_v24 = vsel %vm6035_vm11, %v484_v23, %v420_v20  ;;  %v229_v32 = vsel %vm6066_vm13, %v224_v1, %v226_v21  ;;  %v392_v50 = vrot.slane %v226_v21, 6  ;;  %v488_v11 = vsel %vm438_vm9, %v478_v34, %v416_v35 }
 0x130   :  { %576 = vmatpush1.bf16.msra.mxu1 %v496_v24  ;;  %v391_v45 = vrot.slane %v229_v32, 6  ;;  %v4784_v12 = vshrl.u32 %v645_v10, 7 }
 0x131   :  { %v437_v62 = vsel %vm6036_vm5, %v202_v4, %v392_v50 }
 0x132   :  { %v247_v26 = vpop.permute.xlu1 %246  ;;  %v655_v18 = vsub.s32 2, %v4784_v12  ;;  %v663_v20 = vsub.s32 4, %v4784_v12  ;;  %v659_v48 = vsub.s32 3, %v4784_v12 }
 0x133   :  { %v266_v28 = vpop.permute.xlu0 %265  ;;  %v250_v46 = vsel %vm6038_vm10, %v245_v13, %v247_v26  ;;  %v398_v54 = vrot.slane %v247_v26, 4  ;;  %v4787_v13 = vsub.s32 0, %v4784_v12  ;;  %vm6081_vm10 = vcmask 416768  }
 0x134   :  { %v270_v0 = vsel %vm6090_vm4, %v4704_v43, %v266_v28  ;;  %v397_v57 = vrot.slane %v250_v46, 4  ;;  %v4802_v23 = vrot.slane %v184_v15, %v655_v18  ;;  %v4806_v24 = vrot.slane %v184_v15, %v659_v48 }
 0x135   :  { %v448_v2 = vsel %vm438_vm9, %v437_v62, %v398_v54  ;;  %v4791_v17 = vrot.slane %v184_v15, %v4787_v13 }
 0x136   :  { %v200_v41 = vpop.permute.xlu1 %199 }
 0x137   :  { %v204_v33 = vsel %vm203_vm2, %v4635_v42, %v200_v41  ;;  %v205_v44 = vsel %vm203_vm2, %v200_v41, %v202_v4  ;;  %v358_v37 = vpop.permute.xlu0 %357  ;;  %v274_v42 = vsel %vm6042_vm15, %v4680_v16, %v270_v0  ;;  %v4804_v4 = vrot.slane %v184_v15, %v663_v20 }
 0x138   :  { %v209_v47 = vsel %vm6042_vm15, %v4566_v14, %v204_v33  ;;  %v362_v49 = vsel %vm359_vm8, %v356_v36, %v358_v37  ;;  %v434_v55 = vsel %vm6036_vm5, %v205_v44, %v391_v45  ;;  %v402_v63 = vrot.slane %v274_v42, 2 }
 0x139   :  { %v422_v52 = vrot.slane %v362_v49, 2  ;;  %v431_v43 = vsel %vm6036_vm5, %v209_v47, %v390_v39  ;;  %v446_v1 = vsel %vm438_vm9, %v434_v55, %v397_v57  ;;  %vm6039_vm5 = vcmask 465920  }
 0x13a   :  { %v268_v56 = vpop.permute.xlu1 %267  ;;  %v444_v61 = vsel %vm438_vm9, %v431_v43, %v396_v53 }
 0x13b   :  { %v271_v58 = vsel %vm6090_vm4, %v266_v28, %v268_v56  ;;  %v404_v14 = vrot.slane %v268_v56, 2  ;;  %v502_v36 = vsel %vm6035_vm11, %v488_v11, %v422_v52  ;;  %v457_v3 = vsel %vm6035_vm11, %v444_v61, %v402_v63 }
 0x13c   :  { %v403_v59 = vrot.slane %v271_v58, 2  ;;  %4041 = vmatpush3.bf16.msra.mxu0 %v502_v36 }
 0x13d   :  { %4042 = vmatprep.subr.bf16.mxu0 %v4441_v31  ;;  %v463_v5 = vsel %vm6035_vm11, %v448_v2, %v404_v14 }
 0x13e   :  { %v460_v16 = vsel %vm6035_vm11, %v446_v1, %v403_v59  ;;  %v187_v1 = vld [vmem:[%s3865_s3] sm:$0xff]  ;;  %vm6089_vm11 = vcmask 154624   ;;  %s5166_s3 = sld [smem:[%s6027_s0 + %s4452_s30]]   ;;  %s6116_s30 = smov 84  }
 0x13f   :  { %577 = vmatprep.subr.bf16.mxu1 %v460_v16 }
 0x140   :  { %578 = vmatpush1.bf16.msra.mxu1 %v457_v3  ;;  %4043 = vmatpush3.bf16.msra.mxu0 %v463_v5  ;;  %v186_v5 = vld [vmem:[%s3864_s23] sm:$0xff]  ;;  %s6107_s23 = smov 86  }
 0x143   :  { %3906 = vmatmul.mubr.msk.bf16.vlgmr.msra.gmra.mxu1 %vm504_vm12, %v4692_v29  ;;  %4045 = vmatmul.mubr.msk.bf16.vlgmr.msra.gmra.mxu0 %vm504_vm12, %v4692_v29  ;;  %v651_v29 = vsub.s32 1, %v4784_v12  ;;  %vm6037_vm12 = vcmask 523264  }
 0x144   :  { %1112 = vmatprep.mubr.bf16.mxu1 %v4436_v19  ;;  %1153 = vmatprep.mubr.bf16.mxu0 %v4436_v19 }
 0x145   :  { %v4795_v60 = vrot.slane %v184_v15, %v651_v29 }
 0x1cc   :  { %v556_v40 = vpop.f32.mrf.mxu0 }
 0x1cd   :  { %v670_v21 = vmul.f32 %v4791_v17, %v556_v40 }
 0x1ce   :  { %v558_v6 = vpop.f32.mrf.mxu0 }
 0x1cf   :  { %v671_v22 = vmul.f32 %v4795_v60, %v558_v6 }
 0x1d0   :  { %v560_v8 = vpop.f32.mrf.mxu0 }
 0x1d1   :  { %v675_v51 = vadd.f32 %v671_v22, %v670_v21  ;;  %v4446_v8 = vmov 0.0|0.0  }
 0x1d2   :  { %v561_v9 = vpop.f32.mrf.mxu0 }
 0x203   :  { %v597_v25 = vpop.f32.mrf.mxu1  ;;  %v638_v26 = vpop.f32.mrf.mxu0 }
 0x204   :  { %v672_v27 = vmul.f32 %v4802_v23, %v597_v25  ;;  %v674_v28 = vmul.f32 %v4804_v4, %v638_v26 }
 0x205   :  { %v599_v30 = vpop.f32.mrf.mxu1  ;;  %v4046_v7 = vpop.f32.mrf.mxu0 }
 0x206   :  { %v676_v32 = vadd.f32 %v675_v51, %v672_v27  ;;  %v673_v35 = vmul.f32 %v4806_v24, %v599_v30  ;;  %v679_v41 = vsel %vm6037_vm12, %v674_v28, 0.0 }
 0x207   :  { %v601_v34 = vpop.f32.mrf.mxu1  ;;  %v641_v39 = vpop.f32.mrf.mxu0 }
 0x208   :  { %v677_v38 = vadd.f32 %v676_v32, %v673_v35 }
 0x209   :  { %v602_v0 = vpop.f32.mrf.mxu1  ;;  %v4047_v33 = vpop.f32.mrf.mxu0 }
 0x20a   :  { %v680_v44 = vadd.f32 %v679_v41, %v677_v38 }
 0x20c   :  { %681 = vadd.xlane.f32.xlu1 %v680_v44 }
 0x21d   :  { %722 = vperm.xlu1 %4234, %v187_v1  }
 0x295   :  { %v682_v37 = vpop.xlane.xlu1 %681 }
 0x296   :  { %v683_v45 = vmul.f32 0.001953125, %v682_v37 }
 0x298   :  { %v684_v46 = vsub.f32 %v556_v40, %v683_v45  ;;  %v685_v47 = vsub.f32 %v558_v6, %v683_v45  ;;  %v686_v49 = vsub.f32 %v597_v25, %v683_v45  ;;  %v687_v50 = vsub.f32 %v599_v30, %v683_v45 }
 0x299   :  { %v688_v52 = vsub.f32 %v638_v26, %v683_v45  ;;  %v723_v10 = vpop.permute.xlu1 %722 }
 0x29a   :  { %v689_v11 = vmul.f32 %v684_v46, %v4791_v17  ;;  %v690_v43 = vmul.f32 %v685_v47, %v4795_v60  ;;  %v691_v53 = vmul.f32 %v686_v49, %v4802_v23  ;;  %v692_v42 = vmul.f32 %v687_v50, %v4806_v24 }
 0x29b   :  { %v693_v54 = vmul.f32 %v688_v52, %v4804_v4 }
 0x29c   :  { %v694_v55 = vmul.f32 %v689_v11, %v689_v11  ;;  %v695_v56 = vmul.f32 %v690_v43, %v690_v43  ;;  %v696_v57 = vmul.f32 %v691_v53, %v691_v53  ;;  %v697_v36 = vmul.f32 %v692_v42, %v692_v42 }
 0x29d   :  { %v698_v14 = vmul.f32 %v693_v54, %v693_v54 }
 0x29e   :  { %v699_v58 = vadd.f32 %v695_v56, %v694_v55 }
 0x29f   :  { %v702_v62 = vsel %vm6037_vm12, %v698_v14, 0.0  ;;  %vm775_vm12 = vcmask 990208  }
 0x2a0   :  { %v700_v59 = vadd.f32 %v699_v58, %v696_v57 }
 0x2a2   :  { %v701_v61 = vadd.f32 %v700_v59, %v697_v36 }
 0x2a4   :  { %v703_v63 = vadd.f32 %v702_v62, %v701_v61 }
 0x2a6   :  { %704 = vadd.xlane.f32.xlu0 %v703_v63 }
 0x32f   :  { %v705_v16 = vpop.xlane.xlu0 %704 }
 0x330   :  { %v706_v2 = vmul.f32 0.001953125, %v705_v16 }
 0x332   :  { %v707_v3 = vadd.f32 1e-05, %v706_v2 }
 0x334   :  { %4403 = vrsqrt.f32 %v707_v3 }
 0x341   :  { %v4404_v40 = vpop.eup %4403 }
 0x342   :  { %v709_v6 = vmul.f32 %v4404_v40, %v186_v5 }
 0x344   :  { %712 = vperm.xlu0 %4233, %v709_v6  }
 0x348   :  { %954 = vrot.lane.b32.xlu0 %v4446_v8, %s4432_s15 }
 0x34c   :  { %934 = vrot.lane.b32.xlu0 %v4446_v8, %s4434_s17 }
 0x350   :  { %912 = vrot.lane.b32.xlu0 %v4446_v8, %s4433_s16 }
 0x3bf   :  { %v713_v9 = vpop.permute.xlu0 %712 }
 0x3c0   :  { %v716_v15 = vmul.f32 %v713_v9, %v690_v43  ;;  %v717_v18 = vmul.f32 %v713_v9, %v691_v53  ;;  %v715_v20 = vmul.f32 %v713_v9, %v689_v11  ;;  %v718_v48 = vmul.f32 %v713_v9, %v692_v42 }
 0x3c1   :  { %v719_v34 = vmul.f32 %v713_v9, %v693_v54 }
 0x3c2   :  { %v726_v21 = vadd.f32 %v723_v10, %v716_v15  ;;  %v727_v22 = vadd.f32 %v723_v10, %v717_v18  ;;  %v725_v51 = vadd.f32 %v723_v10, %v715_v20  ;;  %v728_v27 = vadd.f32 %v723_v10, %v718_v48 }
 0x3c3   :  { %v729_v38 = vadd.f32 %v723_v10, %v719_v34  ;;  %v4925_v1 = vpop.permute.xlu0 %954 }
 0x3c4   :  { %v731_v25 = vmax.f32 %v726_v21, 0.0  ;;  %v732_v26 = vmax.f32 %v727_v22, 0.0  ;;  %v730_v32 = vmax.f32 %v725_v51, 0.0  ;;  %v733_v35 = vmax.f32 %v728_v27, 0.0 }
 0x3c5   :  { %v734_v33 = vmax.f32 %v729_v38, 0.0 }
 0x3c6   :  { %v736_v28 = vmul.f32 %v731_v25, %v4795_v60  ;;  %v737_v30 = vmul.f32 %v732_v26, %v4802_v23  ;;  %v735_v39 = vmul.f32 %v730_v32, %v4791_v17  ;;  %v738_v41 = vmul.f32 %v733_v35, %v4806_v24 }
 0x3c7   :  { %v739_v44 = vmul.f32 %v734_v33, %v4804_v4  ;;  %v4929_v16 = vpop.permute.xlu0 %934 }
 0x3c8   :  { %v4235_v7 = vpack.i.bf16 %v737_v30, %v736_v28  ;;  %v4240_v0 = vpack.i.bf16 %v738_v41, %v737_v30 }
 0x3ca   :  { %4236 = vrot.lane.b32.xlu1 %v4235_v7, %s6064_s24 }
 0x3cb   :  { %v4934_v2 = vpop.permute.xlu0 %912 }
 0x3ce   :  { %743 = vrot.lane.b32.xlu1 %v735_v39, %s6064_s24 }
 0x3d2   :  { %4241 = vrot.lane.b32.xlu1 %v4240_v0, %s4448_s25 }
 0x3d6   :  { %761 = vrot.lane.b32.xlu1 %v739_v44, %s4448_s25  ;;  %s4472_s25 = smov 116  }
 0x43c   :  { %v4237_v37 = vpop.permute.xlu1 %4236 }
 0x43d   :  { %v4238_v45 = vunpack.i.l.bf16 %v4237_v37  ;;  %v4239_v14 = vunpack.i.h.bf16 %v4237_v37 }
 0x43f   :  { %v751_v36 = vsel %vm6089_vm11, %v4238_v45, %v4239_v14 }
 0x440   :  { %v744_v46 = vpop.permute.xlu1 %743  ;;  %v771_v59 = vsel %vm6081_vm10, %v751_v36, 0.0 }
 0x441   :  { %v750_v47 = vsel %vm6089_vm11, %v744_v46, %v4238_v45  ;;  %v769_v49 = vsel %vm6089_vm11, 0.0, %v744_v46  ;;  %v772_v61 = vsel %vm176_vm0, %v771_v59, 0.0 }
 0x442   :  { %v4836_v50 = vpack.c.bf16 %v769_v49, %v769_v49  ;;  %v4838_v52 = vpack.c.bf16 %v750_v47, %v750_v47 }
 0x444   :  { %942 = vrot.lane.b32.xlu1 %v4836_v50, %s6076_s8  ;;  %922 = vrot.lane.b32.xlu0 %v4838_v52, %s4427_s10  ;;  %v4242_v11 = vpop.permute.xlu1 %4241 }
 0x445   :  { %v4244_v43 = vunpack.i.h.bf16 %v4242_v11  ;;  %v4243_v53 = vunpack.i.l.bf16 %v4242_v11 }
 0x447   :  { %v764_v42 = vsel %vm6039_vm5, %v4243_v53, %v4244_v43  ;;  %v774_v62 = vsel %vm6066_vm13, %v772_v61, %v4243_v53 }
 0x448   :  { %920 = vrot.lane.b32.xlu0 %v4836_v50, %s4427_s10  ;;  %944 = vrot.lane.b32.xlu1 %v4838_v52, %s6076_s8  ;;  %v762_v54 = vpop.permute.xlu1 %761  ;;  %v783_v56 = vpack.c.bf16 %v764_v42, %v764_v42  ;;  %v4888_v63 = vpack.c.bf16 %v774_v62, %v774_v62 }
 0x449   :  { %v765_v55 = vsel %vm6039_vm5, %v4244_v43, %v762_v54 }
 0x44a   :  { %v776_v57 = vsel %vm775_vm12, %v765_v55, 0.0  ;;  %vm6123_vm12 = vcmask 891904  }
 0x44b   :  { %v784_v58 = vpack.c.bf16 %v776_v57, %v776_v57  ;;  %vm6124_vm5 = vmmov %vm6123_vm12 }
 0x44c   :  { %880 = vrot.lane.b32.xlu0 %v4838_v52, %s4424_s7  ;;  %899 = vrot.lane.b32.xlu1 %v4838_v52, %s6074_s9 }
 0x450   :  { %878 = vrot.lane.b32.xlu0 %v4836_v50, %s4424_s7  ;;  %897 = vrot.lane.b32.xlu1 %v4836_v50, %s6074_s9 }
 0x454   :  { %842 = vrot.lane.b32.xlu0 %v4838_v52, %s4431_s14  ;;  %861 = vrot.lane.b32.xlu1 %v4838_v52, %s4428_s11 }
 0x458   :  { %840 = vrot.lane.b32.xlu0 %v4836_v50, %s4431_s14  ;;  %859 = vrot.lane.b32.xlu1 %v4836_v50, %s4428_s11 }
 0x45c   :  { %804 = vrot.lane.b32.xlu0 %v4838_v52, %s4429_s12  ;;  %823 = vrot.lane.b32.xlu1 %v4838_v52, %s4430_s13 }
 0x460   :  { %802 = vrot.lane.b32.xlu0 %v4836_v50, %s4429_s12  ;;  %821 = vrot.lane.b32.xlu1 %v4836_v50, %s4430_s13 }
 0x464   :  { %930 = vrot.lane.b32.xlu1 %v783_v56, %s4434_s17  ;;  %950 = vrot.lane.b32.xlu0 %v783_v56, %s4432_s15 }
 0x468   :  { %952 = vrot.lane.b32.xlu1 %v784_v58, %s4432_s15  ;;  %908 = vrot.lane.b32.xlu0 %v783_v56, %s4433_s16 }
 0x46c   :  { %910 = vrot.lane.b32.xlu1 %v784_v58, %s4433_s16  ;;  %888 = vrot.lane.b32.xlu0 %v783_v56, %s4423_s6 }
 0x470   :  { %890 = vrot.lane.b32.xlu1 %v784_v58, %s4423_s6  ;;  %869 = vrot.lane.b32.xlu0 %v783_v56, %s4435_s18 }
 0x474   :  { %871 = vrot.lane.b32.xlu1 %v784_v58, %s4435_s18  ;;  %932 = vrot.lane.b32.xlu0 %v784_v58, %s4434_s17 }
 0x478   :  { %789 = vrot.lane.b32.xlu1 %v4888_v63, %s6076_s8  ;;  %901 = vrot.lane.b32.xlu0 %v4888_v63, %s6074_s9 }
 0x47c   :  { %924 = vrot.lane.b32.xlu1 %v4888_v63, %s4427_s10  ;;  %863 = vrot.lane.b32.xlu0 %v4888_v63, %s4428_s11  ;;  %s4456_s10 = smov 94   ;;  %s6073_s11 = smov 98  }
 0x480   :  { %882 = vrot.lane.b32.xlu1 %v4888_v63, %s4424_s7  ;;  %825 = vrot.lane.b32.xlu0 %v4888_v63, %s4430_s13 }
 0x484   :  { %844 = vrot.lane.b32.xlu1 %v4888_v63, %s4431_s14  ;;  %850 = vrot.lane.b32.xlu0 %v783_v56, %s4439_s21 }
 0x488   :  { %852 = vrot.lane.b32.xlu1 %v784_v58, %s4439_s21  ;;  %928 = vrot.lane.b32.xlu0 %v4888_v63, %s4434_s17  ;;  %s6118_s17 = smov 11  }
 0x48c   :  { %831 = vrot.lane.b32.xlu1 %v783_v56, %s6075_s20  ;;  %833 = vrot.lane.b32.xlu0 %v784_v58, %s6075_s20 }
 0x490   :  { %806 = vrot.lane.b32.xlu1 %v4888_v63, %s4429_s12  ;;  %812 = vrot.lane.b32.xlu0 %v783_v56, %s6059_s19 }
 0x494   :  { %948 = vrot.lane.b32.xlu1 %v4888_v63, %s4432_s15  ;;  %829 = vrot.lane.b32.xlu0 %v4888_v63, %s6075_s20  ;;  %s4450_s15 = smov 6  }
 0x498   :  { %814 = vrot.lane.b32.xlu1 %v784_v58, %s6059_s19  ;;  %791 = vrot.lane.b32.xlu0 %v783_v56, %s6076_s8 }
 0x49c   :  { %906 = vrot.lane.b32.xlu1 %v4888_v63, %s4433_s16  ;;  %s6085_s16 = smov 13  }
 0x4a0   :  { %886 = vrot.lane.b32.xlu1 %v4888_v63, %s4423_s6  ;;  %s4449_s6 = smov 4  }
 0x4a1   :  { %s3866_s14 = sld [smem:[%s6027_s0 + %s4449_s6]]  }
 0x4a2   :  { %s5230_s6 = sld [smem:[%s6027_s0 + %s6063_s22]]  }
 0x4a4   :  { %867 = vrot.lane.b32.xlu1 %v4888_v63, %s4435_s18  ;;  %s3868_s18 = sld [smem:[%s6027_s0 + %s4450_s15]]   ;;  %s6087_s15 = smov 100  }
 0x4a8   :  { %848 = vrot.lane.b32.xlu1 %v4888_v63, %s4439_s21  ;;  %s4451_s21 = smov 5  }
 0x4a9   :  { %s3867_s29 = sld [smem:[%s6027_s0 + %s4451_s21]]   ;;  %s6083_s21 = smov 15  }
 0x4ac   :  { %810 = vrot.lane.b32.xlu1 %v4888_v63, %s6059_s19 }
 0x4b0   :  { %793 = vrot.lane.b32.xlu1 %v784_v58, %s6076_s8 }
 0x4b6   :  { %v923_v3 = vpop.permute.xlu0 %922  ;;  %v943_v5 = vpop.permute.xlu1 %942 }
 0x4ba   :  { %v921_v40 = vpop.permute.xlu0 %920  ;;  %v945_v6 = vpop.permute.xlu1 %944 }
 0x4bb   :  { %v946_v33 = vsel %vm203_vm2, %v943_v5, %v945_v6  ;;  %v926_v47 = vsel %vm6040_vm7, %v921_v40, %v923_v3 }
 0x4bc   :  { %v1067_v46 = vsel %vm438_vm9, %v946_v33, 0  ;;  %v981_v42 = vrot.slane %v926_v47, 4 }
 0x4be   :  { %v881_v8 = vpop.permute.xlu0 %880  ;;  %v900_v9 = vpop.permute.xlu1 %899 }
 0x4c2   :  { %v879_v10 = vpop.permute.xlu0 %878  ;;  %v898_v15 = vpop.permute.xlu1 %897 }
 0x4c3   :  { %v903_v43 = vsel %vm6049_vm3, %v898_v15, %v900_v9  ;;  %v884_v56 = vsel %vm302_vm1, %v879_v10, %v881_v8 }
 0x4c4   :  { %v1045_v36 = vsel %vm438_vm9, %v903_v43, %v981_v42  ;;  %v975_v62 = vrot.slane %v884_v56, 4 }
 0x4c6   :  { %v843_v18 = vpop.permute.xlu0 %842  ;;  %v862_v20 = vpop.permute.xlu1 %861 }
 0x4ca   :  { %v841_v48 = vpop.permute.xlu0 %840  ;;  %v860_v21 = vpop.permute.xlu1 %859 }
 0x4cb   :  { %v865_v59 = vsel %vm6123_vm12, %v860_v21, %v862_v20  ;;  %vm6127_vm12 = vcmask 1031168  }
 0x4cc   :  { %v1026_v10 = vsel %vm438_vm9, %v865_v59, %v975_v62 }
 0x4ce   :  { %v4936_v22 = vpop.permute.xlu0 %804  ;;  %v824_v25 = vpop.permute.xlu1 %823 }
 0x4d2   :  { %v803_v26 = vpop.permute.xlu0 %802  ;;  %v822_v51 = vpop.permute.xlu1 %821 }
 0x4d3   :  { %v827_v15 = vsel %vm6127_vm12, %v822_v51, %v824_v25 }
 0x4d6   :  { %v4938_v27 = vpop.permute.xlu1 %930  ;;  %v4940_v28 = vpop.permute.xlu0 %950 }
 0x4da   :  { %v4942_v30 = vpop.permute.xlu1 %952  ;;  %v4944_v7 = vpop.permute.xlu0 %908 }
 0x4db   :  { %v957_v32 = vsel %vm6052_vm14, %v4940_v28, %v4942_v30 }
 0x4dc   :  { %3910 = vmatprep.subr.msk.bf16.mxu0 %vm438_vm9, %v957_v32 }
 0x4de   :  { %v4950_v35 = vpop.permute.xlu1 %910  ;;  %v4952_v34 = vpop.permute.xlu0 %888 }
 0x4e2   :  { %v4954_v39 = vpop.permute.xlu1 %890  ;;  %v4956_v41 = vpop.permute.xlu0 %869 }
 0x4e6   :  { %v4958_v38 = vpop.permute.xlu1 %871  ;;  %v4960_v0 = vpop.permute.xlu0 %932 }
 0x4ea   :  { %v4963_v44 = vpop.permute.xlu1 %789  ;;  %v4965_v37 = vpop.permute.xlu0 %901 }
 0x4eb   :  { %v947_v45 = vsel %vm203_vm2, %v945_v6, %v4963_v44  ;;  %v904_v55 = vsel %vm6049_vm3, %v900_v9, %v4965_v37 }
 0x4ec   :  { %3908 = vmatprep.subr.msk.bf16.mxu1 %vm438_vm9, %v947_v45 }
 0x4ed   :  { %1087 = vmatpush1.bf16.msra.mxu1 %v1067_v46 }
 0x4ee   :  { %v4972_v49 = vpop.permute.xlu1 %924  ;;  %v4977_v54 = vpop.permute.xlu0 %863 }
 0x4ef   :  { %v927_v11 = vsel %vm6040_vm7, %v923_v3, %v4972_v49  ;;  %v866_v3 = vsel %vm6124_vm5, %v862_v20, %v4977_v54  ;;  %vm6125_vm7 = vcmask 900096   ;;  %vm6128_vm5 = vmmov %vm6127_vm12  ;;  %vm6132_vm12 = vcmask 580608  }
 0x4f0   :  { %v982_v53 = vrot.slane %v927_v11, 4  ;;  %v846_v5 = vsel %vm6125_vm7, %v841_v48, %v843_v18  ;;  %v937_v11 = vsel %vm359_vm8, %v4938_v27, %v4960_v0 }
 0x4f1   :  { %v969_v32 = vrot.slane %v846_v5, 4  ;;  %v916_v5 = vsel %vm6051_vm6, %v4950_v35, %v4934_v2 }
 0x4f2   :  { %v4982_v57 = vpop.permute.xlu1 %882  ;;  %v1049_v58 = vsel %vm438_vm9, %v904_v55, %v982_v53  ;;  %v4992_v40 = vpop.permute.xlu0 %825 }
 0x4f3   :  { %v885_v14 = vsel %vm302_vm1, %v881_v8, %v4982_v57  ;;  %1088 = vmatprep.subr.bf16.mxu1 %v1049_v58  ;;  %vm6126_vm1 = vmmov %vm6125_vm7  ;;  %v828_v20 = vsel %vm6128_vm5, %v824_v25, %v4992_v40  ;;  %v1007_v45 = vsel %vm438_vm9, %v827_v15, %v969_v32  ;;  %vm6129_vm7 = vcmask 1039360  }
 0x4f4   :  { %v976_v61 = vrot.slane %v885_v14, 4  ;;  %1089 = vmatpush1.bf16.msra.mxu1 %v1045_v36  ;;  %v808_v46 = vsel %vm6129_vm7, %v803_v26, %v4936_v22  ;;  %v984_v26 = vrot.slane %v937_v11, 4  ;;  %v958_v36 = vsel %vm6052_vm14, %v4942_v30, %v4925_v1 }
 0x4f5   :  { %v963_v47 = vrot.slane %v808_v46, 4  ;;  %vm6133_vm5 = vcmask 719872  }
 0x4f6   :  { %v4994_v6 = vpop.permute.xlu1 %844  ;;  %v1030_v9 = vsel %vm438_vm9, %v866_v3, %v976_v61  ;;  %v5011_v51 = vpop.permute.xlu0 %850  ;;  %v893_v3 = vsel %vm176_vm0, %v4952_v34, %v4954_v39 }
 0x4f7   :  { %v847_v8 = vsel %vm6126_vm1, %v843_v18, %v4994_v6  ;;  %1090 = vmatprep.subr.bf16.mxu1 %v1030_v9  ;;  %vm6130_vm1 = vmmov %vm6129_vm7  ;;  %v988_v14 = vsel %vm438_vm9, %v4836_v50, %v963_v47 }
 0x4f8   :  { %v970_v21 = vrot.slane %v847_v8, 4  ;;  %1091 = vmatpush1.bf16.msra.mxu1 %v1026_v10  ;;  %vm6135_vm7 = vmmov %vm6133_vm5 }
 0x4fa   :  { %v5003_v48 = vpop.permute.xlu1 %852  ;;  %v1011_v33 = vsel %vm438_vm9, %v828_v20, %v970_v21  ;;  %v929_v42 = vpop.permute.xlu0 %928  ;;  %v978_v21 = vrot.slane %v893_v3, 4  ;;  %v979_v20 = vrot.slane %v4954_v39, 4 }
 0x4fb   :  { %1092 = vmatprep.subr.bf16.mxu1 %v1011_v33  ;;  %v936_v50 = vsel %vm359_vm8, %v929_v42, %v4938_v27  ;;  %v855_v39 = vsel %vm6090_vm4, %v5011_v51, %v5003_v48  ;;  %v973_v47 = vrot.slane %v5003_v48, 4 }
 0x4fc   :  { %1093 = vmatpush1.bf16.msra.mxu1 %v1007_v45  ;;  %v941_v62 = vsel %vm6042_vm15, %v4972_v49, %v936_v50  ;;  %v874_v49 = vsel %vm6132_vm12, %v4956_v41, %v4958_v38  ;;  %v1041_v46 = vsel %vm438_vm9, %v4958_v38, %v979_v20 }
 0x4fd   :  { %v983_v8 = vrot.slane %v941_v62, 4  ;;  %v1037_v45 = vsel %vm438_vm9, %v874_v49, %v978_v21 }
 0x4fe   :  { %v5007_v18 = vpop.permute.xlu1 %831  ;;  %v834_v27 = vpop.permute.xlu0 %833 }
 0x502   :  { %v5016_v25 = vpop.permute.xlu1 %806 }
 0x503   :  { %v809_v43 = vsel %vm6130_vm1, %v4936_v22, %v5016_v25  ;;  %v938_v22 = vsel %vm359_vm8, %v4960_v0, %v4929_v16  ;;  %v1078_v0 = vsel %vm438_vm9, %v958_v36, 0  ;;  %vm6131_vm8 = vmmov 0  }
 0x504   :  { %v964_v53 = vrot.slane %v809_v43, 4  ;;  %v985_v30 = vrot.slane %v938_v22, 4 }
 0x506   :  { %v949_v55 = vpop.permute.xlu1 %948  ;;  %v992_v56 = vsel %vm438_vm9, %v4838_v52, %v964_v53  ;;  %v5038_v52 = vld [vmem:[%s3866_s14] sm:$0xf]  ;;  %v1060_v15 = vsel %vm438_vm9, %v916_v5, %v985_v30  ;;  %v1022_v53 = vsel %vm438_vm9, %v834_v27, %v973_v47  ;;  %s6120_s14 = smov 8  }
 0x507   :  { %v956_v58 = vsel %vm6052_vm14, %v949_v55, %v4940_v28  ;;  %1094 = vmatprep.subr.bf16.mxu1 %v992_v56  ;;  %v915_v28 = vsel %vm6051_vm6, %v4944_v7, %v4950_v35  ;;  %v813_v35 = vpop.permute.xlu0 %812 }
 0x508   :  { %v961_v59 = vsel %vm6042_vm15, %v4963_v44, %v956_v58  ;;  %1095 = vmatpush1.bf16.msra.mxu1 %v988_v14  ;;  %v1056_v16 = vsel %vm438_vm9, %v915_v28, %v984_v26 }
 0x509   :  { %v1072_v61 = vsel %vm438_vm9, %v961_v59, 0  ;;  %4048 = vmatprep.subr.bf16.mxu1 %v4441_v31 }
 0x50a   :  { %v5047_v1 = vpop.permute.xlu1 %814  ;;  %1128 = vmatpush1.bf16.msra.mxu0 %v1072_v61 }
 0x50b   :  { %1129 = vmatprep.subr.bf16.mxu0 %v1056_v16  ;;  %3909 = vmatmul.mubr.msk.bf16.vlgmr.msra.gmra.mxu1 %vm6090_vm4, %v5038_v52  ;;  %v830_v26 = vpop.permute.xlu0 %829  ;;  %v817_v28 = vsel %vm6066_vm13, %v813_v35, %v5047_v1  ;;  %v967_v61 = vrot.slane %v5047_v1, 4 }
 0x50c   :  { %4049 = vmatpush3.bf16.msra.mxu1 %v1078_v0  ;;  %4058 = vmatprep.mubr.msk.bf16.mxu1 %vm6131_vm8, %v4441_v31  ;;  %v835_v58 = vsel %vm6135_vm7, %v830_v26, %v5007_v18  ;;  %vm6044_vm7 = vcmask 277504  }
 0x50d   :  { %4050 = vmatprep.subr.bf16.mxu1 %v4441_v31  ;;  %v839_v36 = vsel %vm6042_vm15, %v4992_v40, %v835_v58  ;;  %v966_v40 = vrot.slane %v817_v28, 4 }
 0x50e   :  { %v907_v9 = vpop.permute.xlu1 %906 }
 0x50f   :  { %v914_v10 = vsel %vm6051_vm6, %v907_v9, %v4944_v7  ;;  %v792_v22 = vpop.permute.xlu0 %791 }
 0x510   :  { %v919_v32 = vsel %vm6042_vm15, %v4965_v37, %v914_v10  ;;  %4051 = vmatpush3.bf16.msra.mxu1 %v1060_v15 }
 0x511   :  { %v1052_v2 = vsel %vm438_vm9, %v919_v32, %v983_v8  ;;  %4052 = vmatprep.subr.bf16.mxu1 %v4441_v31 }
 0x512   :  { %v887_v33 = vpop.permute.xlu1 %886  ;;  %1130 = vmatpush1.bf16.msra.mxu0 %v1052_v2 }
 0x513   :  { %v892_v7 = vsel %vm176_vm0, %v887_v33, %v4952_v34  ;;  %1131 = vmatprep.subr.bf16.mxu0 %v1037_v45  ;;  %v836_v34 = vsel %vm6133_vm5, %v5007_v18, %v834_v27  ;;  %vm6134_vm0 = vmmov %vm6132_vm12  ;;  %vm6043_vm12 = vcmask 785408  }
 0x514   :  { %v896_v37 = vsel %vm6042_vm15, %v4982_v57, %v892_v7  ;;  %4053 = vmatpush3.bf16.msra.mxu1 %v1041_v46  ;;  %v972_v57 = vrot.slane %v855_v39, 4 }
 0x515   :  { %4054 = vmatprep.subr.bf16.mxu1 %v4441_v31  ;;  %v977_v43 = vrot.slane %v896_v37, 4 }
 0x516   :  { %v868_v11 = vpop.permute.xlu1 %867  ;;  %v1018_v56 = vsel %vm438_vm9, %v836_v34, %v972_v57 }
 0x517   :  { %v873_v38 = vsel %vm6134_vm0, %v868_v11, %v4956_v41  ;;  %vm6041_vm0 = vcmask 195584  }
 0x518   :  { %v877_v42 = vsel %vm6042_vm15, %v4977_v54, %v873_v38  ;;  %4055 = vmatpush3.bf16.msra.mxu1 %v1022_v53 }
 0x519   :  { %v1033_v48 = vsel %vm438_vm9, %v877_v42, %v977_v43  ;;  %4056 = vmatprep.subr.bf16.mxu1 %v4441_v31 }
 0x51a   :  { %v849_v55 = vpop.permute.xlu1 %848  ;;  %1132 = vmatpush1.bf16.msra.mxu0 %v1033_v48 }
 0x51b   :  { %v854_v41 = vsel %vm6090_vm4, %v849_v55, %v5011_v51  ;;  %1133 = vmatprep.subr.bf16.mxu0 %v1018_v56 }
 0x51c   :  { %v858_v14 = vsel %vm6042_vm15, %v4994_v6, %v854_v41  ;;  %v795_v6 = vsel %vm203_vm2, %v4963_v44, %v792_v22 }
 0x51d   :  { %v971_v54 = vrot.slane %v858_v14, 4  ;;  %v799_v3 = vsel %vm6042_vm15, %v4888_v63, %v795_v6 }
 0x51e   :  { %v811_v59 = vpop.permute.xlu1 %810 }
 0x51f   :  { %v816_v50 = vsel %vm6066_vm13, %v811_v59, %v813_v35  ;;  %v1014_v18 = vsel %vm438_vm9, %v839_v36, %v971_v54 }
 0x520   :  { %v820_v51 = vsel %vm6042_vm15, %v5016_v25, %v816_v50  ;;  %1134 = vmatpush1.bf16.msra.mxu0 %v1014_v18 }
 0x521   :  { %v965_v16 = vrot.slane %v820_v51, 4 }
 0x522   :  { %v794_v30 = vpop.permute.xlu1 %793 }
 0x523   :  { %v796_v0 = vsel %vm203_vm2, %v792_v22, %v794_v30  ;;  %v1003_v62 = vsel %vm438_vm9, %v794_v30, %v967_v61  ;;  %v995_v25 = vsel %vm438_vm9, %v799_v3, %v965_v16  ;;  %vm6136_vm2 = vcmask 523264   ;;  %v779_v61 = vld [vmem:[%s3868_s18] sm:$0xff]  ;;  %v4319_v3 = vld [vmem:[%s5166_s3 + $0x74] ss:$8 sps:$4 sm:$0xff]   ;;  %s6077_s18 = smov 17  }
 0x524   :  { %4057 = vmatpush3.bf16.msra.mxu1 %v1003_v62  ;;  %v999_v27 = vsel %vm438_vm9, %v796_v0, %v966_v40  ;;  %vm6137_vm1 = vmmov %vm6136_vm2  ;;  %v778_v30 = vld [vmem:[%s3867_s29] sm:$0xff]  ;;  %s6060_s29 = smov 55  }
 0x525   :  { %1135 = vmatprep.subr.bf16.mxu0 %v999_v27  ;;  %v4317_v27 = vld [vmem:[%s5166_s3 + $0x70] ss:$8 sps:$4 sm:$0xff]   ;;  %vm6138_vm5 = vmmov %vm6137_vm1 }
 0x526   :  { %1136 = vmatpush1.bf16.msra.mxu0 %v995_v25  ;;  %v4322_v25 = vld [vmem:[%s5166_s3 + $0x64] ss:$8 sps:$4 sm:$0xff]  }
 0x527   :  { %4059 = vmatmul.mubr.msk.bf16.vlgmr.msra.gmra.mxu1 %vm6090_vm4, %v5038_v52  ;;  %1508 = vmatprep.subr.bf16.mxu0 %v4319_v3 }
 0x528   :  { %1920 = vmatprep.mubr.bf16.mxu1 %v4436_v19 }
 0x529   :  { %3911 = vmatmul.mubr.msk.bf16.vlgmr.msra.gmra.mxu0 %vm6090_vm4, %v5038_v52 }
 0x52a   :  { %1509 = vmatpush1.bf16.msra.mxu0 %v4317_v27 }
 0x52b   :  { %1510 = vmatprep.subr.bf16.mxu0 %v4322_v25 }
 0x5cb   :  { %v1114_v44 = vpop.f32.mrf.mxu1 }
 0x5cc   :  { %v1202_v49 = vmul.f32 %v1114_v44, %v4791_v17 }
 0x5cd   :  { %v1116_v1 = vpop.f32.mrf.mxu1 }
 0x5ce   :  { %v1203_v63 = vmul.f32 %v1116_v1, %v4795_v60 }
 0x5cf   :  { %v1118_v5 = vpop.f32.mrf.mxu1 }
 0x5d0   :  { %v1207_v32 = vadd.f32 %v1203_v63, %v1202_v49  ;;  %v4323_v5 = vld [vmem:[%s5166_s3 + $0x50] ss:$8 sps:$4 sm:$0xff]   ;;  %v4326_v49 = vld [vmem:[%s5166_s3 + $0x40] ss:$8 sps:$4 sm:$0xff]   ;;  %v4331_v63 = vld [vmem:[%s5166_s3 + $0x34] ss:$8 sps:$4 sm:$0xff]  }
 0x5d1   :  { %v1119_v9 = vpop.f32.mrf.mxu1 }
 0x5d2   :  { %v4328_v9 = vld [vmem:[%s5166_s3 + $0x44] ss:$8 sps:$4 sm:$0xff]  }
 0x5e7   :  { %v1196_v8 = vpop.f32.mrf.mxu1 }
 0x5e8   :  { %v1206_v10 = vmul.f32 %v1196_v8, %v4804_v4 }
 0x5e9   :  { %v1155_v15 = vpop.f32.mrf.mxu0  ;;  %v4060_v21 = vpop.f32.mrf.mxu1 }
 0x5ea   :  { %v1204_v20 = vmul.f32 %v1155_v15, %v4802_v23  ;;  %v1210_v45 = vsel %vm6136_vm2, %v1206_v10, 0.0  ;;  %v4334_v10 = vld [vmem:[%s5166_s3 + $0x24] ss:$8 sps:$4 sm:$0xff]   ;;  %v4337_v21 = vld [vmem:[%s5166_s3 + $0x14] ss:$8 sps:$4 sm:$0xff]   ;;  %vm6045_vm2 = vcmask 343040  }
 0x5eb   :  { %v1157_v2 = vpop.f32.mrf.mxu0  ;;  %v1199_v35 = vpop.f32.mrf.mxu1 }
 0x5ec   :  { %v1208_v33 = vadd.f32 %v1207_v32, %v1204_v20  ;;  %v1205_v52 = vmul.f32 %v1157_v2, %v4806_v24  ;;  %v4335_v32 = vld [vmem:[%s5166_s3 + $0x10] ss:$8 sps:$4 sm:$0xff]   ;;  %v4340_v20 = vld [vmem:[%s5166_s3 + $0x4] ss:$8 sps:$4 sm:$0xff]   ;;  %v4343_v35 = vld [vmem:[%s5166_s3 + $0xf4] ss:$8 sps:$4 sm:$0xff]  }
 0x5ed   :  { %v1159_v7 = vpop.f32.mrf.mxu0  ;;  %v4061_v46 = vpop.f32.mrf.mxu1 }
 0x5ee   :  { %v1209_v37 = vadd.f32 %v1208_v33, %v1205_v52  ;;  %v4341_v33 = vld [vmem:[%s5166_s3 + $0xf0] ss:$8 sps:$4 sm:$0xff]   ;;  %v4346_v52 = vld [vmem:[%s5166_s3 + $0xe4] ss:$8 sps:$4 sm:$0xff]   ;;  %v4349_v7 = vld [vmem:[%s5166_s3 + $0xd4] ss:$8 sps:$4 sm:$0xff]  }
 0x5ef   :  { %v1160_v39 = vpop.f32.mrf.mxu0  ;;  %v4347_v46 = vld [vmem:[%s5166_s3 + $0xd0] ss:$8 sps:$4 sm:$0xff]  }
 0x5f0   :  { %v1211_v47 = vadd.f32 %v1210_v45, %v1209_v37  ;;  %v4344_v45 = vld [vmem:[%s5166_s3 + $0xe0] ss:$8 sps:$4 sm:$0xff]   ;;  %v4352_v37 = vld [vmem:[%s5166_s3 + $0xc4] ss:$8 sps:$4 sm:$0xff]  }
 0x5f1   :  { %v4350_v39 = vld [vmem:[%s5166_s3 + $0xc0] ss:$8 sps:$4 sm:$0xff]  }
 0x5f2   :  { %1212 = vadd.xlane.f32.xlu0 %v1211_v47  ;;  %v4355_v47 = vld [vmem:[%s5166_s3 + $0xb4] ss:$8 sps:$4 sm:$0xff]  }
 0x67b   :  { %v1213_v11 = vpop.xlane.xlu0 %1212 }
 0x67c   :  { %v1214_v34 = vmul.f32 0.001953125, %v1213_v11  ;;  %v4353_v11 = vld [vmem:[%s5166_s3 + $0xb0] ss:$8 sps:$4 sm:$0xff]  }
 0x67e   :  { %v1215_v43 = vsub.f32 %v1114_v44, %v1214_v34  ;;  %v1216_v38 = vsub.f32 %v1116_v1, %v1214_v34  ;;  %v1217_v53 = vsub.f32 %v1155_v15, %v1214_v34  ;;  %v1218_v57 = vsub.f32 %v1157_v2, %v1214_v34  ;;  %v4320_v44 = vld [vmem:[%s5166_s3 + $0x60] ss:$8 sps:$4 sm:$0xff]   ;;  %v4325_v1 = vld [vmem:[%s5166_s3 + $0x54] ss:$8 sps:$4 sm:$0xff]  }
 0x67f   :  { %v1219_v26 = vsub.f32 %v1196_v8, %v1214_v34  ;;  %1511 = vmatpush1.bf16.msra.mxu0 %v4320_v44  ;;  %v4329_v8 = vld [vmem:[%s5166_s3 + $0x30] ss:$8 sps:$4 sm:$0xff]   ;;  %v4332_v15 = vld [vmem:[%s5166_s3 + $0x20] ss:$8 sps:$4 sm:$0xff]   ;;  %v4358_v34 = vld [vmem:[%s5166_s3 + $0xa4] ss:$8 sps:$4 sm:$0xff]  }
 0x680   :  { %v5132_v42 = vmul.f32 %v1215_v43, %v4791_v17  ;;  %v5135_v48 = vmul.f32 %v1216_v38, %v4795_v60  ;;  %v5138_v55 = vmul.f32 %v1217_v53, %v4802_v23  ;;  %v5144_v58 = vmul.f32 %v1218_v57, %v4806_v24  ;;  %1512 = vmatprep.subr.bf16.mxu0 %v4325_v1  ;;  %v4338_v2 = vld [vmem:[%s5166_s3] ss:$8 sps:$4 sm:$0xff]   ;;  %v4361_v38 = vld [vmem:[%s5166_s3 + $0x94] ss:$8 sps:$4 sm:$0xff]   ;;  %v4359_v53 = vld [vmem:[%s5166_s3 + $0x90] ss:$8 sps:$4 sm:$0xff]  }
 0x681   :  { %v5141_v56 = vmul.f32 %v1219_v26, %v4804_v4  ;;  %v4356_v43 = vld [vmem:[%s5166_s3 + $0xa0] ss:$8 sps:$4 sm:$0xff]   ;;  %v4364_v57 = vld [vmem:[%s5166_s3 + $0x84] ss:$8 sps:$4 sm:$0xff]  }
 0x682   :  { %v1225_v41 = vmul.f32 %v5132_v42, %v5132_v42  ;;  %v1226_v14 = vmul.f32 %v5135_v48, %v5135_v48  ;;  %v1227_v54 = vmul.f32 %v5138_v55, %v5138_v55  ;;  %v1228_v59 = vmul.f32 %v5144_v58, %v5144_v58 }
 0x683   :  { %v1229_v22 = vmul.f32 %v5141_v56, %v5141_v56  ;;  %1513 = vmatpush1.bf16.msra.mxu0 %v4323_v5 }
 0x684   :  { %v1230_v36 = vadd.f32 %v1226_v14, %v1225_v41  ;;  %1514 = vmatprep.subr.bf16.mxu0 %v4328_v9  ;;  %v4362_v41 = vld [vmem:[%s5166_s3 + $0x80] ss:$8 sps:$4 sm:$0xff]   ;;  %v4365_v9 = vld [vmem:[%s5166_s3 + $0x110] ss:$8 sps:$4 sm:$0xff]  }
 0x685   :  { %v1233_v18 = vsel %vm6137_vm1, %v1229_v22, 0.0  ;;  %vm6054_vm1 = vcmask 359424  }
 0x686   :  { %v1231_v28 = vadd.f32 %v1230_v36, %v1227_v54 }
 0x687   :  { %1515 = vmatpush1.bf16.msra.mxu0 %v4326_v49 }
 0x688   :  { %v1232_v50 = vadd.f32 %v1231_v28, %v1228_v59  ;;  %1516 = vmatprep.subr.bf16.mxu0 %v4331_v63  ;;  %v4370_v63 = vld [vmem:[%s5166_s3 + $0x104] ss:$8 sps:$4 sm:$0xff]  }
 0x68a   :  { %v1234_v51 = vadd.f32 %v1233_v18, %v1232_v50  ;;  %v4367_v18 = vld [vmem:[%s5166_s3 + $0x114] ss:$8 sps:$4 sm:$0xff]  }
 0x68b   :  { %1517 = vmatpush1.bf16.msra.mxu0 %v4329_v8  ;;  %v4368_v8 = vld [vmem:[%s5166_s3 + $0x100] ss:$8 sps:$4 sm:$0xff]   ;;  %s4470_s3 = smov 107  }
 0x68c   :  { %1235 = vadd.xlane.f32.xlu1 %v1234_v51  ;;  %1518 = vmatprep.subr.bf16.mxu0 %v4334_v10 }
 0x68f   :  { %1519 = vmatpush1.bf16.msra.mxu0 %v4332_v15 }
 0x690   :  { %1520 = vmatprep.subr.bf16.mxu0 %v4337_v21 }
 0x693   :  { %1521 = vmatpush1.bf16.msra.mxu0 %v4335_v32 }
 0x694   :  { %1522 = vmatprep.subr.bf16.mxu0 %v4340_v20 }
 0x697   :  { %1523 = vmatpush1.bf16.msra.mxu0 %v4338_v2 }
 0x698   :  { %1524 = vmatprep.subr.bf16.mxu0 %v4343_v35 }
 0x69b   :  { %1525 = vmatpush2.bf16.msra.mxu0 %v4341_v33 }
 0x69c   :  { %1526 = vmatprep.subr.bf16.mxu0 %v4346_v52 }
 0x69d   :  { %1253 = vperm.xlu1 %4234, %v779_v61  }
 0x69f   :  { %1527 = vmatpush2.bf16.msra.mxu0 %v4344_v45 }
 0x6a0   :  { %1528 = vmatprep.subr.bf16.mxu0 %v4349_v7 }
 0x6a3   :  { %1529 = vmatpush2.bf16.msra.mxu0 %v4347_v46 }
 0x6a4   :  { %1530 = vmatprep.subr.bf16.mxu0 %v4352_v37 }
 0x6a7   :  { %1531 = vmatpush2.bf16.msra.mxu0 %v4350_v39 }
 0x6a8   :  { %1532 = vmatprep.subr.bf16.mxu0 %v4355_v47 }
 0x6ab   :  { %1533 = vmatpush2.bf16.msra.mxu0 %v4353_v11 }
 0x6ac   :  { %1534 = vmatprep.subr.bf16.mxu0 %v4358_v34 }
 0x6af   :  { %1535 = vmatpush2.bf16.msra.mxu0 %v4356_v43 }
 0x6b0   :  { %1536 = vmatprep.subr.bf16.mxu0 %v4361_v38 }
 0x6b3   :  { %1537 = vmatpush2.bf16.msra.mxu0 %v4359_v53 }
 0x6b4   :  { %1538 = vmatprep.subr.bf16.mxu0 %v4364_v57 }
 0x6b7   :  { %1539 = vmatpush2.bf16.msra.mxu0 %v4362_v41 }
 0x6b8   :  { %1563 = vmatprep.subr.bf16.mxu0 %v4367_v18 }
 0x715   :  { %v1236_v6 = vpop.xlane.xlu1 %1235 }
 0x716   :  { %v1237_v16 = vmul.f32 0.001953125, %v1236_v6 }
 0x718   :  { %v1238_v40 = vadd.f32 1e-05, %v1237_v16 }
 0x719   :  { %v1254_v22 = vpop.permute.xlu1 %1253 }
 0x71a   :  { %4405 = vrsqrt.f32 %v1238_v40 }
 0x727   :  { %v4406_v0 = vpop.eup %4405 }
 0x728   :  { %v1240_v62 = vmul.f32 %v4406_v0, %v778_v30 }
 0x72a   :  { %1243 = vperm.xlu0 %4233, %v1240_v62  }
 0x7a5   :  { %v1244_v26 = vpop.permute.xlu0 %1243 }
 0x7a6   :  { %v1248_v14 = vmul.f32 %v1244_v26, %v5138_v55  ;;  %v1249_v54 = vmul.f32 %v1244_v26, %v5144_v58  ;;  %v1250_v36 = vmul.f32 %v1244_v26, %v5141_v56  ;;  %v1246_v58 = vmul.f32 %v1244_v26, %v5132_v42 }
 0x7a7   :  { %v1247_v30 = vmul.f32 %v1244_v26, %v5135_v48 }
 0x7a8   :  { %v1258_v59 = vadd.f32 %v1254_v22, %v1248_v14  ;;  %v1259_v28 = vadd.f32 %v1254_v22, %v1249_v54  ;;  %v1260_v50 = vadd.f32 %v1254_v22, %v1250_v36  ;;  %v1256_v62 = vadd.f32 %v1254_v22, %v1246_v58 }
 0x7a9   :  { %v1257_v0 = vadd.f32 %v1254_v22, %v1247_v30 }
 0x7aa   :  { %v1263_v51 = vmax.f32 %v1258_v59, 0.0  ;;  %v1264_v61 = vmax.f32 %v1259_v28, 0.0  ;;  %v1265_v6 = vmax.f32 %v1260_v50, 0.0 }
 0x7ab   :  { %v1262_v27 = vmax.f32 %v1257_v0, 0.0 }
 0x7ac   :  { %v1268_v16 = vmul.f32 %v1263_v51, %v4802_v23  ;;  %v1269_v40 = vmul.f32 %v1264_v61, %v4806_v24  ;;  %v1270_v55 = vmul.f32 %v1265_v6, %v4804_v4  ;;  %v1261_v23 = vmax.f32 %v1256_v62, 0.0 }
 0x7ad   :  { %v1267_v44 = vmul.f32 %v1262_v27, %v4795_v60 }
 0x7ae   :  { %1310 = vrot.lane.b32.xlu1 %v1268_v16, %s6121_s4  ;;  %v4245_v56 = vpack.i.bf16 %v1270_v55, %v1269_v40  ;;  %v1266_v1 = vmul.f32 %v1261_v23, %v4791_v17 }
 0x7b0   :  { %4246 = vrot.lane.b32.xlu0 %v4245_v56, %s6121_s4 }
 0x820   :  { %v1311_v25 = vpop.permute.xlu1 %1310 }
 0x822   :  { %v4247_v24 = vpop.permute.xlu0 %4246 }
 0x823   :  { %v4249_v4 = vunpack.i.h.bf16 %v4247_v24  ;;  %v4248_v3 = vunpack.i.l.bf16 %v4247_v24 }
 0x825   :  { %v1317_v42 = vsel %vm6043_vm12, %v1311_v25, %v4248_v3  ;;  %v1318_v5 = vsel %vm6043_vm12, %v4248_v3, %v4249_v4  ;;  %v1324_v10 = vpack.c.bf16 %v4249_v4, %v1268_v16  ;;  %vm6048_vm12 = vcmask 670720  }
 0x826   :  { %v1323_v48 = vpack.c.bf16 %v1318_v5, %v1267_v44  ;;  %v1322_v49 = vpack.c.bf16 %v1317_v42, %v1266_v1 }
 0x828   :  { %1540 = vmatprep.mubr.bf16.mxu0 %v1323_v48 }
 0x829   :  { %1541 = vmatmul.mubr.bf16.vlgmr.msra.gmra.mxu0 %v1322_v49 }
 0x82a   :  { %1564 = vmatpush1.bf16.msra.mxu0 %v4365_v9  ;;  %1583 = vmatprep.mubr.bf16.mxu0 %v4436_v19 }
 0x82b   :  { %1565 = vmatprep.subr.bf16.mxu0 %v4370_v63 }
 0x82e   :  { %1566 = vmatpush1.bf16.msra.mxu0 %v4368_v8 }
 0x82f   :  { %4076 = vmatprep.subr.bf16.mxu0 %v4441_v31 }
 0x831   :  { %3949 = vmatmul.mubr.msk.bf16.vlgmr.msra.gmra.mxu0 %vm6042_vm15, %v1324_v10 }
 0x832   :  { %4092 = vmatprep.mubr.msk.bf16.mxu0 %vm6131_vm8, %v4441_v31 }
 0x8e9   :  { %v1542_v17 = vpop.f32.mrf.mxu0 }
 0x8eb   :  { %v1544_v60 = vpop.f32.mrf.mxu0 }
 0x8ed   :  { %v1546_v15 = vpop.f32.mrf.mxu0 }
 0x8ef   :  { %v1548_v21 = vpop.f32.mrf.mxu0 }
 0x8f1   :  { %v1585_v32 = vpop.f32.mrf.mxu0 }
 0x8f2   :  { %v1586_v2 = vadd.f32 %v1585_v32, %v1542_v17 }
 0x8f3   :  { %v1587_v20 = vpop.f32.mrf.mxu0 }
 0x8f4   :  { %v1588_v35 = vadd.f32 %v1587_v20, %v1544_v60 }
 0x8f5   :  { %v1589_v33 = vpop.f32.mrf.mxu0 }
 0x8f6   :  { %v4255_v52 = vpack.i.bf16 %v1588_v35, %v1586_v2  ;;  %v1590_v7 = vadd.f32 %v1589_v33, %v1546_v15 }
 0x8f7   :  { %v1591_v45 = vpop.f32.mrf.mxu0 }
 0x8f8   :  { %v1592_v46 = vadd.f32 %v1591_v45, %v1548_v21  ;;  %4256 = vrot.lane.b32.xlu1 %v4255_v52, %s4454_s5 }
 0x8fa   :  { %v4250_v37 = vpack.i.bf16 %v1592_v46, %v1590_v7 }
 0x8fc   :  { %4251 = vrot.lane.b32.xlu0 %v4250_v37, %s4454_s5 }
 0x96a   :  { %v4257_v53 = vpop.permute.xlu1 %4256 }
 0x96b   :  { %v4259_v57 = vunpack.i.h.bf16 %v4257_v53  ;;  %v4258_v26 = vunpack.i.l.bf16 %v4257_v53 }
 0x96d   :  { %v1603_v41 = vmax.f32 %v1588_v35, %v4259_v57  ;;  %v1598_v14 = vmax.f32 %v1586_v2, %v4258_v26 }
 0x96e   :  { %v4252_v39 = vpop.permute.xlu0 %4251 }
 0x96f   :  { %v4254_v47 = vunpack.i.h.bf16 %v4252_v39  ;;  %v4253_v11 = vunpack.i.l.bf16 %v4252_v39  ;;  %v1604_v54 = vmax.f32 %v1598_v14, %v1603_v41 }
 0x971   :  { %v1614_v34 = vmax.f32 %v1592_v46, %v4254_v47  ;;  %v1609_v43 = vmax.f32 %v1590_v7, %v4253_v11 }
 0x973   :  { %v1615_v38 = vmax.f32 %v1609_v43, %v1614_v34 }
 0x975   :  { %1617 = vrot.lane.b32.xlu0 %v1615_v38, %s4454_s5 }
 0x9e7   :  { %v1618_v36 = vpop.permute.xlu0 %1617 }
 0x9e8   :  { %v1620_v22 = vsel %vm6138_vm5, %v1604_v54, %v1618_v36  ;;  %vm6050_vm5 = vcmask 506880  }
 0x9e9   :  { %1677 = vrot.lane.b32.xlu0 %v1620_v22, %s6076_s8  ;;  %1674 = vrot.lane.b32.xlu1 %v1620_v22, %s6075_s20 }
 0x9ed   :  { %1683 = vrot.lane.b32.xlu0 %v1620_v22, %s4456_s10  ;;  %1680 = vrot.lane.b32.xlu1 %v1620_v22, %s6074_s9  ;;  %s4479_s9 = smov 32  }
 0x9f1   :  { %1689 = vrot.lane.b32.xlu0 %v1620_v22, %s6073_s11  ;;  %1686 = vrot.lane.b32.xlu1 %v1620_v22, %s6121_s4  ;;  %s4478_s11 = smov 7  }
 0x9f2   :  { %s3869_s8 = sld [smem:[%s6027_s0 + %s4478_s11]]  }
 0x9f5   :  { %1720 = vrot.lane.b32.xlu0 %v1620_v22, %s6120_s14  ;;  %1692 = vrot.lane.b32.xlu1 %v1620_v22, %s6087_s15  ;;  %s3870_s15 = sld [smem:[%s6027_s0 + %s6120_s14]]  }
 0x9f9   :  { %1625 = vrot.lane.b32.xlu0 %v1620_v22, %s6085_s16  ;;  %1622 = vrot.lane.b32.xlu1 %v1620_v22, %s6118_s17 }
 0x9fd   :  { %1631 = vrot.lane.b32.xlu0 %v1620_v22, %s6077_s18  ;;  %1628 = vrot.lane.b32.xlu1 %v1620_v22, %s6083_s21  ;;  %s6112_s21 = smov 48  }
 0xa01   :  { %1637 = vrot.lane.b32.xlu0 %v1620_v22, %s6079_s27  ;;  %1634 = vrot.lane.b32.xlu1 %v1620_v22, %s6064_s24  ;;  %s6093_s24 = smov 105   ;;  %s3894_s27 = sld [smem:[%s6027_s0 + %s4479_s9]]  }
 0xa05   :  { %1643 = vrot.lane.b32.xlu0 %v1620_v22, %s6063_s22  ;;  %1640 = vrot.lane.b32.xlu1 %v1620_v22, %s6061_s28  ;;  %s6101_s28 = smov 118   ;;  %s4476_s22 = smov 104  }
 0xa5b   :  { %v1678_v59 = vpop.permute.xlu0 %1677  ;;  %v1675_v28 = vpop.permute.xlu1 %1674 }
 0xa5c   :  { %v1696_v50 = vsel %vm6041_vm0, 0.0, %v1675_v28  ;;  %vm6046_vm0 = vcmask 605184  }
 0xa5d   :  { %v1697_v18 = vsel %vm6042_vm15, %v1696_v50, 0.0  ;;  %vm6139_vm15 = vcmask 523264  }
 0xa5e   :  { %v1699_v51 = vsel %vm6044_vm7, %v1697_v18, %v1678_v59  ;;  %vm6047_vm7 = vcmask 64512  }
 0xa5f   :  { %v1684_v61 = vpop.permute.xlu0 %1683  ;;  %v1701_v6 = vsel %vm6045_vm2, %v1699_v51, 0.0  ;;  %v1681_v16 = vpop.permute.xlu1 %1680  ;;  %vm1716_vm2 = vcmask 687104  }
 0xa60   :  { %v1703_v40 = vsel %vm6054_vm1, %v1701_v6, %v1681_v16  ;;  %vm6070_vm1 = vcmask 564224  }
 0xa61   :  { %v1705_v55 = vsel %vm6052_vm14, %v1703_v40, 0.0  ;;  %vm6069_vm14 = vcmask 482304  }
 0xa62   :  { %v1707_v56 = vsel %vm6051_vm6, %v1705_v55, %v1684_v61  ;;  %vm6058_vm6 = vcmask 400384  }
 0xa63   :  { %v1690_v58 = vpop.permute.xlu0 %1689  ;;  %v1709_v30 = vsel %vm6050_vm5, %v1707_v56, 0.0  ;;  %v1687_v0 = vpop.permute.xlu1 %1686  ;;  %vm6057_vm5 = vcmask 334848  }
 0xa64   :  { %v1710_v62 = vsel %vm6139_vm15, %v1709_v30, %v1687_v0  ;;  %vm1646_vm15 = vcmask 89088  }
 0xa65   :  { %v1711_v27 = vsel %vm6090_vm4, %v1710_v62, 0.0 }
 0xa66   :  { %v1713_v23 = vsel %vm6046_vm0, %v1711_v27, %v1690_v58  ;;  %vm6053_vm0 = vcmask 171008  }
 0xa67   :  { %v1721_v24 = vpop.permute.xlu0 %1720  ;;  %v1715_v4 = vsel %vm6048_vm12, %v1713_v23, 0.0  ;;  %v1693_v3 = vpop.permute.xlu1 %1692  ;;  %vm6056_vm12 = vcmask 252928  }
 0xa68   :  { %v1724_v25 = vsel %vm6047_vm7, %v1721_v24, 0.0  ;;  %v1717_v44 = vsel %vm1716_vm2, %v1715_v4, %v1693_v3  ;;  %vm6082_vm7 = vcmask 236544  }
 0xa69   :  { %v1719_v1 = vsel %vm6049_vm3, %v1717_v44, 0.0  ;;  %1730 = vrot.lane.b32.xlu0 %v1724_v25, %s6060_s29  ;;  %vm6055_vm3 = vcmask 318464   ;;  %s6103_s29 = smov 117  }
 0xa6a   :  { %1726 = vrot.lane.b32.xlu1 %v1719_v1, %s6059_s19  ;;  %s6105_s19 = smov 95  }
 0xa6b   :  { %v1623_v42 = vpop.permute.xlu1 %1622  ;;  %v1626_v9 = vpop.permute.xlu0 %1625 }
 0xa6c   :  { %v1647_v5 = vsel %vm1646_vm15, 0.0, %v1623_v42 }
 0xa6d   :  { %v1648_v48 = vsel %vm6089_vm11, %v1647_v5, 0.0  ;;  %vm6095_vm11 = vcmask 834560  }
 0xa6e   :  { %v1650_v49 = vsel %vm6053_vm0, %v1648_v48, %v1626_v9  ;;  %vm6071_vm0 = vcmask 498688  }
 0xa6f   :  { %v1652_v63 = vsel %vm6082_vm7, %v1650_v49, 0.0  ;;  %v1629_v8 = vpop.permute.xlu1 %1628  ;;  %v1632_v60 = vpop.permute.xlu0 %1631 }
 0xa70   :  { %v1654_v10 = vsel %vm6056_vm12, %v1652_v63, %v1629_v8  ;;  %vm6140_vm12 = vcmask 580608  }
 0xa71   :  { %v1656_v17 = vsel %vm6055_vm3, %v1654_v10, 0.0  ;;  %vm6068_vm3 = vcmask 646144  }
 0xa72   :  { %v1658_v15 = vsel %vm6057_vm5, %v1656_v17, %v1632_v60  ;;  %vm6067_vm5 = vcmask 662528  }
 0xa73   :  { %v1660_v21 = vsel %vm6058_vm6, %v1658_v15, 0.0  ;;  %v1635_v32 = vpop.permute.xlu1 %1634  ;;  %v1638_v35 = vpop.permute.xlu0 %1637  ;;  %vm6072_vm6 = vcmask 449536  }
 0xa74   :  { %v1661_v20 = vsel %vm6081_vm10, %v1660_v21, %v1635_v32  ;;  %vm6142_vm10 = vcmask 261120  }
 0xa75   :  { %v1663_v2 = vsel %vm6069_vm14, %v1661_v20, 0.0  ;;  %vm6100_vm14 = vcmask 777216   ;;  %vm6143_vm7 = vmmov %vm6142_vm10 }
 0xa76   :  { %v1665_v33 = vsel %vm6071_vm0, %v1663_v2, %v1638_v35  ;;  %vm6099_vm0 = vcmask 850944  }
 0xa77   :  { %v1667_v52 = vsel %vm6070_vm1, %v1665_v33, 0.0  ;;  %v1641_v45 = vpop.permute.xlu1 %1640  ;;  %v1644_v46 = vpop.permute.xlu0 %1643  ;;  %vm6141_vm1 = vcmask 785408  }
 0xa78   :  { %v1669_v7 = vsel %vm6140_vm12, %v1667_v52, %v1641_v45  ;;  %vm1750_vm12 = vcmask 654336  }
 0xa79   :  { %v1671_v37 = vsel %vm6068_vm3, %v1669_v7, 0.0  ;;  %vm6109_vm3 = vcmask 769024  }
 0xa7a   :  { %v1673_v47 = vsel %vm6067_vm5, %v1671_v37, %v1644_v46  ;;  %vm6110_vm5 = vcmask 703488  }
 0xadb   :  { %v1731_v39 = vpop.permute.xlu0 %1730 }
 0xadc   :  { %v1727_v11 = vpop.permute.xlu1 %1726 }
 0xadd   :  { %v1733_v34 = vsel %vm6066_vm13, %v1673_v47, %v1727_v11  ;;  %v1735_v43 = vsel %vm6072_vm6, %v1727_v11, %v1731_v39  ;;  %vm6111_vm13 = vcmask 695296   ;;  %vm6098_vm6 = vcmask 859136  }
 0xade   :  { %v5283_v38 = vpack.c.bf16 %v1733_v34, %v1733_v34  ;;  %v1741_v53 = vpack.c.bf16 %v1735_v43, %v1735_v43 }
 0xae0   :  { %1833 = vrot.lane.b32.xlu0 %v1741_v53, %s6116_s30  ;;  %1831 = vrot.lane.b32.xlu1 %v5283_v38, %s6116_s30 }
 0xae4   :  { %1822 = vrot.lane.b32.xlu0 %v5283_v38, %s6114_s1  ;;  %1744 = vrot.lane.b32.xlu1 %v5283_v38, %s4469_s2 }
 0xae8   :  { %1820 = vrot.lane.b32.xlu0 %v5283_v38, %s4470_s3  ;;  %1824 = vrot.lane.b32.xlu1 %v1741_v53, %s6114_s1 }
 0xaec   :  { %1813 = vrot.lane.b32.xlu0 %v1741_v53, %s6107_s23  ;;  %1811 = vrot.lane.b32.xlu1 %v5283_v38, %s6107_s23 }
 0xaf0   :  { %1800 = vrot.lane.b32.xlu0 %v5283_v38, %s4456_s10  ;;  %1809 = vrot.lane.b32.xlu1 %v5283_v38, %s4424_s7 }
 0xaf4   :  { %1798 = vrot.lane.b32.xlu0 %v5283_v38, %s4472_s25  ;;  %1802 = vrot.lane.b32.xlu1 %v1741_v53, %s4456_s10 }
 0xaf8   :  { %1791 = vrot.lane.b32.xlu0 %v1741_v53, %s6105_s19  ;;  %1789 = vrot.lane.b32.xlu1 %v5283_v38, %s6105_s19 }
 0xafc   :  { %1778 = vrot.lane.b32.xlu0 %v5283_v38, %s6121_s4  ;;  %1787 = vrot.lane.b32.xlu1 %v5283_v38, %s6103_s29 }
 0xb00   :  { %1776 = vrot.lane.b32.xlu0 %v5283_v38, %s6101_s28  ;;  %1780 = vrot.lane.b32.xlu1 %v1741_v53, %s6121_s4 }
 0xb04   :  { %1769 = vrot.lane.b32.xlu0 %v1741_v53, %s4476_s22  ;;  %1767 = vrot.lane.b32.xlu1 %v5283_v38, %s4476_s22 }
 0xb08   :  { %1756 = vrot.lane.b32.xlu0 %v5283_v38, %s6093_s24  ;;  %1765 = vrot.lane.b32.xlu1 %v5283_v38, %s4430_s13 }
 0xb0c   :  { %1754 = vrot.lane.b32.xlu0 %v5283_v38, %s4429_s12  ;;  %1758 = vrot.lane.b32.xlu1 %v1741_v53, %s6093_s24 }
 0xb10   :  { %1746 = vrot.lane.b32.xlu1 %v1741_v53, %s4469_s2 }
 0xb52   :  { %v1834_v57 = vpop.permute.xlu0 %1833  ;;  %v1832_v26 = vpop.permute.xlu1 %1831 }
 0xb53   :  { %3950 = vmatprep.subr.msk.bf16.mxu1 %vm438_vm9, %v1834_v57  ;;  %v1836_v41 = vsel %vm1716_vm2, %v1832_v26, %v1834_v57 }
 0xb56   :  { %v1823_v14 = vpop.permute.xlu0 %1822  ;;  %v5328_v54 = vpop.permute.xlu1 %1744 }
 0xb57   :  { %v1839_v36 = vsel %vm1750_vm12, %v5328_v54, %v1836_v41  ;;  %v1737_v41 = vld [vmem:[%s3869_s8] sm:$0xf]  ;;  %s4480_s8 = smov 9  }
 0xb58   :  { %v1883_v22 = vsel %vm438_vm9, %v1839_v36, 0  ;;  %s3871_s20 = sld [smem:[%s6027_s0 + %s4480_s8]]  }
 0xb59   :  { %1895 = vmatpush1.bf16.msra.mxu1 %v1883_v22 }
 0xb5a   :  { %v1821_v59 = vpop.permute.xlu0 %1820  ;;  %v1825_v28 = vpop.permute.xlu1 %1824 }
 0xb5b   :  { %v1827_v50 = vsel %vm6111_vm13, %v1823_v14, %v1825_v28  ;;  %v1851_v18 = vrot.slane %v1825_v28, 4  ;;  %v1736_v14 = vld [vmem:[%s3894_s27] sm:$0x3]  ;;  %s4482_s27 = smov 12  }
 0xb5c   :  { %v1830_v6 = vsel %vm1750_vm12, %v1821_v59, %v1827_v50  ;;  %s3874_s16 = sld [smem:[%s6027_s0 + %s4482_s27]]  }
 0xb5d   :  { %v1850_v40 = vrot.slane %v1830_v6, 4  ;;  %s3873_s27 = sld [smem:[%s6027_s0 + %s6118_s17]]  }
 0xb5e   :  { %v1814_v51 = vpop.permute.xlu0 %1813  ;;  %v1812_v61 = vpop.permute.xlu1 %1811 }
 0xb5f   :  { %v1878_v16 = vsel %vm438_vm9, %v1814_v51, %v1851_v18  ;;  %v1816_v55 = vsel %vm6110_vm5, %v1812_v61, %v1814_v51 }
 0xb60   :  { %1896 = vmatprep.subr.bf16.mxu1 %v1878_v16 }
 0xb62   :  { %v1801_v56 = vpop.permute.xlu0 %1800  ;;  %v1810_v58 = vpop.permute.xlu1 %1809 }
 0xb63   :  { %v1819_v30 = vsel %vm1750_vm12, %v1810_v58, %v1816_v55 }
 0xb64   :  { %v1874_v0 = vsel %vm438_vm9, %v1819_v30, %v1850_v40 }
 0xb65   :  { %1897 = vmatpush1.bf16.msra.mxu1 %v1874_v0 }
 0xb66   :  { %v1799_v62 = vpop.permute.xlu0 %1798  ;;  %v1803_v27 = vpop.permute.xlu1 %1802 }
 0xb67   :  { %v1805_v23 = vsel %vm6109_vm3, %v1801_v56, %v1803_v27  ;;  %v1848_v24 = vrot.slane %v1803_v27, 4 }
 0xb68   :  { %v1808_v25 = vsel %vm1750_vm12, %v1799_v62, %v1805_v23  ;;  %v1739_v62 = vld [vmem:[%s3871_s20] sm:$0xff]  ;;  %s4483_s20 = smov 34  }
 0xb69   :  { %v1847_v1 = vrot.slane %v1808_v25, 4 }
 0xb6a   :  { %v1792_v4 = vpop.permute.xlu0 %1791  ;;  %v1790_v3 = vpop.permute.xlu1 %1789 }
 0xb6b   :  { %v1871_v44 = vsel %vm438_vm9, %v1792_v4, %v1848_v24  ;;  %v1794_v42 = vsel %vm6100_vm14, %v1790_v3, %v1792_v4  ;;  %v1738_v4 = vld [vmem:[%s3870_s15] sm:$0xff]  ;;  %s4481_s15 = smov 10  }
 0xb6c   :  { %1898 = vmatprep.subr.bf16.mxu1 %v1871_v44  ;;  %s3872_s18 = sld [smem:[%s6027_s0 + %s4481_s15]]   ;;  %s4500_s15 = smov 121  }
 0xb6e   :  { %v1779_v5 = vpop.permute.xlu0 %1778  ;;  %v1788_v48 = vpop.permute.xlu1 %1787 }
 0xb6f   :  { %v1797_v9 = vsel %vm1750_vm12, %v1788_v48, %v1794_v42 }
 0xb70   :  { %v1867_v49 = vsel %vm438_vm9, %v1797_v9, %v1847_v1 }
 0xb71   :  { %1899 = vmatpush1.bf16.msra.mxu1 %v1867_v49 }
 0xb72   :  { %v1777_v63 = vpop.permute.xlu0 %1776  ;;  %v1781_v8 = vpop.permute.xlu1 %1780 }
 0xb73   :  { %v1783_v10 = vsel %vm6141_vm1, %v1779_v5, %v1781_v8  ;;  %v1845_v17 = vrot.slane %v1781_v8, 4  ;;  %vm6097_vm1 = vcmask 867328  }
 0xb74   :  { %v1786_v21 = vsel %vm1750_vm12, %v1777_v63, %v1783_v10 }
 0xb75   :  { %v1844_v20 = vrot.slane %v1786_v21, 4 }
 0xb76   :  { %v1770_v60 = vpop.permute.xlu0 %1769  ;;  %v1768_v15 = vpop.permute.xlu1 %1767 }
 0xb77   :  { %v1864_v32 = vsel %vm438_vm9, %v1770_v60, %v1845_v17  ;;  %v1772_v2 = vsel %vm6099_vm0, %v1768_v15, %v1770_v60 }
 0xb78   :  { %1900 = vmatprep.subr.bf16.mxu1 %v1864_v32 }
 0xb7a   :  { %v1757_v35 = vpop.permute.xlu0 %1756  ;;  %v1766_v33 = vpop.permute.xlu1 %1765 }
 0xb7b   :  { %v1775_v52 = vsel %vm1750_vm12, %v1766_v33, %v1772_v2 }
 0xb7c   :  { %v1860_v45 = vsel %vm438_vm9, %v1775_v52, %v1844_v20 }
 0xb7d   :  { %1901 = vmatpush1.bf16.msra.mxu1 %v1860_v45 }
 0xb7e   :  { %v1755_v7 = vpop.permute.xlu0 %1754  ;;  %v1759_v46 = vpop.permute.xlu1 %1758 }
 0xb7f   :  { %v1761_v37 = vsel %vm6098_vm6, %v1757_v35, %v1759_v46  ;;  %v1842_v47 = vrot.slane %v1759_v46, 4 }
 0xb80   :  { %v1764_v39 = vsel %vm1750_vm12, %v1755_v7, %v1761_v37 }
 0xb81   :  { %v1841_v34 = vrot.slane %v1764_v39, 4 }
 0xb82   :  { %v1747_v11 = vpop.permute.xlu1 %1746 }
 0xb83   :  { %v1749_v43 = vsel %vm6097_vm1, %v5328_v54, %v1747_v11  ;;  %v1857_v53 = vsel %vm438_vm9, %v1747_v11, %v1842_v47  ;;  %v5371_v54 = vrot.slane %v1736_v14, %v651_v29 }
 0xb84   :  { %1902 = vmatprep.subr.bf16.mxu1 %v1857_v53  ;;  %v1753_v57 = vsel %vm1750_vm12, %v5283_v38, %v1749_v43  ;;  %v5374_v38 = vrot.slane %v1736_v14, %v4787_v13 }
 0xb85   :  { %v1853_v26 = vsel %vm438_vm9, %v1753_v57, %v1841_v34 }
 0xb86   :  { %1903 = vmatpush1.bf16.msra.mxu1 %v1853_v26 }
 0xb89   :  { %3951 = vmatmul.mubr.msk.bf16.vlgmr.msra.gmra.mxu1 %vm6090_vm4, %v1737_v41  ;;  %vm6144_vm4 = vcmask 744448  }
 0xb8a   :  { %2174 = vmatprep.mubr.bf16.mxu1 %v4436_v19 }
 0xc49   :  { %v1922_v36 = vpop.f32.mrf.mxu1 }
 0xc4a   :  { %v1940_v28 = vmul.f32 %v5374_v38, %v1922_v36 }
 0xc4b   :  { %v1924_v22 = vpop.f32.mrf.mxu1 }
 0xc4c   :  { %v1941_v59 = vmul.f32 %v5371_v54, %v1924_v22 }
 0xc4d   :  { %v1926_v50 = vpop.f32.mrf.mxu1 }
 0xc4e   :  { %v1942_v18 = vsel %vm6142_vm10, %v1941_v59, 0.0  ;;  %vm6091_vm10 = vcmask 269312  }
 0xc4f   :  { %v1927_v51 = vpop.f32.mrf.mxu1  ;;  %v1943_v61 = vadd.f32 %v1942_v18, %v1940_v28 }
 0xc51   :  { %1944 = vadd.xlane.f32.xlu0 %v1943_v61 }
 0xcda   :  { %v1945_v6 = vpop.xlane.xlu0 %1944 }
 0xcdb   :  { %v1946_v16 = vmul.f32 0.0078125, %v1945_v6 }
 0xcdd   :  { %v1947_v12 = vsub.f32 %v1922_v36, %v1946_v16  ;;  %v1948_v29 = vsub.f32 %v1924_v22, %v1946_v16 }
 0xcdf   :  { %v1949_v40 = vmul.f32 %v1947_v12, %v5374_v38  ;;  %v1950_v55 = vmul.f32 %v1948_v29, %v5371_v54 }
 0xce1   :  { %v1951_v56 = vmul.f32 %v1949_v40, %v1949_v40  ;;  %v1952_v58 = vmul.f32 %v1950_v55, %v1950_v55 }
 0xce3   :  { %v1953_v30 = vsel %vm6143_vm7, %v1952_v58, 0.0  ;;  %vm6096_vm7 = vcmask 531456  }
 0xce4   :  { %v1954_v0 = vadd.f32 %v1953_v30, %v1951_v56 }
 0xce6   :  { %1955 = vadd.xlane.f32.xlu1 %v1954_v0 }
 0xcf7   :  { %1970 = vperm.xlu1 %4234, %v1739_v62  }
 0xd6f   :  { %v1956_v27 = vpop.xlane.xlu1 %1955 }
 0xd70   :  { %v1957_v23 = vmul.f32 0.0078125, %v1956_v27 }
 0xd72   :  { %v1958_v24 = vadd.f32 1e-05, %v1957_v23 }
 0xd73   :  { %v1971_v5 = vpop.permute.xlu1 %1970 }
 0xd74   :  { %4407 = vrsqrt.f32 %v1958_v24 }
 0xd81   :  { %v4408_v3 = vpop.eup %4407 }
 0xd82   :  { %v1960_v25 = vmul.f32 %v4408_v3, %v1738_v4 }
 0xd84   :  { %1963 = vperm.xlu0 %4233, %v1960_v25  }
 0xdff   :  { %v1964_v44 = vpop.permute.xlu0 %1963 }
 0xe00   :  { %v1966_v1 = vmul.f32 %v1964_v44, %v1949_v40  ;;  %v1967_v42 = vmul.f32 %v1964_v44, %v1950_v55 }
 0xe02   :  { %v1973_v48 = vadd.f32 %v1971_v5, %v1966_v1  ;;  %v1974_v9 = vadd.f32 %v1971_v5, %v1967_v42 }
 0xe04   :  { %v1975_v49 = vmax.f32 %v1973_v48, 0.0  ;;  %v1976_v63 = vmax.f32 %v1974_v9, 0.0 }
 0xe06   :  { %v1978_v8 = vmul.f32 %v1976_v63, %v5371_v54  ;;  %v1977_v10 = vmul.f32 %v1975_v49, %v5374_v38 }
 0xe08   :  { %1980 = vrot.lane.b32.xlu0 %v1977_v10, %s6118_s17  ;;  %v4260_v17 = vpack.i.bf16 %v1978_v8, %v1977_v10 }
 0xe0a   :  { %4261 = vrot.lane.b32.xlu1 %v4260_v17, %s6113_s26 }
 0xe7a   :  { %v1981_v35 = vpop.permute.xlu0 %1980 }
 0xe7b   :  { %v1992_v33 = vsel %vm1646_vm15, 0.0, %v1981_v35 }
 0xe7c   :  { %v4262_v60 = vpop.permute.xlu1 %4261  ;;  %v1994_v52 = vsel %vm6144_vm4, %v1992_v33, 0.0  ;;  %vm6145_vm4 = vcmask 785408  }
 0xe7d   :  { %v4264_v15 = vunpack.i.h.bf16 %v4262_v60  ;;  %v4263_v21 = vunpack.i.l.bf16 %v4262_v60  ;;  %v1996_v45 = vsel %vm6095_vm11, %v1994_v52, 0.0  ;;  %vm6149_vm11 = vcmask 261120  }
 0xe7f   :  { %v1989_v32 = vsel %vm6091_vm10, %v4263_v21, %v4264_v15  ;;  %vm6092_vm10 = vcmask 924672  }
 0xe80   :  { %v2000_v20 = vsel %vm6096_vm7, %v1989_v32, 0.0  ;;  %v1998_v7 = vsel %vm6092_vm10, %v1996_v45, %v4263_v21  ;;  %vm6147_vm10 = vcmask 261120   ;;  %vm6150_vm7 = vmmov %vm6149_vm11 }
 0xe81   :  { %v2005_v2 = vpack.c.bf16 %v2000_v20, %v2000_v20  ;;  %v5408_v46 = vpack.c.bf16 %v1998_v7, %v1998_v7 }
 0xe83   :  { %2088 = vrot.lane.b32.xlu1 %v2005_v2, %s6116_s30  ;;  %2080 = vrot.lane.b32.xlu0 %v2005_v2, %s6114_s1 }
 0xe87   :  { %2070 = vrot.lane.b32.xlu1 %v2005_v2, %s6107_s23  ;;  %2060 = vrot.lane.b32.xlu0 %v2005_v2, %s4456_s10 }
 0xe8b   :  { %2050 = vrot.lane.b32.xlu1 %v2005_v2, %s6105_s19  ;;  %2040 = vrot.lane.b32.xlu0 %v2005_v2, %s6121_s4 }
 0xe8f   :  { %2030 = vrot.lane.b32.xlu1 %v2005_v2, %s4476_s22  ;;  %2020 = vrot.lane.b32.xlu0 %v2005_v2, %s6093_s24 }
 0xe93   :  { %2078 = vrot.lane.b32.xlu1 %v5408_v46, %s6114_s1  ;;  %2086 = vrot.lane.b32.xlu0 %v5408_v46, %s6116_s30 }
 0xe97   :  { %2076 = vrot.lane.b32.xlu1 %v5408_v46, %s4470_s3  ;;  %2008 = vrot.lane.b32.xlu0 %v5408_v46, %s4469_s2 }
 0xe9b   :  { %2058 = vrot.lane.b32.xlu1 %v5408_v46, %s4456_s10  ;;  %2068 = vrot.lane.b32.xlu0 %v5408_v46, %s6107_s23 }
 0xe9f   :  { %2056 = vrot.lane.b32.xlu1 %v5408_v46, %s4472_s25  ;;  %2066 = vrot.lane.b32.xlu0 %v5408_v46, %s4424_s7 }
 0xea3   :  { %2038 = vrot.lane.b32.xlu1 %v5408_v46, %s6121_s4  ;;  %2048 = vrot.lane.b32.xlu0 %v5408_v46, %s6105_s19  ;;  %s4491_s19 = smov 29  }
 0xea7   :  { %2036 = vrot.lane.b32.xlu1 %v5408_v46, %s6101_s28  ;;  %2046 = vrot.lane.b32.xlu0 %v5408_v46, %s6103_s29  ;;  %s4490_s28 = smov 27   ;;  %s4494_s29 = smov 63  }
 0xea8   :  { %s3889_s23 = sld [smem:[%s6027_s0 + %s4490_s28]]   ;;  %s4493_s28 = smov 31  }
 0xea9   :  { %s3893_s30 = sld [smem:[%s6027_s0 + %s4493_s28]]  }
 0xeab   :  { %2018 = vrot.lane.b32.xlu1 %v5408_v46, %s6093_s24  ;;  %2028 = vrot.lane.b32.xlu0 %v5408_v46, %s4476_s22  ;;  %s3896_s24 = sld [smem:[%s6027_s0 + %s4483_s20]]   ;;  %s4499_s20 = smov 120  }
 0xeaf   :  { %2016 = vrot.lane.b32.xlu1 %v5408_v46, %s4429_s12  ;;  %2026 = vrot.lane.b32.xlu0 %v5408_v46, %s4430_s13 }
 0xeb3   :  { %2010 = vrot.lane.b32.xlu0 %v2005_v2, %s4469_s2 }
 0xef5   :  { %v2089_v37 = vpop.permute.xlu1 %2088  ;;  %v2081_v39 = vpop.permute.xlu0 %2080 }
 0xef6   :  { %3952 = vmatprep.subr.msk.bf16.mxu1 %vm438_vm9, %v2089_v37  ;;  %v2105_v59 = vrot.slane %v2081_v39, 4 }
 0xef9   :  { %v2071_v47 = vpop.permute.xlu1 %2070  ;;  %v2061_v11 = vpop.permute.xlu0 %2060 }
 0xefa   :  { %v2132_v18 = vsel %vm438_vm9, %v2071_v47, %v2105_v59  ;;  %v2102_v56 = vrot.slane %v2061_v11, 4 }
 0xefd   :  { %v2051_v34 = vpop.permute.xlu1 %2050  ;;  %v2041_v43 = vpop.permute.xlu0 %2040 }
 0xefe   :  { %v2125_v0 = vsel %vm438_vm9, %v2051_v34, %v2102_v56  ;;  %v2099_v1 = vrot.slane %v2041_v43, 4 }
 0xf01   :  { %v2031_v53 = vpop.permute.xlu1 %2030  ;;  %v2021_v57 = vpop.permute.xlu0 %2020 }
 0xf02   :  { %v2118_v48 = vsel %vm438_vm9, %v2031_v53, %v2099_v1  ;;  %v2096_v35 = vrot.slane %v2021_v57, 4 }
 0xf05   :  { %v2079_v26 = vpop.permute.xlu1 %2078  ;;  %v2087_v41 = vpop.permute.xlu0 %2086 }
 0xf06   :  { %v2090_v14 = vsel %vm1716_vm2, %v2087_v41, %v2089_v37  ;;  %v2082_v51 = vsel %vm6111_vm13, %v2079_v26, %v2081_v39  ;;  %vm6164_vm13 = vcmask 400384  }
 0xf09   :  { %v2077_v36 = vpop.permute.xlu1 %2076  ;;  %v2009_v22 = vpop.permute.xlu0 %2008 }
 0xf0a   :  { %v2093_v28 = vsel %vm1750_vm12, %v2009_v22, %v2090_v14  ;;  %v2085_v16 = vsel %vm1750_vm12, %v2077_v36, %v2082_v51  ;;  %v2003_v14 = vld [vmem:[%s3874_s16] sm:$0xff] }
 0xf0b   :  { %v2137_v50 = vsel %vm438_vm9, %v2093_v28, 0  ;;  %v2104_v12 = vrot.slane %v2085_v16, 4 }
 0xf0c   :  { %2149 = vmatpush1.bf16.msra.mxu1 %v2137_v50 }
 0xf0d   :  { %v2059_v61 = vpop.permute.xlu1 %2058  ;;  %2150 = vmatprep.subr.bf16.mxu1 %v2132_v18  ;;  %v2069_v6 = vpop.permute.xlu0 %2068 }
 0xf0e   :  { %v2072_v29 = vsel %vm6110_vm5, %v2069_v6, %v2071_v47  ;;  %v2062_v62 = vsel %vm6109_vm3, %v2059_v61, %v2061_v11  ;;  %v2001_v47 = vld [vmem:[%s3872_s18] sm:$0xf]  ;;  %s4486_s18 = smov 80   ;;  %vm6163_vm3 = vcmask 236544   ;;  %vm2761_vm5 = vcmask 367616  }
 0xf11   :  { %v2057_v40 = vpop.permute.xlu1 %2056  ;;  %v2067_v55 = vpop.permute.xlu0 %2066 }
 0xf12   :  { %v2075_v58 = vsel %vm1750_vm12, %v2067_v55, %v2072_v29  ;;  %v2065_v24 = vsel %vm1750_vm12, %v2057_v40, %v2062_v62  ;;  %v2002_v55 = vld [vmem:[%s3873_s27] sm:$0xff]  ;;  %v4373_v62 = vld [vmem:[%s3896_s24 + $0x10] sm:$0xff]   ;;  %s4487_s27 = smov 16  }
 0xf13   :  { %v2128_v30 = vsel %vm438_vm9, %v2075_v58, %v2104_v12  ;;  %v2101_v4 = vrot.slane %v2065_v24, 4 }
 0xf14   :  { %2151 = vmatpush1.bf16.msra.mxu1 %v2128_v30  ;;  %v4371_v30 = vld [vmem:[%s3896_s24 + $0x20] sm:$0xff]  }
 0xf15   :  { %v2039_v27 = vpop.permute.xlu1 %2038  ;;  %2152 = vmatprep.subr.bf16.mxu1 %v2125_v0  ;;  %v2049_v23 = vpop.permute.xlu0 %2048  ;;  %v4372_v0 = vld [vmem:[%s3896_s24 + $0x18] sm:$0xff]  }
 0xf16   :  { %v2052_v3 = vsel %vm6100_vm14, %v2049_v23, %v2051_v34  ;;  %v2042_v9 = vsel %vm6145_vm4, %v2039_v27, %v2041_v43  ;;  %vm6146_vm4 = vcmask 588800   ;;  %v4374_v27 = vld [vmem:[%s3896_s24 + $0x8] sm:$0xff]   ;;  %v4375_v23 = vld [vmem:[%s3896_s24] sm:$0xff]   ;;  %s4485_s24 = smov 112  }
 0xf19   :  { %v2037_v25 = vpop.permute.xlu1 %2036  ;;  %v2047_v44 = vpop.permute.xlu0 %2046 }
 0xf1a   :  { %v2055_v42 = vsel %vm1750_vm12, %v2047_v44, %v2052_v3  ;;  %v2045_v8 = vsel %vm1750_vm12, %v2037_v25, %v2042_v9 }
 0xf1b   :  { %v2121_v5 = vsel %vm438_vm9, %v2055_v42, %v2101_v4  ;;  %v2098_v10 = vrot.slane %v2045_v8, 4 }
 0xf1c   :  { %2153 = vmatpush1.bf16.msra.mxu1 %v2121_v5 }
 0xf1d   :  { %v2019_v49 = vpop.permute.xlu1 %2018  ;;  %2154 = vmatprep.subr.bf16.mxu1 %v2118_v48  ;;  %v2029_v63 = vpop.permute.xlu0 %2028 }
 0xf1e   :  { %v2032_v17 = vsel %vm6099_vm0, %v2029_v63, %v2031_v53  ;;  %v2022_v21 = vsel %vm6098_vm6, %v2019_v49, %v2021_v57  ;;  %vm2372_vm6 = vcmask 916480   ;;  %vm6153_vm0 = vcmask 785408  }
 0xf1f   :  { %vm6154_vm14 = vmmov %vm6153_vm0 }
 0xf21   :  { %v2017_v60 = vpop.permute.xlu1 %2016  ;;  %v2027_v15 = vpop.permute.xlu0 %2026 }
 0xf22   :  { %v2035_v32 = vsel %vm1750_vm12, %v2027_v15, %v2032_v17  ;;  %v2025_v20 = vsel %vm1750_vm12, %v2017_v60, %v2022_v21 }
 0xf23   :  { %v2114_v2 = vsel %vm438_vm9, %v2035_v32, %v2098_v10  ;;  %v2095_v52 = vrot.slane %v2025_v20, 4 }
 0xf24   :  { %2155 = vmatpush1.bf16.msra.mxu1 %v2114_v2 }
 0xf25   :  { %v2011_v33 = vpop.permute.xlu0 %2010 }
 0xf26   :  { %v2012_v45 = vsel %vm6097_vm1, %v2009_v22, %v2011_v33  ;;  %v2111_v7 = vsel %vm438_vm9, %v2011_v33, %v2096_v35  ;;  %vm6151_vm1 = vcmask 523264  }
 0xf27   :  { %2156 = vmatprep.subr.bf16.mxu1 %v2111_v7  ;;  %v2015_v37 = vsel %vm1750_vm12, %v5408_v46, %v2012_v45 }
 0xf28   :  { %v2107_v39 = vsel %vm438_vm9, %v2015_v37, %v2095_v52  ;;  %v4376_v37 = vld [vmem:[%s5230_s6 + $0x38] sm:$0xff]  }
 0xf29   :  { %2157 = vmatpush1.bf16.msra.mxu1 %v2107_v39  ;;  %4077 = vmatpush3.bf16.msra.mxu0 %v4376_v37  ;;  %v4377_v39 = vld [vmem:[%s5230_s6 + $0x30] sm:$0xff]  }
 0xf2a   :  { %4062 = vmatprep.subr.bf16.mxu1 %v4441_v31  ;;  %4078 = vmatprep.subr.bf16.mxu0 %v4441_v31 }
 0xf2c   :  { %3953 = vmatmul.mubr.msk.bf16.vlgmr.msra.gmra.mxu1 %vm6146_vm4, %v2001_v47  ;;  %vm2238_vm4 = vcmask 392192   ;;  %v4378_v47 = vld [vmem:[%s5230_s6 + $0x28] sm:$0xff]  }
 0xf2d   :  { %4072 = vmatprep.mubr.msk.bf16.mxu1 %vm6131_vm8, %v4441_v31  ;;  %4063 = vmatpush3.bf16.msra.mxu1 %v4371_v30 }
 0xf2e   :  { %4064 = vmatprep.subr.bf16.mxu1 %v4441_v31  ;;  %4079 = vmatpush3.bf16.msra.mxu0 %v4377_v39 }
 0xf2f   :  { %4080 = vmatprep.subr.bf16.mxu0 %v4441_v31 }
 0xf31   :  { %4065 = vmatpush3.bf16.msra.mxu1 %v4372_v0 }
 0xf32   :  { %4066 = vmatprep.subr.bf16.mxu1 %v4441_v31  ;;  %4081 = vmatpush3.bf16.msra.mxu0 %v4378_v47 }
 0xf33   :  { %4082 = vmatprep.subr.bf16.mxu0 %v4441_v31 }
 0xf35   :  { %4067 = vmatpush3.bf16.msra.mxu1 %v4373_v62 }
 0xf36   :  { %4068 = vmatprep.subr.bf16.mxu1 %v4441_v31 }
 0xf39   :  { %4069 = vmatpush3.bf16.msra.mxu1 %v4374_v27 }
 0xf3a   :  { %4070 = vmatprep.subr.bf16.mxu1 %v4441_v31 }
 0xf3d   :  { %4071 = vmatpush3.bf16.msra.mxu1 %v4375_v23 }
 0xf3e   :  { %4096 = vmatprep.subr.bf16.mxu1 %v4441_v31 }
 0xfec   :  { %v2176_v11 = vpop.f32.mrf.mxu1 }
 0xfed   :  { %v2183_v53 = vmul.f32 %v2176_v11, %v5374_v38 }
 0xfee   :  { %v2178_v34 = vpop.f32.mrf.mxu1 }
 0xfef   :  { %v2184_v43 = vmul.f32 %v2178_v34, %v5371_v54 }
 0xff0   :  { %v2180_v57 = vpop.f32.mrf.mxu1 }
 0xff1   :  { %v2185_v46 = vsel %vm6147_vm10, %v2184_v43, 0.0  ;;  %v4381_v43 = vld [vmem:[%s5230_s6 + $0x10] sm:$0xff]  }
 0xff2   :  { %v2181_v26 = vpop.f32.mrf.mxu1  ;;  %v2186_v41 = vadd.f32 %v2185_v46, %v2183_v53 }
 0xff4   :  { %2187 = vadd.xlane.f32.xlu1 %v2186_v41 }
0x1005   :  { %2213 = vperm.xlu1 %4234, %v2003_v14   ;;  %v4382_v14 = vld [vmem:[%s5230_s6 + $0x8] sm:$0xff]  }
0x107d   :  { %v2188_v36 = vpop.xlane.xlu1 %2187 }
0x107e   :  { %v2189_v22 = vmul.f32 0.0078125, %v2188_v36 }
0x1080   :  { %v2190_v59 = vsub.f32 %v2176_v11, %v2189_v22  ;;  %v2191_v28 = vsub.f32 %v2178_v34, %v2189_v22  ;;  %v4379_v11 = vld [vmem:[%s5230_s6 + $0x20] sm:$0xff]   ;;  %v4380_v34 = vld [vmem:[%s5230_s6 + $0x18] sm:$0xff]  }
0x1081   :  { %v2214_v25 = vpop.permute.xlu1 %2213  ;;  %4083 = vmatpush3.bf16.msra.mxu0 %v4379_v11 }
0x1082   :  { %v2192_v50 = vmul.f32 %v2190_v59, %v5374_v38  ;;  %v2193_v18 = vmul.f32 %v2191_v28, %v5371_v54  ;;  %4084 = vmatprep.subr.bf16.mxu0 %v4441_v31 }
0x1084   :  { %v2194_v51 = vmul.f32 %v2192_v50, %v2192_v50  ;;  %v2195_v61 = vmul.f32 %v2193_v18, %v2193_v18 }
0x1085   :  { %4085 = vmatpush3.bf16.msra.mxu0 %v4380_v34 }
0x1086   :  { %v2196_v6 = vsel %vm6147_vm10, %v2195_v61, 0.0  ;;  %vm6148_vm10 = vcmask 523264   ;;  %4086 = vmatprep.subr.bf16.mxu0 %v4441_v31 }
0x1087   :  { %v2197_v16 = vadd.f32 %v2196_v6, %v2194_v51 }
0x1089   :  { %2198 = vadd.xlane.f32.xlu0 %v2197_v16  ;;  %4087 = vmatpush3.bf16.msra.mxu0 %v4381_v43 }
0x108a   :  { %4088 = vmatprep.subr.bf16.mxu0 %v4441_v31 }
0x108d   :  { %4089 = vmatpush3.bf16.msra.mxu0 %v4382_v14 }
0x108e   :  { %4090 = vmatprep.subr.bf16.mxu0 %v4441_v31 }
0x1112   :  { %v2199_v12 = vpop.xlane.xlu0 %2198 }
0x1113   :  { %v2200_v29 = vmul.f32 0.0078125, %v2199_v12 }
0x1115   :  { %v2201_v40 = vadd.f32 1e-05, %v2200_v29 }
0x1117   :  { %4409 = vrsqrt.f32 %v2201_v40 }
0x1124   :  { %v4410_v56 = vpop.eup %4409 }
0x1125   :  { %v2203_v58 = vmul.f32 %v4410_v56, %v2002_v55 }
0x1127   :  { %2206 = vperm.xlu0 %4233, %v2203_v58  }
0x11a2   :  { %v2207_v24 = vpop.permute.xlu0 %2206 }
0x11a3   :  { %v2209_v4 = vmul.f32 %v2207_v24, %v2192_v50  ;;  %v2210_v3 = vmul.f32 %v2207_v24, %v2193_v18  ;;  %v4383_v50 = vld [vmem:[%s5230_s6] sm:$0xff]   ;;  %s4488_s6 = smov 28  }
0x11a4   :  { %4091 = vmatpush3.bf16.msra.mxu0 %v4383_v50  ;;  %s3890_s16 = sld [smem:[%s6027_s0 + %s4488_s6]]   ;;  %s4489_s6 = smov 26  }
0x11a5   :  { %v2216_v44 = vadd.f32 %v2214_v25, %v2209_v4  ;;  %v2217_v1 = vadd.f32 %v2214_v25, %v2210_v3  ;;  %4118 = vmatprep.subr.bf16.mxu0 %v4441_v31 }
0x11a7   :  { %v2218_v42 = vmax.f32 %v2216_v44, 0.0  ;;  %v2219_v5 = vmax.f32 %v2217_v1, 0.0 }
0x11a9   :  { %v2220_v48 = vmul.f32 %v2218_v42, %v5374_v38  ;;  %v2221_v9 = vmul.f32 %v2219_v5, %v5371_v54 }
0x11aa   :  { %v4384_v39 = vld [vmem:[%s3890_s16 + $0x8] sm:$0xff]   ;;  %v4385_v47 = vld [vmem:[%s3890_s16] sm:$0xff]   ;;  %s3888_s16 = sld [smem:[%s6027_s0 + %s4489_s6]]   ;;  %s4492_s6 = smov 30  }
0x11ab   :  { %v4265_v49 = vpack.i.bf16 %v2221_v9, %v2220_v48 }
0x11ad   :  { %4266 = vrot.lane.b32.xlu1 %v4265_v49, %s6112_s21 }
0x121f   :  { %v4267_v63 = vpop.permute.xlu1 %4266 }
0x1220   :  { %v4269_v8 = vunpack.i.h.bf16 %v4267_v63  ;;  %v4268_v10 = vunpack.i.l.bf16 %v4267_v63 }
0x1222   :  { %v2239_v17 = vsel %vm2238_vm4, %v4268_v10, %v4269_v8 }
0x1223   :  { %v2241_v60 = vpack.c.bf16 %v2239_v17, %v2220_v48 }
0x1225   :  { %4073 = vmatmul.mubr.msk.bf16.vlgmr.msra.gmra.mxu1 %vm1750_vm12, %v2241_v60 }
0x1226   :  { %4100 = vmatprep.mubr.msk.bf16.mxu1 %vm6131_vm8, %v4441_v31  ;;  %4097 = vmatpush3.bf16.msra.mxu1 %v4384_v39 }
0x1227   :  { %4098 = vmatprep.subr.bf16.mxu1 %v4441_v31 }
0x122a   :  { %4099 = vmatpush3.bf16.msra.mxu1 %v4385_v47 }
0x122b   :  { %4104 = vmatprep.subr.bf16.mxu1 %v4441_v31 }
0x12e5   :  { %v2309_v15 = vpop.f32.mrf.mxu1 }
0x12e7   :  { %v4074_v21 = vpop.f32.mrf.mxu1 }
0x12e9   :  { %v2312_v32 = vpop.f32.mrf.mxu1 }
0x12ea   :  { %2317 = vrot.lane.b32.xlu0 %v2312_v32, %s4454_s5 }
0x12eb   :  { %v4075_v20 = vpop.f32.mrf.mxu1 }
0x135c   :  { %v2318_v2 = vpop.permute.xlu0 %2317 }
0x135d   :  { %v2320_v35 = vsel %vm6148_vm10, %v2309_v15, %v2318_v2  ;;  %vm2335_vm10 = vcmask 130048  }
0x135e   :  { %2322 = vrot.lane.b32.xlu1 %v2320_v35, %s4485_s24 }
0x13d0   :  { %v2323_v33 = vpop.permute.xlu1 %2322 }
0x13d1   :  { %v2325_v52 = vmax.f32 %v2320_v35, %v2323_v33 }
0x13d3   :  { %2327 = vrot.lane.b32.xlu0 %v2325_v52, %s6121_s4 }
0x1445   :  { %v2328_v45 = vpop.permute.xlu0 %2327 }
0x1446   :  { %v2330_v7 = vmax.f32 %v2325_v52, %v2328_v45 }
0x1448   :  { %2332 = vrot.lane.b32.xlu1 %v2330_v7, %s4486_s18 }
0x14ba   :  { %v2333_v53 = vpop.permute.xlu1 %2332 }
0x14bb   :  { %v2336_v57 = vsel %vm2335_vm10, %v2330_v7, %v2333_v53 }
0x14bc   :  { %2374 = vrot.lane.b32.xlu0 %v2336_v57, %s4485_s24  ;;  %v2342_v46 = vrot.slane %v2336_v57, 2  ;;  %v2346_v26 = vrot.slane %v2336_v57, 3  ;;  %v2338_v41 = vrot.slane %v2336_v57, 1  ;;  %v2350_v59 = vrot.slane %v2336_v57, 4 }
0x14bd   :  { %v2354_v28 = vrot.slane %v2336_v57, 5  ;;  %v2358_v61 = vrot.slane %v2336_v57, 6  ;;  %v2362_v6 = vrot.slane %v2336_v57, 7 }
0x14be   :  { %v4275_v36 = vpack.i.bf16 %v2342_v46, %v2346_v26  ;;  %v4270_v22 = vpack.i.bf16 %v2338_v41, %v2342_v46  ;;  %v4280_v51 = vpack.i.bf16 %v2346_v26, %v2350_v59 }
0x14bf   :  { %v4285_v18 = vpack.i.bf16 %v2350_v59, %v2354_v28  ;;  %v4295_v16 = vpack.i.bf16 %v2358_v61, %v2362_v6  ;;  %v4290_v12 = vpack.i.bf16 %v2354_v28, %v2358_v61 }
0x14c0   :  { %4276 = vrot.lane.b32.xlu0 %v4275_v36, %s4479_s9  ;;  %4271 = vrot.lane.b32.xlu1 %v4270_v22, %s4487_s27 }
0x14c4   :  { %4286 = vrot.lane.b32.xlu0 %v4285_v18, %s4454_s5  ;;  %4281 = vrot.lane.b32.xlu1 %v4280_v51, %s6112_s21 }
0x14c8   :  { %4296 = vrot.lane.b32.xlu0 %v4295_v16, %s6121_s4  ;;  %4291 = vrot.lane.b32.xlu1 %v4290_v12, %s4486_s18 }
0x14cc   :  { %2363 = vrot.lane.b32.xlu1 %v2362_v6, %s4485_s24 }
0x152e   :  { %v2375_v29 = vpop.permute.xlu0 %2374 }
0x152f   :  { %v2396_v30 = vsel %vm2335_vm10, %v2375_v29, %v2338_v41 }
0x1532   :  { %v4277_v40 = vpop.permute.xlu0 %4276  ;;  %v4272_v55 = vpop.permute.xlu1 %4271 }
0x1533   :  { %v4274_v56 = vunpack.i.h.bf16 %v4272_v55  ;;  %v4273_v58 = vunpack.i.l.bf16 %v4272_v55  ;;  %v4279_v0 = vunpack.i.h.bf16 %v4277_v40  ;;  %v4278_v62 = vunpack.i.l.bf16 %v4277_v40 }
0x1535   :  { %v2366_v27 = vsel %vm2335_vm10, %v2336_v57, %v4274_v56  ;;  %v2397_v23 = vsel %vm6149_vm11, %v2396_v30, %v4273_v58  ;;  %vm6152_vm11 = vmmov %vm6151_vm1  ;;  %v2513_v56 = vld [vmem:[%s3888_s16] sm:$0x1]  ;;  %s3892_s16 = sld [smem:[%s6027_s0 + %s4492_s6]]   ;;  %s4498_s6 = smov 102  }
0x1536   :  { %v4287_v24 = vpop.permute.xlu0 %4286  ;;  %v4282_v4 = vpop.permute.xlu1 %4281  ;;  %v2367_v42 = vsel %vm6150_vm7, %v2366_v27, %v4279_v0  ;;  %v2398_v5 = vsel %vm2238_vm4, %v2397_v23, %v4278_v62  ;;  %vm2406_vm7 = vcmask 1040384   ;;  %v3968_v62 = vld [vmem:[%s3889_s23] ss:$0 sm:$0xff]  ;;  %s3891_s23 = sld [smem:[%s6027_s0 + %s4491_s19]]  }
0x1537   :  { %v4284_v3 = vunpack.i.h.bf16 %v4282_v4  ;;  %v4283_v25 = vunpack.i.l.bf16 %v4282_v4  ;;  %v4289_v44 = vunpack.i.h.bf16 %v4287_v24  ;;  %v4288_v1 = vunpack.i.l.bf16 %v4287_v24 }
0x1539   :  { %v2368_v48 = vsel %vm2238_vm4, %v2367_v42, %v4284_v3  ;;  %v2399_v9 = vsel %vm6151_vm1, %v2398_v5, %v4283_v25 }
0x153a   :  { %v4297_v49 = vpop.permute.xlu0 %4296  ;;  %v4292_v63 = vpop.permute.xlu1 %4291  ;;  %v2400_v15 = vsel %vm1750_vm12, %v2399_v9, %v4288_v1  ;;  %v2369_v21 = vsel %vm6152_vm11, %v2368_v48, %v4289_v44  ;;  %vm2682_vm11 = vcmask 1042432  }
0x153b   :  { %v4299_v8 = vunpack.i.h.bf16 %v4297_v49  ;;  %v4298_v10 = vunpack.i.l.bf16 %v4297_v49  ;;  %v4294_v17 = vunpack.i.h.bf16 %v4292_v63  ;;  %v4293_v60 = vunpack.i.l.bf16 %v4292_v63 }
0x153d   :  { %v2401_v32 = vsel %vm6153_vm0, %v2400_v15, %v4293_v60  ;;  %v2370_v20 = vsel %vm1750_vm12, %v2369_v21, %v4294_v17  ;;  %vm6156_vm0 = vcmask 1041408  }
0x153e   :  { %v2364_v2 = vpop.permute.xlu1 %2363  ;;  %v2371_v35 = vsel %vm6154_vm14, %v2370_v20, %v4299_v8  ;;  %v2402_v33 = vsel %vm2372_vm6, %v2401_v32, %v4298_v10  ;;  %vm6155_vm14 = vcmask 261120   ;;  %vm6157_vm1 = vmmov %vm6156_vm0 }
0x153f   :  { %v2373_v52 = vsel %vm2372_vm6, %v2371_v35, %v2364_v2  ;;  %v2404_v45 = vrot.slane %v2402_v33, 7  ;;  %vm2515_vm6 = vcmask 254976  }
0x1541   :  { %v2407_v7 = vsel %vm2406_vm7, %v2373_v52, %v2404_v45 }
0x1542   :  { %v2408_v37 = vpack.c.bf16 %v2407_v7, %v2407_v7  ;;  %v2613_v7 = vld [vmem:[%s3891_s23] sm:$0x1]  ;;  %s4497_s23 = smov 115  }
0x1544   :  { %4093 = vmatmul.mubr.bf16.vlgmr.msra.gmra.mxu0 %v2408_v37 }
0x1545   :  { %4128 = vmatprep.mubr.msk.bf16.mxu0 %vm6131_vm8, %v4441_v31 }
0x1604   :  { %v2507_v11 = vpop.f32.mrf.mxu0 }
0x1605   :  { %v2516_v34 = vsel %vm2515_vm6, %v2507_v11, 0.0 }
0x1606   :  { %v2517_v43 = vrot.slane %v2516_v34, 4  ;;  %v4094_v53 = vpop.f32.mrf.mxu0 }
0x1608   :  { %v2518_v57 = vadd.f32 %v2517_v43, %v2516_v34  ;;  %v2510_v46 = vpop.f32.mrf.mxu0 }
0x160a   :  { %v2519_v26 = vrot.slane %v2518_v57, 2  ;;  %v4095_v41 = vpop.f32.mrf.mxu0 }
0x160c   :  { %v2520_v14 = vadd.f32 %v2519_v26, %v2518_v57 }
0x160e   :  { %v2521_v36 = vrot.slane %v2520_v14, 1 }
0x1610   :  { %v2522_v22 = vadd.f32 %v2521_v36, %v2520_v14 }
0x1612   :  { %v2524_v59 = vmul.f32 0.5, %v2522_v22 }
0x1614   :  { %v2525_v28 = vsub.f32 %v2507_v11, %v2524_v59  ;;  %v3972_v11 = vld [vmem:[%s3892_s16] ss:$0 sm:$0xff]  ;;  %s4501_s16 = smov 122  }
0x1616   :  { %v2526_v50 = vmul.f32 %v2525_v28, %v2525_v28 }
0x1618   :  { %v2527_v18 = vsel %vm2515_vm6, %v2526_v50, 0.0  ;;  %vm6158_vm6 = vmmov %vm6156_vm0 }
0x1619   :  { %v2528_v51 = vrot.slane %v2527_v18, 4 }
0x161b   :  { %v2529_v61 = vadd.f32 %v2528_v51, %v2527_v18 }
0x161d   :  { %v2530_v6 = vrot.slane %v2529_v61, 2 }
0x161f   :  { %v2531_v16 = vadd.f32 %v2530_v6, %v2529_v61 }
0x1621   :  { %v2532_v12 = vrot.slane %v2531_v16, 1 }
0x1623   :  { %v2533_v29 = vadd.f32 %v2532_v12, %v2531_v16 }
0x1625   :  { %v2534_v40 = vmul.f32 0.5, %v2533_v29 }
0x1627   :  { %v2535_v55 = vadd.f32 1e-05, %v2534_v40 }
0x1629   :  { %4411 = vrsqrt.f32 %v2535_v55 }
0x1636   :  { %v4412_v58 = vpop.eup %4411 }
0x1637   :  { %v2537_v30 = vmul.f32 %v4412_v58, %v2513_v56 }
0x1639   :  { %v2542_v0 = vrot.slane %v2537_v30, %v4787_v13 }
0x163b   :  { %v2544_v27 = vmul.f32 %v2542_v0, %v2525_v28 }
0x163d   :  { %v2551_v23 = vadd.f32 %v3968_v62, %v2544_v27 }
0x163f   :  { %v2552_v24 = vmax.f32 %v2551_v23, 0.0 }
0x1641   :  { %v2553_v4 = vpack.c.bf16 %v2552_v24, %v2552_v24 }
0x1643   :  { %4101 = vmatmul.mubr.msk.bf16.vlgmr.msra.gmra.mxu1 %vm6155_vm14, %v2553_v4  ;;  %vm2685_vm14 = vcmask 1044480  }
0x1644   :  { %4114 = vmatprep.mubr.msk.bf16.mxu1 %vm6131_vm8, %v4441_v31 }
0x1703   :  { %v2607_v3 = vpop.f32.mrf.mxu1 }
0x1704   :  { %v2615_v25 = vsel %vm6156_vm0, %v2607_v3, 0.0  ;;  %vm2688_vm0 = vcmask 1046528  }
0x1705   :  { %v2616_v44 = vrot.slane %v2615_v25, 4  ;;  %v4102_v1 = vpop.f32.mrf.mxu1 }
0x1707   :  { %v2617_v42 = vadd.f32 %v2616_v44, %v2615_v25  ;;  %v2610_v5 = vpop.f32.mrf.mxu1 }
0x1709   :  { %v2618_v48 = vrot.slane %v2617_v42, 2  ;;  %v4103_v9 = vpop.f32.mrf.mxu1 }
0x170b   :  { %v2619_v49 = vadd.f32 %v2618_v48, %v2617_v42 }
0x170d   :  { %v2620_v63 = vrot.slane %v2619_v49, 1 }
0x170f   :  { %v2621_v8 = vadd.f32 %v2620_v63, %v2619_v49 }
0x1711   :  { %v2622_v10 = vmul.f32 0.5, %v2621_v8 }
0x1713   :  { %v2623_v17 = vsub.f32 %v2607_v3, %v2622_v10 }
0x1715   :  { %v2624_v60 = vmul.f32 %v2623_v17, %v2623_v17 }
0x1717   :  { %v2625_v15 = vsel %vm6157_vm1, %v2624_v60, 0.0  ;;  %vm6159_vm1 = vcmask 1045504  }
0x1718   :  { %v2626_v21 = vrot.slane %v2625_v15, 4 }
0x171a   :  { %v2627_v32 = vadd.f32 %v2626_v21, %v2625_v15 }
0x171c   :  { %v2628_v20 = vrot.slane %v2627_v32, 2 }
0x171e   :  { %v2629_v2 = vadd.f32 %v2628_v20, %v2627_v32 }
0x1720   :  { %v2630_v35 = vrot.slane %v2629_v2, 1 }
0x1722   :  { %v2631_v33 = vadd.f32 %v2630_v35, %v2629_v2 }
0x1724   :  { %v2632_v52 = vmul.f32 0.5, %v2631_v33 }
0x1726   :  { %v2633_v45 = vadd.f32 1e-05, %v2632_v52 }
0x1728   :  { %4413 = vrsqrt.f32 %v2633_v45 }
0x1735   :  { %v4414_v37 = vpop.eup %4413 }
0x1736   :  { %v2635_v39 = vmul.f32 %v4414_v37, %v2613_v7 }
0x1738   :  { %v2640_v47 = vrot.slane %v2635_v39, %v4787_v13 }
0x173a   :  { %v2642_v34 = vmul.f32 %v2640_v47, %v2623_v17 }
0x173c   :  { %v2649_v43 = vadd.f32 %v3972_v11, %v2642_v34 }
0x173e   :  { %v2650_v53 = vmax.f32 %v2649_v43, 0.0 }
0x1740   :  { %2691 = vrot.lane.b32.xlu0 %v2650_v53, %s4485_s24  ;;  %v2652_v57 = vrot.slane %v2650_v53, 7  ;;  %v2656_v46 = vrot.slane %v2650_v53, 6  ;;  %v2660_v26 = vrot.slane %v2650_v53, 5  ;;  %v2664_v41 = vrot.slane %v2650_v53, 4 }
0x1741   :  { %v2668_v14 = vrot.slane %v2650_v53, 3  ;;  %v2672_v13 = vrot.slane %v2650_v53, 2  ;;  %v2676_v36 = vrot.slane %v2650_v53, 1 }
0x1742   :  { %2694 = vrot.lane.b32.xlu1 %v2652_v57, %s6121_s4 }
0x1744   :  { %2697 = vrot.lane.b32.xlu0 %v2656_v46, %s4486_s18 }
0x1746   :  { %2700 = vrot.lane.b32.xlu1 %v2660_v26, %s4454_s5 }
0x1748   :  { %2703 = vrot.lane.b32.xlu0 %v2664_v41, %s6112_s21 }
0x174a   :  { %2706 = vrot.lane.b32.xlu1 %v2668_v14, %s4479_s9 }
0x174c   :  { %2709 = vrot.lane.b32.xlu0 %v2672_v13, %s4487_s27 }
0x174e   :  { %2653 = vrot.lane.b32.xlu1 %v2652_v57, %s4485_s24 }
0x1750   :  { %2657 = vrot.lane.b32.xlu0 %v2656_v46, %s6121_s4 }
0x1752   :  { %2661 = vrot.lane.b32.xlu1 %v2660_v26, %s4486_s18  ;;  %s6161_s18 = smov 13  }
0x1753   :  { %s3875_s1 = sld [smem:[%s6027_s0 + %s6161_s18]]  }
0x1754   :  { %2665 = vrot.lane.b32.xlu0 %v2664_v41, %s4454_s5 }
0x1756   :  { %2669 = vrot.lane.b32.xlu1 %v2668_v14, %s6112_s21  ;;  %s6243_s21 = smov 105  }
0x1758   :  { %2673 = vrot.lane.b32.xlu0 %v2672_v13, %s4479_s9  ;;  %s6160_s9 = smov 100  }
0x17b2   :  { %v2692_v22 = vpop.permute.xlu0 %2691 }
0x17b3   :  { %v2712_v59 = vsel %vm2406_vm7, %v2676_v36, %v2692_v22 }
0x17b4   :  { %v2695_v28 = vpop.permute.xlu1 %2694 }
0x17b5   :  { %v2713_v50 = vsel %vm6158_vm6, %v2712_v59, %v2695_v28 }
0x17b6   :  { %v2698_v18 = vpop.permute.xlu0 %2697 }
0x17b7   :  { %v2714_v51 = vsel %vm2682_vm11, %v2713_v50, %v2698_v18 }
0x17b8   :  { %v2701_v61 = vpop.permute.xlu1 %2700 }
0x17b9   :  { %v2715_v6 = vsel %vm438_vm9, %v2714_v51, %v2701_v61 }
0x17ba   :  { %v2704_v16 = vpop.permute.xlu0 %2703 }
0x17bb   :  { %v2716_v12 = vsel %vm2685_vm14, %v2715_v6, %v2704_v16 }
0x17bc   :  { %v2707_v29 = vpop.permute.xlu1 %2706 }
0x17bd   :  { %v2717_v40 = vsel %vm6159_vm1, %v2716_v12, %v2707_v29 }
0x17be   :  { %v2710_v55 = vpop.permute.xlu0 %2709 }
0x17bf   :  { %v2718_v56 = vsel %vm2688_vm0, %v2717_v40, %v2710_v55 }
0x17c0   :  { %v4300_v58 = vpack.i.bf16 %v2718_v56, %v2676_v36  ;;  %v2654_v30 = vpop.permute.xlu1 %2653 }
0x17c1   :  { %v2680_v0 = vsel %vm2406_vm7, %v2650_v53, %v2654_v30  ;;  %vm2771_vm7 = vcmask 31744  }
0x17c2   :  { %v2658_v62 = vpop.permute.xlu0 %2657  ;;  %4301 = vrot.lane.b32.xlu1 %v4300_v58, %s4487_s27 }
0x17c3   :  { %v2681_v27 = vsel %vm6158_vm6, %v2680_v0, %v2658_v62  ;;  %vm2754_vm6 = vcmask 187392  }
0x17c4   :  { %v2662_v23 = vpop.permute.xlu1 %2661 }
0x17c5   :  { %v2683_v24 = vsel %vm2682_vm11, %v2681_v27, %v2662_v23  ;;  %vm2749_vm11 = vcmask 105472  }
0x17c6   :  { %v2666_v4 = vpop.permute.xlu0 %2665 }
0x17c7   :  { %v2684_v3 = vsel %vm438_vm9, %v2683_v24, %v2666_v4 }
0x17c8   :  { %v2670_v25 = vpop.permute.xlu1 %2669 }
0x17c9   :  { %v2686_v44 = vsel %vm2685_vm14, %v2684_v3, %v2670_v25  ;;  %vm2751_vm14 = vcmask 138240  }
0x17ca   :  { %v2674_v1 = vpop.permute.xlu0 %2673 }
0x17cb   :  { %v2687_v9 = vsel %vm6159_vm1, %v2686_v44, %v2674_v1  ;;  %vm2756_vm1 = vcmask 203776  }
0x1834   :  { %v4302_v42 = vpop.permute.xlu1 %4301 }
0x1835   :  { %v4304_v5 = vunpack.i.h.bf16 %v4302_v42  ;;  %v4303_v48 = vunpack.i.l.bf16 %v4302_v42 }
0x1837   :  { %v2689_v49 = vsel %vm2688_vm0, %v2687_v9, %v4303_v48  ;;  %vm6162_vm0 = vcmask 154624  }
0x1838   :  { %v2723_v63 = vsel %vm2335_vm10, %v2689_v49, %v4304_v5  ;;  %vm2746_vm10 = vcmask 56320  }
0x1839   :  { %2725 = vrot.lane.b32.xlu1 %v2723_v63, %s4478_s11  ;;  %2768 = vrot.lane.b32.xlu0 %v2723_v63, %s6160_s9 }
0x183d   :  { %2731 = vrot.lane.b32.xlu1 %v2723_v63, %s6118_s17  ;;  %2728 = vrot.lane.b32.xlu0 %v2723_v63, %s4480_s8  ;;  %s4495_s8 = smov 114   ;;  %s6198_s17 = smov 98  }
0x1841   :  { %2737 = vrot.lane.b32.xlu1 %v2723_v63, %s4491_s19  ;;  %2734 = vrot.lane.b32.xlu0 %v2723_v63, %s6161_s18  ;;  %s4496_s19 = smov 101  }
0x1845   :  { %2743 = vrot.lane.b32.xlu1 %v2723_v63, %s6113_s26  ;;  %2740 = vrot.lane.b32.xlu0 %v2723_v63, %s4493_s28  ;;  %s6195_s26 = smov 90  }
0x18ab   :  { %v2769_v8 = vpop.permute.xlu0 %2768  ;;  %v2726_v17 = vpop.permute.xlu1 %2725 }
0x18ac   :  { %v2772_v10 = vsel %vm2771_vm7, %v2769_v8, 0.0  ;;  %v2747_v60 = vsel %vm2746_vm10, 0.0, %v2726_v17  ;;  %vm2759_vm7 = vcmask 310272   ;;  %v5690_v17 = vld [vmem:[%s3893_s30] ss:$0 sm:$0xff]  ;;  %s4503_s30 = smov 14  }
0x18ad   :  { %2774 = vrot.lane.b32.xlu0 %v2772_v10, %s4494_s29  ;;  %v2748_v21 = vsel %vm1646_vm15, %v2747_v60, 0.0  ;;  %s4502_s29 = smov 113   ;;  %v2780_v10 = vld [vmem:[%s3875_s1] sm:$0xf]  ;;  %s6179_s1 = smov 15  }
0x18ae   :  { %s3877_s4 = sld [smem:[%s6027_s0 + %s6179_s1]]  }
0x18af   :  { %v2729_v15 = vpop.permute.xlu0 %2728  ;;  %v2732_v2 = vpop.permute.xlu1 %2731  ;;  %s3876_s14 = sld [smem:[%s6027_s0 + %s4503_s30]]  }
0x18b0   :  { %v2750_v32 = vsel %vm2749_vm11, %v2748_v21, %v2729_v15  ;;  %vm6165_vm11 = vcmask 416768  }
0x18b1   :  { %v2752_v20 = vsel %vm2751_vm14, %v2750_v32, 0.0  ;;  %vm6166_vm14 = vcmask 449536  }
0x18b2   :  { %v2753_v35 = vsel %vm6162_vm0, %v2752_v20, %v2732_v2  ;;  %vm6167_vm0 = vcmask 465920  }
0x18b3   :  { %v2755_v33 = vsel %vm2754_vm6, %v2753_v35, 0.0  ;;  %v2735_v52 = vpop.permute.xlu0 %2734  ;;  %v2738_v39 = vpop.permute.xlu1 %2737  ;;  %vm2777_vm6 = vcmask 515072  }
0x18b4   :  { %v2757_v45 = vsel %vm2756_vm1, %v2755_v33, %v2735_v52  ;;  %vm6168_vm1 = vcmask 498688   ;;  %v2782_v35 = vld [vmem:[%s3877_s4] sm:$0xff]  ;;  %s6180_s4 = smov 21  }
0x18b5   :  { %v2758_v7 = vsel %vm6163_vm3, %v2757_v45, 0.0  ;;  %vm6169_vm3 = vcmask 195584  }
0x18b6   :  { %v2760_v37 = vsel %vm2759_vm7, %v2758_v7, 0.0 }
0x18b7   :  { %v2762_v47 = vsel %vm2761_vm5, %v2760_v37, %v2738_v39  ;;  %v2741_v34 = vpop.permute.xlu0 %2740  ;;  %v2744_v57 = vpop.permute.xlu1 %2743 }
0x18b8   :  { %v2763_v11 = vsel %vm6164_vm13, %v2762_v47, 0.0  ;;  %vm6170_vm13 = vmmov %vm6169_vm3 }
0x18b9   :  { %v2764_v43 = vsel %vm6165_vm11, %v2763_v11, %v2741_v34  ;;  %vm6171_vm11 = vmmov %vm6169_vm3 }
0x18ba   :  { %v2765_v53 = vsel %vm6166_vm14, %v2764_v43, 0.0  ;;  %vm6172_vm14 = vmmov %vm6169_vm3  ;;  %v2781_v43 = vld [vmem:[%s3876_s14] sm:$0xff]  ;;  %s6196_s14 = smov 88  }
0x18bb   :  { %v2766_v46 = vsel %vm6167_vm0, %v2765_v53, %v2744_v57  ;;  %vm6173_vm0 = vmmov %vm6169_vm3 }
0x18bc   :  { %v2767_v26 = vsel %vm6168_vm1, %v2766_v46, 0.0  ;;  %vm6175_vm1 = vmmov %vm6173_vm0 }
0x191f   :  { %v2775_v41 = vpop.permute.xlu0 %2774 }
0x1920   :  { %v2778_v14 = vsel %vm2777_vm6, %v2767_v26, %v2775_v41  ;;  %vm6174_vm6 = vmmov %vm6173_vm0 }
0x1921   :  { %v5625_v13 = vpack.c.bf16 %v2778_v14, %v2778_v14 }
0x1923   :  { %2839 = vrot.lane.b32.xlu0 %v5625_v13, %s6160_s9  ;;  %2785 = vrot.lane.b32.xlu1 %v5625_v13, %s4495_s8 }
0x1927   :  { %2834 = vrot.lane.b32.xlu0 %v5625_v13, %s4496_s19  ;;  %2832 = vrot.lane.b32.xlu1 %v5625_v13, %s4497_s23 }
0x192b   :  { %2827 = vrot.lane.b32.xlu0 %v5625_v13, %s4498_s6  ;;  %2825 = vrot.lane.b32.xlu1 %v5625_v13, %s4472_s25 }
0x192f   :  { %2820 = vrot.lane.b32.xlu0 %v5625_v13, %s4469_s2  ;;  %2818 = vrot.lane.b32.xlu1 %v5625_v13, %s4499_s20 }
0x1933   :  { %2813 = vrot.lane.b32.xlu0 %v5625_v13, %s4470_s3  ;;  %2811 = vrot.lane.b32.xlu1 %v5625_v13, %s4500_s15 }
0x1937   :  { %2806 = vrot.lane.b32.xlu0 %v5625_v13, %s4424_s7  ;;  %2804 = vrot.lane.b32.xlu1 %v5625_v13, %s4501_s16 }
0x193b   :  { %2799 = vrot.lane.b32.xlu0 %v5625_v13, %s4485_s24  ;;  %2797 = vrot.lane.b32.xlu1 %v5625_v13, %s4430_s13 }
0x193f   :  { %2792 = vrot.lane.b32.xlu0 %v5625_v13, %s4502_s29  ;;  %2790 = vrot.lane.b32.xlu1 %v5625_v13, %s4429_s12 }
0x1995   :  { %v2840_v36 = vpop.permute.xlu0 %2839  ;;  %v2786_v22 = vpop.permute.xlu1 %2785 }
0x1996   :  { %v2842_v59 = vsel %vm6169_vm3, %v2786_v22, %v2840_v36  ;;  %vm6176_vm3 = vmmov %vm6173_vm0 }
0x1997   :  { %v2866_v28 = vsel %vm438_vm9, %v2842_v59, 0 }
0x1998   :  { %4105 = vmatpush3.bf16.msra.mxu1 %v2866_v28 }
0x1999   :  { %v2835_v50 = vpop.permute.xlu0 %2834  ;;  %v2833_v18 = vpop.permute.xlu1 %2832  ;;  %4106 = vmatprep.subr.bf16.mxu1 %v4441_v31 }
0x199a   :  { %v2838_v51 = vsel %vm6170_vm13, %v2833_v18, %v2835_v50  ;;  %vm6177_vm13 = vmmov %vm6173_vm0 }
0x199b   :  { %v2850_v61 = vrot.slane %v2838_v51, 4  ;;  %v2789_v63 = vsel %vm6177_vm13, %v5625_v13, %v2786_v22  ;;  %vm6189_vm13 = vmmov %vm6173_vm0 }
0x199d   :  { %v2828_v6 = vpop.permute.xlu0 %2827  ;;  %v2826_v16 = vpop.permute.xlu1 %2825 }
0x199e   :  { %v2831_v12 = vsel %vm6171_vm11, %v2826_v16, %v2828_v6  ;;  %vm6178_vm11 = vcmask 588800  }
0x199f   :  { %v2861_v29 = vsel %vm438_vm9, %v2831_v12, %v2850_v61 }
0x19a0   :  { %4107 = vmatpush3.bf16.msra.mxu1 %v2861_v29 }
0x19a1   :  { %v2821_v40 = vpop.permute.xlu0 %2820  ;;  %v2819_v55 = vpop.permute.xlu1 %2818  ;;  %4108 = vmatprep.subr.bf16.mxu1 %v4441_v31 }
0x19a2   :  { %v2824_v56 = vsel %vm6172_vm14, %v2819_v55, %v2821_v40  ;;  %vm6182_vm14 = vcmask 564224  }
0x19a3   :  { %v2848_v58 = vrot.slane %v2824_v56, 4 }
0x19a5   :  { %v2814_v30 = vpop.permute.xlu0 %2813  ;;  %v2812_v0 = vpop.permute.xlu1 %2811 }
0x19a6   :  { %v2817_v62 = vsel %vm6173_vm0, %v2812_v0, %v2814_v30 }
0x19a7   :  { %v2858_v27 = vsel %vm438_vm9, %v2817_v62, %v2848_v58 }
0x19a8   :  { %4109 = vmatpush3.bf16.msra.mxu1 %v2858_v27 }
0x19a9   :  { %v2807_v23 = vpop.permute.xlu0 %2806  ;;  %v2805_v24 = vpop.permute.xlu1 %2804  ;;  %4110 = vmatprep.subr.bf16.mxu1 %v4441_v31 }
0x19aa   :  { %v2810_v4 = vsel %vm6174_vm6, %v2805_v24, %v2807_v23  ;;  %vm6186_vm6 = vmmov %vm6173_vm0 }
0x19ab   :  { %v2846_v3 = vrot.slane %v2810_v4, 4 }
0x19ad   :  { %v2800_v25 = vpop.permute.xlu0 %2799  ;;  %v2798_v44 = vpop.permute.xlu1 %2797 }
0x19ae   :  { %v2803_v1 = vsel %vm6175_vm1, %v2798_v44, %v2800_v25  ;;  %vm6187_vm1 = vmmov %vm6173_vm0 }
0x19af   :  { %v2855_v42 = vsel %vm438_vm9, %v2803_v1, %v2846_v3 }
0x19b0   :  { %4111 = vmatpush3.bf16.msra.mxu1 %v2855_v42 }
0x19b1   :  { %v2793_v5 = vpop.permute.xlu0 %2792  ;;  %v2791_v48 = vpop.permute.xlu1 %2790  ;;  %4112 = vmatprep.subr.bf16.mxu1 %v4441_v31 }
0x19b2   :  { %v2796_v9 = vsel %vm6176_vm3, %v2791_v48, %v2793_v5  ;;  %vm6188_vm3 = vmmov %vm6173_vm0 }
0x19b3   :  { %v2844_v49 = vrot.slane %v2796_v9, 4 }
0x19b5   :  { %v2852_v8 = vsel %vm438_vm9, %v2789_v63, %v2844_v49 }
0x19b6   :  { %4113 = vmatpush3.bf16.msra.mxu1 %v2852_v8 }
0x19b7   :  { %4132 = vmatprep.subr.bf16.mxu1 %v4441_v31 }
0x19b9   :  { %4115 = vmatmul.mubr.msk.bf16.vlgmr.msra.gmra.mxu1 %vm6178_vm11, %v2780_v10  ;;  %vm6190_vm11 = vmmov %vm6173_vm0 }
0x19ba   :  { %4136 = vmatprep.mubr.msk.bf16.mxu1 %vm6131_vm8, %v4441_v31  ;;  %vm6181_vm8 = vcmask 252928  }
0x1a79   :  { %v2902_v60 = vpop.f32.mrf.mxu1 }
0x1a7a   :  { %v2914_v15 = vmul.f32 %v5690_v17, %v2902_v60 }
0x1a7b   :  { %v4116_v21 = vpop.f32.mrf.mxu1 }
0x1a7c   :  { %v2915_v32 = vsel %vm2238_vm4, %v2914_v15, 0.0 }
0x1a7d   :  { %2916 = vadd.xlane.f32.xlu1 %v2915_v32  ;;  %v2905_v20 = vpop.f32.mrf.mxu1 }
0x1a7f   :  { %v4117_v2 = vpop.f32.mrf.mxu1 }
0x1a8e   :  { %2937 = vperm.xlu1 %4234, %v2782_v35  }
0x1b06   :  { %v2917_v33 = vpop.xlane.xlu1 %2916 }
0x1b07   :  { %v2918_v52 = vmul.f32 0.03125, %v2917_v33 }
0x1b09   :  { %v2919_v45 = vsub.f32 %v2902_v60, %v2918_v52 }
0x1b0a   :  { %v2938_v41 = vpop.permute.xlu1 %2937 }
0x1b0b   :  { %v2920_v7 = vmul.f32 %v5690_v17, %v2919_v45 }
0x1b0d   :  { %v2921_v37 = vmul.f32 %v2920_v7, %v2920_v7 }
0x1b0f   :  { %v2922_v39 = vsel %vm2238_vm4, %v2921_v37, 0.0 }
0x1b10   :  { %2923 = vadd.xlane.f32.xlu0 %v2922_v39 }
0x1b99   :  { %v2924_v47 = vpop.xlane.xlu0 %2923 }
0x1b9a   :  { %v2925_v11 = vmul.f32 0.03125, %v2924_v47 }
0x1b9c   :  { %v2926_v34 = vadd.f32 1e-05, %v2925_v11 }
0x1b9e   :  { %4415 = vrsqrt.f32 %v2926_v34 }
0x1bab   :  { %v4416_v53 = vpop.eup %4415 }
0x1bac   :  { %v2928_v57 = vmul.f32 %v4416_v53, %v2781_v43 }
0x1bae   :  { %2931 = vperm.xlu0 %4233, %v2928_v57  }
0x1c29   :  { %v2932_v46 = vpop.permute.xlu0 %2931 }
0x1c2a   :  { %v2934_v26 = vmul.f32 %v2932_v46, %v2920_v7 }
0x1c2c   :  { %v2940_v14 = vadd.f32 %v2938_v41, %v2934_v26 }
0x1c2e   :  { %v2941_v13 = vmax.f32 %v2940_v14, 0.0 }
0x1c30   :  { %v2942_v36 = vmul.f32 %v5690_v17, %v2941_v13 }
0x1c32   :  { %2947 = vrot.lane.b32.xlu0 %v2942_v36, %s6180_s4  ;;  %2944 = vrot.lane.b32.xlu1 %v2942_v36, %s4478_s11  ;;  %s6197_s11 = smov 92  }
0x1ca4   :  { %v2945_v22 = vpop.permute.xlu1 %2944  ;;  %v2948_v50 = vpop.permute.xlu0 %2947 }
0x1ca5   :  { %v2950_v59 = vsel %vm2746_vm10, 0.0, %v2945_v22  ;;  %vm6184_vm10 = vmmov %vm6173_vm0 }
0x1ca6   :  { %v2951_v28 = vsel %vm6181_vm8, %v2950_v59, 0.0  ;;  %vm6191_vm8 = vcmask 588800  }
0x1ca7   :  { %v2952_v18 = vsel %vm2759_vm7, %v2951_v28, 0.0  ;;  %vm6185_vm7 = vmmov %vm6173_vm0 }
0x1ca8   :  { %v2953_v51 = vsel %vm2761_vm5, %v2952_v18, %v2948_v50  ;;  %vm6183_vm5 = vmmov %vm6173_vm0 }
0x1ca9   :  { %v2954_v61 = vsel %vm6182_vm14, %v2953_v51, 0.0  ;;  %vm6193_vm14 = vmmov %vm6173_vm0 }
0x1caa   :  { %v2958_v6 = vpack.c.bf16 %v2954_v61, %v2954_v61 }
0x1cac   :  { %3014 = vrot.lane.b32.xlu0 %v2958_v6, %s6160_s9  ;;  %2960 = vrot.lane.b32.xlu1 %v2958_v6, %s4495_s8  ;;  %s6202_s8 = smov 19  }
0x1cb0   :  { %3009 = vrot.lane.b32.xlu0 %v2958_v6, %s4496_s19  ;;  %3007 = vrot.lane.b32.xlu1 %v2958_v6, %s4497_s23  ;;  %s6203_s19 = smov 25  }
0x1cb4   :  { %3002 = vrot.lane.b32.xlu0 %v2958_v6, %s4498_s6  ;;  %3000 = vrot.lane.b32.xlu1 %v2958_v6, %s4472_s25  ;;  %s6192_s6 = smov 17  }
0x1cb8   :  { %2995 = vrot.lane.b32.xlu0 %v2958_v6, %s4469_s2  ;;  %2993 = vrot.lane.b32.xlu1 %v2958_v6, %s4499_s20  ;;  %s6239_s20 = smov 86  }
0x1cbc   :  { %2988 = vrot.lane.b32.xlu0 %v2958_v6, %s4470_s3  ;;  %2986 = vrot.lane.b32.xlu1 %v2958_v6, %s4500_s15  ;;  %s6240_s15 = smov 95  }
0x1cc0   :  { %2981 = vrot.lane.b32.xlu0 %v2958_v6, %s4424_s7  ;;  %2979 = vrot.lane.b32.xlu1 %v2958_v6, %s4501_s16  ;;  %s3879_s16 = sld [smem:[%s6027_s0 + %s6192_s6]]  }
0x1cc4   :  { %2974 = vrot.lane.b32.xlu0 %v2958_v6, %s4485_s24  ;;  %2972 = vrot.lane.b32.xlu1 %v2958_v6, %s4430_s13  ;;  %s3878_s24 = sld [smem:[%s6027_s0 + %s4487_s27]]   ;;  %s4504_s27 = smov 18  }
0x1cc5   :  { %s3880_s23 = sld [smem:[%s6027_s0 + %s4504_s27]]   ;;  %s6200_s27 = smov 8  }
0x1cc6   :  { %v2956_v22 = vld [vmem:[%s3879_s16] sm:$0xff]  ;;  %s6241_s16 = smov 117  }
0x1cc8   :  { %2967 = vrot.lane.b32.xlu0 %v2958_v6, %s4502_s29  ;;  %2965 = vrot.lane.b32.xlu1 %v2958_v6, %s4429_s12  ;;  %s4505_s29 = smov 36  }
0x1cc9   :  { %s3898_s28 = sld [smem:[%s6027_s0 + %s4505_s29]]   ;;  %s6242_s29 = smov 118  }
0x1cca   :  { %v2955_v52 = vld [vmem:[%s3878_s24] sm:$0xf]  ;;  %s6199_s24 = smov 96  }
0x1ccb   :  { %v2957_v34 = vld [vmem:[%s3880_s23] sm:$0xff]  ;;  %s6204_s23 = smov 23  }
0x1ccf   :  { %v4386_v50 = vld [vmem:[%s3898_s28 + $0x8] ss:$0 sps:$4 sm:$0xff]   ;;  %v4387_v51 = vld [vmem:[%s3898_s28] sm:$0xff]  }
0x1cd0   :  { %v3133_v18 = vsel %vm438_vm9, %v4386_v50, 0 }
0x1cd1   :  { %4133 = vmatpush3.bf16.msra.mxu1 %v3133_v18 }
0x1cd2   :  { %4134 = vmatprep.subr.bf16.mxu1 %v4441_v31 }
0x1cd5   :  { %4135 = vmatpush3.bf16.msra.mxu1 %v4387_v51 }
0x1d1e   :  { %v3015_v16 = vpop.permute.xlu0 %3014  ;;  %v2961_v12 = vpop.permute.xlu1 %2960 }
0x1d1f   :  { %v3017_v29 = vsel %vm6183_vm5, %v2961_v12, %v3015_v16  ;;  %v2964_v35 = vsel %vm6190_vm11, %v2958_v6, %v2961_v12  ;;  %vm6194_vm5 = vcmask 523264   ;;  %vm6212_vm11 = vcmask 506880  }
0x1d20   :  { %v3041_v40 = vsel %vm438_vm9, %v3017_v29, 0 }
0x1d21   :  { %4119 = vmatpush3.bf16.msra.mxu0 %v3041_v40 }
0x1d22   :  { %v3010_v55 = vpop.permute.xlu0 %3009  ;;  %v3008_v56 = vpop.permute.xlu1 %3007  ;;  %4120 = vmatprep.subr.bf16.mxu0 %v4441_v31 }
0x1d23   :  { %v3013_v58 = vsel %vm6184_vm10, %v3008_v56, %v3010_v55  ;;  %vm6205_vm10 = vmmov %vm6173_vm0 }
0x1d24   :  { %v3025_v30 = vrot.slane %v3013_v58, 4 }
0x1d26   :  { %v3003_v0 = vpop.permute.xlu0 %3002  ;;  %v3001_v62 = vpop.permute.xlu1 %3000 }
0x1d27   :  { %v3006_v27 = vsel %vm6185_vm7, %v3001_v62, %v3003_v0  ;;  %vm6206_vm7 = vcmask 261120  }
0x1d28   :  { %v3036_v23 = vsel %vm438_vm9, %v3006_v27, %v3025_v30 }
0x1d29   :  { %4121 = vmatpush3.bf16.msra.mxu0 %v3036_v23 }
0x1d2a   :  { %v2996_v24 = vpop.permute.xlu0 %2995  ;;  %v2994_v4 = vpop.permute.xlu1 %2993  ;;  %4122 = vmatprep.subr.bf16.mxu0 %v4441_v31 }
0x1d2b   :  { %v2999_v3 = vsel %vm6173_vm0, %v2994_v4, %v2996_v24  ;;  %vm6207_vm0 = vcmask 277504  }
0x1d2c   :  { %v3023_v25 = vrot.slane %v2999_v3, 4 }
0x1d2e   :  { %v2989_v44 = vpop.permute.xlu0 %2988  ;;  %v2987_v1 = vpop.permute.xlu1 %2986 }
0x1d2f   :  { %v2992_v42 = vsel %vm6186_vm6, %v2987_v1, %v2989_v44  ;;  %vm6208_vm6 = vcmask 343040  }
0x1d30   :  { %v3033_v5 = vsel %vm438_vm9, %v2992_v42, %v3023_v25 }
0x1d31   :  { %4123 = vmatpush3.bf16.msra.mxu0 %v3033_v5 }
0x1d32   :  { %v2982_v48 = vpop.permute.xlu0 %2981  ;;  %v2980_v9 = vpop.permute.xlu1 %2979  ;;  %4124 = vmatprep.subr.bf16.mxu0 %v4441_v31 }
0x1d33   :  { %v2985_v49 = vsel %vm6187_vm1, %v2980_v9, %v2982_v48  ;;  %vm6209_vm1 = vcmask 359424  }
0x1d34   :  { %v3021_v63 = vrot.slane %v2985_v49, 4 }
0x1d36   :  { %v2975_v8 = vpop.permute.xlu0 %2974  ;;  %v2973_v10 = vpop.permute.xlu1 %2972 }
0x1d37   :  { %v2978_v60 = vsel %vm6188_vm3, %v2973_v10, %v2975_v8  ;;  %vm6210_vm3 = vcmask 424960  }
0x1d38   :  { %v3030_v15 = vsel %vm438_vm9, %v2978_v60, %v3021_v63 }
0x1d39   :  { %4125 = vmatpush3.bf16.msra.mxu0 %v3030_v15 }
0x1d3a   :  { %v2968_v21 = vpop.permute.xlu0 %2967  ;;  %v2966_v32 = vpop.permute.xlu1 %2965  ;;  %4126 = vmatprep.subr.bf16.mxu0 %v4441_v31 }
0x1d3b   :  { %v2971_v20 = vsel %vm6189_vm13, %v2966_v32, %v2968_v21  ;;  %vm6211_vm13 = vcmask 441344  }
0x1d3c   :  { %v3019_v2 = vrot.slane %v2971_v20, 4 }
0x1d3e   :  { %v3027_v33 = vsel %vm438_vm9, %v2964_v35, %v3019_v2 }
0x1d3f   :  { %4127 = vmatpush3.bf16.msra.mxu0 %v3027_v33 }
0x1d42   :  { %4129 = vmatmul.mubr.msk.bf16.vlgmr.msra.gmra.mxu0 %vm6191_vm8, %v2955_v52  ;;  %vm6213_vm8 = vmmov %vm6194_vm5 }
0x1d43   :  { %3681 = vmatprep.mubr.bf16.mxu0 %v4436_v19 }
0x1e02   :  { %v3077_v45 = vpop.f32.mrf.mxu0 }
0x1e03   :  { %v3083_v7 = vmul.f32 %v5690_v17, %v3077_v45 }
0x1e04   :  { %v4130_v37 = vpop.f32.mrf.mxu0 }
0x1e05   :  { %v3084_v39 = vsel %vm2238_vm4, %v3083_v7, 0.0 }
0x1e06   :  { %3085 = vadd.xlane.f32.xlu1 %v3084_v39  ;;  %v3080_v47 = vpop.f32.mrf.mxu0 }
0x1e08   :  { %v4131_v11 = vpop.f32.mrf.mxu0 }
0x1e17   :  { %3106 = vperm.xlu1 %4234, %v2957_v34  }
0x1e8f   :  { %v3086_v43 = vpop.xlane.xlu1 %3085 }
0x1e90   :  { %v3087_v53 = vmul.f32 0.03125, %v3086_v43 }
0x1e92   :  { %v3088_v57 = vsub.f32 %v3077_v45, %v3087_v53 }
0x1e93   :  { %v3107_v16 = vpop.permute.xlu1 %3106 }
0x1e94   :  { %v3089_v46 = vmul.f32 %v5690_v17, %v3088_v57 }
0x1e96   :  { %v3090_v26 = vmul.f32 %v3089_v46, %v3089_v46 }
0x1e98   :  { %v3091_v41 = vsel %vm2238_vm4, %v3090_v26, 0.0 }
0x1e99   :  { %3092 = vadd.xlane.f32.xlu0 %v3091_v41 }
0x1f22   :  { %v3093_v14 = vpop.xlane.xlu0 %3092 }
0x1f23   :  { %v3094_v13 = vmul.f32 0.03125, %v3093_v14 }
0x1f25   :  { %v3095_v36 = vadd.f32 1e-05, %v3094_v13 }
0x1f27   :  { %4417 = vrsqrt.f32 %v3095_v36 }
0x1f34   :  { %v4418_v59 = vpop.eup %4417 }
0x1f35   :  { %v3097_v28 = vmul.f32 %v4418_v59, %v2956_v22 }
0x1f37   :  { %3100 = vperm.xlu0 %4233, %v3097_v28  }
0x1fb2   :  { %v3101_v61 = vpop.permute.xlu0 %3100 }
0x1fb3   :  { %v3103_v6 = vmul.f32 %v3101_v61, %v3089_v46 }
0x1fb5   :  { %v3109_v12 = vadd.f32 %v3107_v16, %v3103_v6 }
0x1fb7   :  { %v3110_v29 = vmax.f32 %v3109_v12, 0.0 }
0x1fb9   :  { %v3111_v40 = vmul.f32 %v5690_v17, %v3110_v29 }
0x1fbb   :  { %3116 = vrot.lane.b32.xlu1 %v3111_v40, %s4476_s22 }
0x202d   :  { %v3117_v55 = vpop.permute.xlu1 %3116 }
0x202e   :  { %v3119_v56 = vpack.c.bf16 %v3117_v55, %v3111_v40 }
0x2030   :  { %4137 = vmatmul.mubr.msk.bf16.vlgmr.msra.gmra.mxu1 %vm6193_vm14, %v3119_v56  ;;  %vm6214_vm14 = vcmask 588800  }
0x2031   :  { %3443 = vmatprep.mubr.bf16.mxu1 %v4436_v19 }
0x20f0   :  { %v3169_v58 = vpop.f32.mrf.mxu1 }
0x20f2   :  { %v4138_v30 = vpop.f32.mrf.mxu1 }
0x20f4   :  { %v3172_v0 = vpop.f32.mrf.mxu1 }
0x20f5   :  { %3177 = vrot.lane.b32.xlu0 %v3172_v0, %s4454_s5  ;;  %s6201_s5 = smov 11  }
0x20f6   :  { %v4139_v31 = vpop.f32.mrf.mxu1 }
0x2167   :  { %v3178_v62 = vpop.permute.xlu0 %3177 }
0x2168   :  { %v3180_v27 = vsel %vm6194_vm5, %v3169_v58, %v3178_v62  ;;  %vm6215_vm5 = vcmask 605184  }
0x2169   :  { %3224 = vrot.lane.b32.xlu0 %v3180_v27, %s6195_s26  ;;  %3221 = vrot.lane.b32.xlu1 %v3180_v27, %s6196_s14  ;;  %s3881_s26 = sld [smem:[%s6027_s0 + %s6202_s8]]  }
0x216d   :  { %3230 = vrot.lane.b32.xlu0 %v3180_v27, %s4456_s10  ;;  %3227 = vrot.lane.b32.xlu1 %v3180_v27, %s6197_s11 }
0x2171   :  { %3236 = vrot.lane.b32.xlu0 %v3180_v27, %s6198_s17  ;;  %3233 = vrot.lane.b32.xlu1 %v3180_v27, %s6199_s24  ;;  %s3883_s17 = sld [smem:[%s6027_s0 + %s6180_s4]]  }
0x2175   :  { %3256 = vrot.lane.b32.xlu0 %v3180_v27, %s6200_s27  ;;  %3239 = vrot.lane.b32.xlu1 %v3180_v27, %s6160_s9  ;;  %s6219_s9 = smov 55   ;;  %s4506_s27 = smov 20  }
0x2179   :  { %3185 = vrot.lane.b32.xlu0 %v3180_v27, %s6161_s18  ;;  %3182 = vrot.lane.b32.xlu1 %v3180_v27, %s6201_s5  ;;  %s6220_s18 = smov 89  }
0x217d   :  { %3191 = vrot.lane.b32.xlu0 %v3180_v27, %s6192_s6  ;;  %3188 = vrot.lane.b32.xlu1 %v3180_v27, %s6179_s1  ;;  %s6237_s1 = smov 84   ;;  %s6238_s6 = smov 85  }
0x2181   :  { %3197 = vrot.lane.b32.xlu0 %v3180_v27, %s6180_s4  ;;  %3194 = vrot.lane.b32.xlu1 %v3180_v27, %s6202_s8  ;;  %s6255_s4 = smov 33  }
0x2185   :  { %3203 = vrot.lane.b32.xlu0 %v3180_v27, %s6203_s19  ;;  %3200 = vrot.lane.b32.xlu1 %v3180_v27, %s6204_s23 }
0x21db   :  { %v3225_v17 = vpop.permute.xlu0 %3224  ;;  %v3222_v23 = vpop.permute.xlu1 %3221 }
0x21dc   :  { %v3242_v24 = vsel %vm6205_vm10, 0.0, %v3222_v23  ;;  %vm6216_vm10 = vcmask 670720  }
0x21dd   :  { %v3243_v4 = vsel %vm6206_vm7, %v3242_v24, 0.0  ;;  %vm6217_vm7 = vcmask 64512  }
0x21de   :  { %v3244_v3 = vsel %vm6207_vm0, %v3243_v4, %v3225_v17  ;;  %vm6218_vm0 = vcmask 752640  }
0x21df   :  { %v3231_v25 = vpop.permute.xlu0 %3230  ;;  %v3245_v44 = vsel %vm6208_vm6, %v3244_v3, 0.0  ;;  %v3228_v1 = vpop.permute.xlu1 %3227  ;;  %vm6221_vm6 = vcmask 154624  }
0x21e0   :  { %v3246_v42 = vsel %vm6209_vm1, %v3245_v44, %v3228_v1  ;;  %vm6222_vm1 = vcmask 171008  }
0x21e1   :  { %v3247_v5 = vsel %vm6210_vm3, %v3246_v42, 0.0  ;;  %vm6223_vm3 = vcmask 236544  }
0x21e2   :  { %v3248_v48 = vsel %vm6211_vm13, %v3247_v5, %v3231_v25  ;;  %vm6224_vm13 = vcmask 252928  }
0x21e3   :  { %v3237_v9 = vpop.permute.xlu0 %3236  ;;  %v3249_v49 = vsel %vm6212_vm11, %v3248_v48, 0.0  ;;  %v3234_v63 = vpop.permute.xlu1 %3233  ;;  %vm6225_vm11 = vcmask 318464  }
0x21e4   :  { %v3250_v8 = vsel %vm6213_vm8, %v3249_v49, %v3234_v63  ;;  %vm6226_vm8 = vcmask 334848  }
0x21e5   :  { %v3251_v10 = vsel %vm6214_vm14, %v3250_v8, 0.0  ;;  %vm6227_vm14 = vcmask 400384  }
0x21e6   :  { %v3252_v60 = vsel %vm6215_vm5, %v3251_v10, %v3237_v9  ;;  %vm6228_vm5 = vcmask 416768  }
0x21e7   :  { %v3257_v15 = vpop.permute.xlu0 %3256  ;;  %v3253_v21 = vsel %vm6216_vm10, %v3252_v60, 0.0  ;;  %v3240_v32 = vpop.permute.xlu1 %3239  ;;  %vm6229_vm10 = vcmask 482304  }
0x21e8   :  { %v3259_v20 = vsel %vm6217_vm7, %v3257_v15, 0.0  ;;  %v3254_v2 = vsel %vm1716_vm2, %v3253_v21, %v3240_v32  ;;  %vm6230_vm7 = vcmask 498688  }
0x21e9   :  { %v3255_v35 = vsel %vm6218_vm0, %v3254_v2, 0.0  ;;  %3265 = vrot.lane.b32.xlu0 %v3259_v20, %s6219_s9  ;;  %vm6231_vm0 = vcmask 564224   ;;  %s3882_s9 = sld [smem:[%s6027_s0 + %s4506_s27]]  }
0x21ea   :  { %3261 = vrot.lane.b32.xlu1 %v3255_v35, %s6220_s18  ;;  %s3885_s18 = sld [smem:[%s6027_s0 + %s6204_s23]]   ;;  %s6270_s23 = smov 48  }
0x21eb   :  { %v3183_v33 = vpop.permute.xlu1 %3182  ;;  %v3186_v7 = vpop.permute.xlu0 %3185 }
0x21ec   :  { %v3206_v52 = vsel %vm1646_vm15, 0.0, %v3183_v33 }
0x21ed   :  { %v3207_v45 = vsel %vm6221_vm6, %v3206_v52, 0.0  ;;  %vm6232_vm6 = vcmask 580608  }
0x21ee   :  { %v3208_v37 = vsel %vm6222_vm1, %v3207_v45, %v3186_v7  ;;  %vm6233_vm1 = vcmask 646144  }
0x21ef   :  { %v3209_v39 = vsel %vm6223_vm3, %v3208_v37, 0.0  ;;  %v3189_v47 = vpop.permute.xlu1 %3188  ;;  %v3192_v43 = vpop.permute.xlu0 %3191  ;;  %vm6234_vm3 = vcmask 662528  }
0x21f0   :  { %v3210_v11 = vsel %vm6224_vm13, %v3209_v39, %v3189_v47  ;;  %vm6235_vm13 = vcmask 728064  }
0x21f1   :  { %v3211_v34 = vsel %vm6225_vm11, %v3210_v11, 0.0  ;;  %vm6236_vm11 = vcmask 449536  }
0x21f2   :  { %v3212_v53 = vsel %vm6226_vm8, %v3211_v34, %v3192_v43  ;;  %vm6244_vm8 = vcmask 695296  }
0x21f3   :  { %v3213_v57 = vsel %vm6227_vm14, %v3212_v53, 0.0  ;;  %v3195_v46 = vpop.permute.xlu1 %3194  ;;  %v3198_v14 = vpop.permute.xlu0 %3197  ;;  %vm6245_vm14 = vcmask 703488  }
0x21f4   :  { %v3214_v26 = vsel %vm6228_vm5, %v3213_v57, %v3195_v46  ;;  %vm6246_vm5 = vcmask 769024  }
0x21f5   :  { %v3215_v41 = vsel %vm6229_vm10, %v3214_v26, 0.0  ;;  %vm6247_vm10 = vcmask 777216  }
0x21f6   :  { %v3216_v13 = vsel %vm6230_vm7, %v3215_v41, %v3198_v14  ;;  %vm6248_vm7 = vcmask 785408  }
0x21f7   :  { %v3217_v36 = vsel %vm6231_vm0, %v3216_v13, 0.0  ;;  %v3201_v22 = vpop.permute.xlu1 %3200  ;;  %v3204_v28 = vpop.permute.xlu0 %3203  ;;  %vm6249_vm0 = vcmask 850944  }
0x21f8   :  { %v3218_v59 = vsel %vm6232_vm6, %v3217_v36, %v3201_v22  ;;  %vm6250_vm6 = vcmask 859136  }
0x21f9   :  { %v3219_v50 = vsel %vm6233_vm1, %v3218_v59, 0.0  ;;  %vm6251_vm1 = vcmask 867328  }
0x21fa   :  { %v3220_v51 = vsel %vm6234_vm3, %v3219_v50, %v3204_v28  ;;  %vm6252_vm3 = vcmask 588800  }
0x225b   :  { %v3266_v18 = vpop.permute.xlu0 %3265 }
0x225c   :  { %v3262_v61 = vpop.permute.xlu1 %3261 }
0x225d   :  { %v3268_v6 = vsel %vm6235_vm13, %v3220_v51, %v3262_v61  ;;  %v3269_v16 = vsel %vm6236_vm11, %v3262_v61, %v3266_v18  ;;  %vm6253_vm13 = vcmask 261120  }
0x225e   :  { %v5823_v12 = vpack.c.bf16 %v3268_v6, %v3268_v6  ;;  %v3274_v29 = vpack.c.bf16 %v3269_v16, %v3269_v16  ;;  %vm6254_vm11 = vmmov %vm6253_vm13 }
0x2260   :  { %3357 = vrot.lane.b32.xlu0 %v3274_v29, %s6237_s1  ;;  %3355 = vrot.lane.b32.xlu1 %v5823_v12, %s6237_s1 }
0x2264   :  { %3347 = vrot.lane.b32.xlu0 %v5823_v12, %s6238_s6  ;;  %3277 = vrot.lane.b32.xlu1 %v5823_v12, %s4469_s2 }
0x2268   :  { %3345 = vrot.lane.b32.xlu0 %v5823_v12, %s4470_s3  ;;  %3349 = vrot.lane.b32.xlu1 %v3274_v29, %s6238_s6 }
0x226c   :  { %3339 = vrot.lane.b32.xlu0 %v3274_v29, %s6239_s20  ;;  %3337 = vrot.lane.b32.xlu1 %v5823_v12, %s6239_s20 }
0x2270   :  { %3327 = vrot.lane.b32.xlu0 %v5823_v12, %s4456_s10  ;;  %3335 = vrot.lane.b32.xlu1 %v5823_v12, %s4424_s7 }
0x2274   :  { %3325 = vrot.lane.b32.xlu0 %v5823_v12, %s4472_s25  ;;  %3329 = vrot.lane.b32.xlu1 %v3274_v29, %s4456_s10 }
0x2278   :  { %3319 = vrot.lane.b32.xlu0 %v3274_v29, %s6240_s15  ;;  %3317 = vrot.lane.b32.xlu1 %v5823_v12, %s6240_s15 }
0x227c   :  { %3307 = vrot.lane.b32.xlu0 %v5823_v12, %s6199_s24  ;;  %3315 = vrot.lane.b32.xlu1 %v5823_v12, %s6241_s16 }
0x2280   :  { %3305 = vrot.lane.b32.xlu0 %v5823_v12, %s6242_s29  ;;  %3309 = vrot.lane.b32.xlu1 %v3274_v29, %s6199_s24 }
0x2284   :  { %3299 = vrot.lane.b32.xlu0 %v3274_v29, %s4476_s22  ;;  %3297 = vrot.lane.b32.xlu1 %v5823_v12, %s4476_s22 }
0x2288   :  { %3287 = vrot.lane.b32.xlu0 %v5823_v12, %s6243_s21  ;;  %3295 = vrot.lane.b32.xlu1 %v5823_v12, %s4430_s13 }
0x228c   :  { %3285 = vrot.lane.b32.xlu0 %v5823_v12, %s4429_s12  ;;  %3289 = vrot.lane.b32.xlu1 %v3274_v29, %s6243_s21 }
0x2290   :  { %3279 = vrot.lane.b32.xlu1 %v3274_v29, %s4469_s2 }
0x22d2   :  { %v3358_v40 = vpop.permute.xlu0 %3357  ;;  %v3356_v55 = vpop.permute.xlu1 %3355 }
0x22d3   :  { %3979 = vmatprep.subr.msk.bf16.mxu1 %vm438_vm9, %v3358_v40  ;;  %v3359_v56 = vsel %vm1716_vm2, %v3356_v55, %v3358_v40  ;;  %v3270_v40 = vld [vmem:[%s3881_s26] sm:$0xf] }
0x22d6   :  { %v3348_v58 = vpop.permute.xlu0 %3347  ;;  %v3278_v30 = vpop.permute.xlu1 %3277 }
0x22d7   :  { %v3362_v0 = vsel %vm1750_vm12, %v3278_v30, %v3359_v56 }
0x22d8   :  { %v3406_v31 = vsel %vm438_vm9, %v3362_v0, 0 }
0x22d9   :  { %3418 = vmatpush1.bf16.msra.mxu1 %v3406_v31 }
0x22da   :  { %v3346_v62 = vpop.permute.xlu0 %3345  ;;  %v3350_v27 = vpop.permute.xlu1 %3349 }
0x22db   :  { %v3351_v17 = vsel %vm6244_vm8, %v3348_v58, %v3350_v27  ;;  %v3374_v23 = vrot.slane %v3350_v27, 4  ;;  %vm6256_vm8 = vcmask 269312  }
0x22dc   :  { %v3354_v3 = vsel %vm1750_vm12, %v3346_v62, %v3351_v17 }
0x22dd   :  { %v3373_v44 = vrot.slane %v3354_v3, 4 }
0x22de   :  { %v3340_v24 = vpop.permute.xlu0 %3339  ;;  %v3338_v4 = vpop.permute.xlu1 %3337 }
0x22df   :  { %v3401_v25 = vsel %vm438_vm9, %v3340_v24, %v3374_v23  ;;  %v3341_v1 = vsel %vm6245_vm14, %v3338_v4, %v3340_v24  ;;  %vm6257_vm14 = vcmask 531456  }
0x22e0   :  { %3419 = vmatprep.subr.bf16.mxu1 %v3401_v25 }
0x22e2   :  { %v3328_v42 = vpop.permute.xlu0 %3327  ;;  %v3336_v5 = vpop.permute.xlu1 %3335 }
0x22e3   :  { %v3344_v48 = vsel %vm1750_vm12, %v3336_v5, %v3341_v1 }
0x22e4   :  { %v3397_v9 = vsel %vm438_vm9, %v3344_v48, %v3373_v44 }
0x22e5   :  { %3420 = vmatpush1.bf16.msra.mxu1 %v3397_v9 }
0x22e6   :  { %v3326_v49 = vpop.permute.xlu0 %3325  ;;  %v3330_v63 = vpop.permute.xlu1 %3329 }
0x22e7   :  { %v3331_v8 = vsel %vm6246_vm5, %v3328_v42, %v3330_v63  ;;  %v3371_v10 = vrot.slane %v3330_v63, 4  ;;  %v3272_v42 = vld [vmem:[%s3883_s17] sm:$0xff]  ;;  %vm6258_vm5 = vcmask 744448  }
0x22e8   :  { %v3334_v21 = vsel %vm1750_vm12, %v3326_v49, %v3331_v8  ;;  %v3271_v49 = vld [vmem:[%s3882_s9] sm:$0xff] }
0x22e9   :  { %v3370_v20 = vrot.slane %v3334_v21, 4 }
0x22ea   :  { %v3320_v60 = vpop.permute.xlu0 %3319  ;;  %v3318_v15 = vpop.permute.xlu1 %3317 }
0x22eb   :  { %v3394_v32 = vsel %vm438_vm9, %v3320_v60, %v3371_v10  ;;  %v3321_v2 = vsel %vm6247_vm10, %v3318_v15, %v3320_v60  ;;  %vm6259_vm10 = vcmask 834560  }
0x22ec   :  { %3421 = vmatprep.subr.bf16.mxu1 %v3394_v32 }
0x22ee   :  { %v3308_v35 = vpop.permute.xlu0 %3307  ;;  %v3316_v33 = vpop.permute.xlu1 %3315 }
0x22ef   :  { %v3324_v52 = vsel %vm1750_vm12, %v3316_v33, %v3321_v2 }
0x22f0   :  { %v3390_v45 = vsel %vm438_vm9, %v3324_v52, %v3370_v20 }
0x22f1   :  { %3422 = vmatpush1.bf16.msra.mxu1 %v3390_v45 }
0x22f2   :  { %v3306_v7 = vpop.permute.xlu0 %3305  ;;  %v3310_v37 = vpop.permute.xlu1 %3309 }
0x22f3   :  { %v3311_v39 = vsel %vm6248_vm7, %v3308_v35, %v3310_v37  ;;  %v3368_v47 = vrot.slane %v3310_v37, 4  ;;  %vm6260_vm7 = vcmask 924672  }
0x22f4   :  { %v3314_v43 = vsel %vm1750_vm12, %v3306_v7, %v3311_v39 }
0x22f5   :  { %v3367_v57 = vrot.slane %v3314_v43, 4 }
0x22f6   :  { %v3300_v11 = vpop.permute.xlu0 %3299  ;;  %v3298_v34 = vpop.permute.xlu1 %3297 }
0x22f7   :  { %v3387_v53 = vsel %vm438_vm9, %v3300_v11, %v3368_v47  ;;  %v3301_v46 = vsel %vm6249_vm0, %v3298_v34, %v3300_v11  ;;  %vm6262_vm0 = vcmask 703488  }
0x22f8   :  { %3423 = vmatprep.subr.bf16.mxu1 %v3387_v53 }
0x22fa   :  { %v3288_v26 = vpop.permute.xlu0 %3287  ;;  %v3296_v41 = vpop.permute.xlu1 %3295 }
0x22fb   :  { %v3304_v14 = vsel %vm1750_vm12, %v3296_v41, %v3301_v46 }
0x22fc   :  { %v3383_v13 = vsel %vm438_vm9, %v3304_v14, %v3367_v57 }
0x22fd   :  { %3424 = vmatpush1.bf16.msra.mxu1 %v3383_v13 }
0x22fe   :  { %v3286_v36 = vpop.permute.xlu0 %3285  ;;  %v3290_v22 = vpop.permute.xlu1 %3289 }
0x22ff   :  { %v3291_v59 = vsel %vm6250_vm6, %v3288_v26, %v3290_v22  ;;  %v3365_v50 = vrot.slane %v3290_v22, 4  ;;  %vm6264_vm6 = vcmask 777216  }
0x2300   :  { %v3294_v28 = vsel %vm1750_vm12, %v3286_v36, %v3291_v59 }
0x2301   :  { %v3364_v51 = vrot.slane %v3294_v28, 4 }
0x2302   :  { %v3280_v18 = vpop.permute.xlu1 %3279 }
0x2303   :  { %v3281_v61 = vsel %vm6251_vm1, %v3278_v30, %v3280_v18  ;;  %v3380_v6 = vsel %vm438_vm9, %v3280_v18, %v3365_v50  ;;  %vm6265_vm1 = vcmask 785408  }
0x2304   :  { %v3284_v16 = vsel %vm1750_vm12, %v5823_v12, %v3281_v61  ;;  %3425 = vmatprep.subr.bf16.mxu1 %v3380_v6 }
0x2305   :  { %v3376_v29 = vsel %vm438_vm9, %v3284_v16, %v3364_v51 }
0x2306   :  { %3426 = vmatpush1.bf16.msra.mxu1 %v3376_v29 }
0x2309   :  { %3980 = vmatmul.mubr.msk.bf16.vlgmr.msra.gmra.mxu1 %vm6252_vm3, %v3270_v40  ;;  %vm6266_vm3 = vcmask 850944  }
0x230a   :  { %3839 = vmatprep.mubr.bf16.mxu1 %v4436_v19 }
0x23c9   :  { %v3445_v55 = vpop.f32.mrf.mxu1 }
0x23ca   :  { %v3452_v30 = vmul.f32 %v3445_v55, %v5374_v38 }
0x23cb   :  { %v3447_v56 = vpop.f32.mrf.mxu1 }
0x23cc   :  { %v3453_v58 = vmul.f32 %v3447_v56, %v5371_v54 }
0x23cd   :  { %v3449_v0 = vpop.f32.mrf.mxu1 }
0x23ce   :  { %v3454_v31 = vsel %vm6253_vm13, %v3453_v58, 0.0  ;;  %vm6267_vm13 = vcmask 859136  }
0x23cf   :  { %v3450_v62 = vpop.f32.mrf.mxu1  ;;  %v3455_v12 = vadd.f32 %v3454_v31, %v3452_v30 }
0x23d1   :  { %3456 = vadd.xlane.f32.xlu0 %v3455_v12 }
0x245a   :  { %v3457_v27 = vpop.xlane.xlu0 %3456 }
0x245b   :  { %v3458_v17 = vmul.f32 0.0078125, %v3457_v27 }
0x245d   :  { %v3459_v23 = vsub.f32 %v3445_v55, %v3458_v17  ;;  %v3460_v24 = vsub.f32 %v3447_v56, %v3458_v17 }
0x245f   :  { %v3461_v4 = vmul.f32 %v3459_v23, %v5374_v38  ;;  %v3462_v19 = vmul.f32 %v3460_v24, %v5371_v54 }
0x2461   :  { %v3464_v3 = vmul.f32 %v3462_v19, %v3462_v19  ;;  %v3463_v25 = vmul.f32 %v3461_v4, %v3461_v4 }
0x2463   :  { %v3465_v44 = vsel %vm6254_vm11, %v3464_v3, 0.0  ;;  %vm6268_vm11 = vcmask 867328  }
0x2464   :  { %v3466_v1 = vadd.f32 %v3465_v44, %v3463_v25 }
0x2466   :  { %3467 = vadd.xlane.f32.xlu1 %v3466_v1 }
0x2477   :  { %3482 = vperm.xlu1 %4234, %v3272_v42  }
0x24ef   :  { %v3468_v5 = vpop.xlane.xlu1 %3467 }
0x24f0   :  { %v3469_v48 = vmul.f32 0.0078125, %v3468_v5 }
0x24f2   :  { %v3470_v9 = vadd.f32 1e-05, %v3469_v48 }
0x24f3   :  { %v3483_v21 = vpop.permute.xlu1 %3482 }
0x24f4   :  { %4419 = vrsqrt.f32 %v3470_v9 }
0x2501   :  { %v4420_v63 = vpop.eup %4419 }
0x2502   :  { %v3472_v8 = vmul.f32 %v4420_v63, %v3271_v49 }
0x2504   :  { %3475 = vperm.xlu0 %4233, %v3472_v8  }
0x257f   :  { %v3476_v10 = vpop.permute.xlu0 %3475 }
0x2580   :  { %v3478_v60 = vmul.f32 %v3476_v10, %v3461_v4  ;;  %v3479_v15 = vmul.f32 %v3476_v10, %v3462_v19 }
0x2582   :  { %v3485_v32 = vadd.f32 %v3483_v21, %v3478_v60  ;;  %v3486_v20 = vadd.f32 %v3483_v21, %v3479_v15 }
0x2584   :  { %v3487_v2 = vmax.f32 %v3485_v32, 0.0  ;;  %v3488_v35 = vmax.f32 %v3486_v20, 0.0 }
0x2586   :  { %v3489_v33 = vmul.f32 %v3487_v2, %v5374_v38  ;;  %v3490_v52 = vmul.f32 %v3488_v35, %v5371_v54 }
0x2588   :  { %3492 = vrot.lane.b32.xlu0 %v3489_v33, %s6201_s5  ;;  %v4305_v45 = vpack.i.bf16 %v3490_v52, %v3489_v33 }
0x258a   :  { %4306 = vrot.lane.b32.xlu1 %v4305_v45, %s6255_s4 }
0x25fa   :  { %v3493_v43 = vpop.permute.xlu0 %3492 }
0x25fb   :  { %v3503_v53 = vsel %vm1646_vm15, 0.0, %v3493_v43  ;;  %vm6261_vm15 = vcmask 695296  }
0x25fc   :  { %v4307_v7 = vpop.permute.xlu1 %4306  ;;  %v3504_v57 = vsel %vm6258_vm5, %v3503_v53, 0.0 }
0x25fd   :  { %v4309_v37 = vunpack.i.h.bf16 %v4307_v7  ;;  %v4308_v39 = vunpack.i.l.bf16 %v4307_v7  ;;  %v3505_v46 = vsel %vm6259_vm10, %v3504_v57, 0.0 }
0x25ff   :  { %v3500_v47 = vsel %vm6256_vm8, %v4308_v39, %v4309_v37  ;;  %v3506_v26 = vsel %vm6260_vm7, %v3505_v46, %v4308_v39  ;;  %vm6269_vm8 = vcmask 588800  }
0x2600   :  { %v3507_v11 = vsel %vm6257_vm14, %v3500_v47, 0.0  ;;  %v5932_v41 = vpack.c.bf16 %v3506_v26, %v3506_v26  ;;  %vm3693_vm14 = vcmask 257024  }
0x2601   :  { %v3512_v34 = vpack.c.bf16 %v3507_v11, %v3507_v11 }
0x2603   :  { %3595 = vrot.lane.b32.xlu1 %v3512_v34, %s6237_s1  ;;  %3587 = vrot.lane.b32.xlu0 %v3512_v34, %s6238_s6 }
0x2607   :  { %3577 = vrot.lane.b32.xlu1 %v3512_v34, %s6239_s20  ;;  %3567 = vrot.lane.b32.xlu0 %v3512_v34, %s4456_s10 }
0x260b   :  { %3557 = vrot.lane.b32.xlu1 %v3512_v34, %s6240_s15  ;;  %3547 = vrot.lane.b32.xlu0 %v3512_v34, %s6199_s24 }
0x260f   :  { %3537 = vrot.lane.b32.xlu1 %v3512_v34, %s4476_s22  ;;  %3527 = vrot.lane.b32.xlu0 %v3512_v34, %s6243_s21 }
0x2613   :  { %3585 = vrot.lane.b32.xlu1 %v5932_v41, %s6238_s6  ;;  %3593 = vrot.lane.b32.xlu0 %v5932_v41, %s6237_s1  ;;  %s4509_s1 = smov 37  }
0x2617   :  { %3583 = vrot.lane.b32.xlu1 %v5932_v41, %s4470_s3  ;;  %3515 = vrot.lane.b32.xlu0 %v5932_v41, %s4469_s2 }
0x261b   :  { %3565 = vrot.lane.b32.xlu1 %v5932_v41, %s4456_s10  ;;  %3575 = vrot.lane.b32.xlu0 %v5932_v41, %s6239_s20  ;;  %s4508_s10 = smov 24  }
0x261f   :  { %3563 = vrot.lane.b32.xlu1 %v5932_v41, %s4472_s25  ;;  %3573 = vrot.lane.b32.xlu0 %v5932_v41, %s4424_s7  ;;  %s4507_s7 = smov 22   ;;  %s3886_s25 = sld [smem:[%s6027_s0 + %s4508_s10]]  }
0x2623   :  { %3545 = vrot.lane.b32.xlu1 %v5932_v41, %s6199_s24  ;;  %3555 = vrot.lane.b32.xlu0 %v5932_v41, %s6240_s15  ;;  %s3899_s15 = sld [smem:[%s6027_s0 + %s4509_s1]]  }
0x2627   :  { %3543 = vrot.lane.b32.xlu1 %v5932_v41, %s6242_s29  ;;  %3553 = vrot.lane.b32.xlu0 %v5932_v41, %s6241_s16  ;;  %s4510_s16 = smov 38  }
0x2628   :  { %s3900_s30 = sld [smem:[%s6027_s0 + %s4510_s16]]  }
0x262b   :  { %3525 = vrot.lane.b32.xlu1 %v5932_v41, %s6243_s21  ;;  %3535 = vrot.lane.b32.xlu0 %v5932_v41, %s4476_s22  ;;  %s3884_s22 = sld [smem:[%s6027_s0 + %s4507_s7]]  }
0x262f   :  { %3523 = vrot.lane.b32.xlu1 %v5932_v41, %s4429_s12  ;;  %3533 = vrot.lane.b32.xlu0 %v5932_v41, %s4430_s13 }
0x2631   :  { %v3508_v26 = vld [vmem:[%s3884_s22] sm:$0x3] }
0x2633   :  { %3517 = vrot.lane.b32.xlu0 %v3512_v34, %s4469_s2 }
0x2675   :  { %v3596_v14 = vpop.permute.xlu1 %3595  ;;  %v3588_v13 = vpop.permute.xlu0 %3587 }
0x2676   :  { %3981 = vmatprep.subr.msk.bf16.mxu0 %vm438_vm9, %v3596_v14  ;;  %v3612_v40 = vrot.slane %v3588_v13, 4 }
0x2679   :  { %v3578_v36 = vpop.permute.xlu1 %3577  ;;  %v3568_v22 = vpop.permute.xlu0 %3567 }
0x267a   :  { %v3639_v58 = vsel %vm438_vm9, %v3578_v36, %v3612_v40  ;;  %v3609_v24 = vrot.slane %v3568_v22, 4 }
0x267d   :  { %v3558_v59 = vpop.permute.xlu1 %3557  ;;  %v3548_v28 = vpop.permute.xlu0 %3547 }
0x267e   :  { %v3632_v3 = vsel %vm438_vm9, %v3558_v59, %v3609_v24  ;;  %v3606_v63 = vrot.slane %v3548_v28, 4 }
0x2681   :  { %v3538_v50 = vpop.permute.xlu1 %3537  ;;  %v3528_v18 = vpop.permute.xlu0 %3527 }
0x2682   :  { %v3625_v60 = vsel %vm438_vm9, %v3538_v50, %v3606_v63  ;;  %v3603_v47 = vrot.slane %v3528_v18, 4  ;;  %v4402_v63 = vld [vmem:[%s3899_s15 + $0x4] ss:$8 sps:$4 sm:$0xff]  }
0x2685   :  { %v3586_v51 = vpop.permute.xlu1 %3585  ;;  %v3594_v61 = vpop.permute.xlu0 %3593 }
0x2686   :  { %v3597_v6 = vsel %vm1716_vm2, %v3594_v61, %v3596_v14  ;;  %v3589_v30 = vsel %vm6261_vm15, %v3586_v51, %v3588_v13  ;;  %vm6263_vm2 = vcmask 769024   ;;  %v3510_v51 = vld [vmem:[%s3886_s25] sm:$0xf] }
0x2689   :  { %v3584_v16 = vpop.permute.xlu1 %3583  ;;  %v3516_v29 = vpop.permute.xlu0 %3515 }
0x268a   :  { %v3600_v55 = vsel %vm1750_vm12, %v3516_v29, %v3597_v6  ;;  %v3592_v62 = vsel %vm1750_vm12, %v3584_v16, %v3589_v30 }
0x268b   :  { %v3644_v56 = vsel %vm438_vm9, %v3600_v55, 0  ;;  %v3611_v12 = vrot.slane %v3592_v62, 4 }
0x268c   :  { %3656 = vmatpush1.bf16.msra.mxu0 %v3644_v56 }
0x268d   :  { %v3566_v0 = vpop.permute.xlu1 %3565  ;;  %3657 = vmatprep.subr.bf16.mxu0 %v3639_v58  ;;  %v3576_v31 = vpop.permute.xlu0 %3575 }
0x268e   :  { %v3579_v27 = vsel %vm6262_vm0, %v3576_v31, %v3578_v36  ;;  %v3569_v25 = vsel %vm6263_vm2, %v3566_v0, %v3568_v22 }
0x2691   :  { %v3564_v17 = vpop.permute.xlu1 %3563  ;;  %v3574_v23 = vpop.permute.xlu0 %3573 }
0x2692   :  { %v3582_v4 = vsel %vm1750_vm12, %v3574_v23, %v3579_v27  ;;  %v3572_v42 = vsel %vm1750_vm12, %v3564_v17, %v3569_v25  ;;  %v3509_v17 = vld [vmem:[%s3885_s18] sm:$0xf]  ;;  %v4391_v25 = vld [vmem:[%s3899_s15 + $0x30] ss:$8 sps:$4 sm:$0xff]  }
0x2693   :  { %v3635_v19 = vsel %vm438_vm9, %v3582_v4, %v3611_v12  ;;  %v3608_v5 = vrot.slane %v3572_v42, 4  ;;  %v4388_v4 = vld [vmem:[%s3899_s15 + $0x40] ss:$8 sps:$4 sm:$0xff]   ;;  %v4399_v42 = vld [vmem:[%s3899_s15 + $0x14] ss:$8 sps:$4 sm:$0xff]  }
0x2694   :  { %3658 = vmatpush1.bf16.msra.mxu0 %v3635_v19  ;;  %v4390_v19 = vld [vmem:[%s3899_s15 + $0x44] ss:$8 sps:$4 sm:$0xff]  }
0x2695   :  { %v3546_v44 = vpop.permute.xlu1 %3545  ;;  %3659 = vmatprep.subr.bf16.mxu0 %v3632_v3  ;;  %v3556_v1 = vpop.permute.xlu0 %3555  ;;  %v4393_v3 = vld [vmem:[%s3899_s15 + $0x34] ss:$8 sps:$4 sm:$0xff]   ;;  %3813 = vmatprep.subr.bf16.mxu1 %v4390_v19 }
0x2696   :  { %v3559_v48 = vsel %vm6264_vm6, %v3556_v1, %v3558_v59  ;;  %v3549_v15 = vsel %vm6265_vm1, %v3546_v44, %v3548_v28  ;;  %3814 = vmatpush1.bf16.msra.mxu1 %v4388_v4  ;;  %v4396_v44 = vld [vmem:[%s3899_s15 + $0x24] ss:$8 sps:$4 sm:$0xff]   ;;  %v4394_v1 = vld [vmem:[%s3899_s15 + $0x20] ss:$8 sps:$4 sm:$0xff]  }
0x2697   :  { %3815 = vmatprep.subr.bf16.mxu1 %v4393_v3 }
0x2699   :  { %v3544_v9 = vpop.permute.xlu1 %3543  ;;  %v3554_v49 = vpop.permute.xlu0 %3553 }
0x269a   :  { %v3562_v8 = vsel %vm1750_vm12, %v3554_v49, %v3559_v48  ;;  %v3552_v20 = vsel %vm1750_vm12, %v3544_v9, %v3549_v15  ;;  %3816 = vmatpush1.bf16.msra.mxu1 %v4391_v25 }
0x269b   :  { %v3628_v10 = vsel %vm438_vm9, %v3562_v8, %v3608_v5  ;;  %v3605_v2 = vrot.slane %v3552_v20, 4  ;;  %3817 = vmatprep.subr.bf16.mxu1 %v4396_v44  ;;  %v4397_v5 = vld [vmem:[%s3899_s15 + $0x10] ss:$8 sps:$4 sm:$0xff]  }
0x269c   :  { %3660 = vmatpush1.bf16.msra.mxu0 %v3628_v10  ;;  %v4400_v10 = vld [vmem:[%s3899_s15] ss:$8 sps:$4 sm:$0xff]  }
0x269d   :  { %v3526_v21 = vpop.permute.xlu1 %3525  ;;  %3661 = vmatprep.subr.bf16.mxu0 %v3625_v60  ;;  %v3536_v32 = vpop.permute.xlu0 %3535 }
0x269e   :  { %v3539_v35 = vsel %vm6266_vm3, %v3536_v32, %v3538_v50  ;;  %v3529_v45 = vsel %vm6267_vm13, %v3526_v21, %v3528_v18  ;;  %3818 = vmatpush1.bf16.msra.mxu1 %v4394_v1 }
0x269f   :  { %3819 = vmatprep.subr.bf16.mxu1 %v4399_v42 }
0x26a1   :  { %v3524_v33 = vpop.permute.xlu1 %3523  ;;  %v3534_v52 = vpop.permute.xlu0 %3533 }
0x26a2   :  { %v3542_v7 = vsel %vm1750_vm12, %v3534_v52, %v3539_v35  ;;  %v3532_v37 = vsel %vm1750_vm12, %v3524_v33, %v3529_v45  ;;  %3820 = vmatpush1.bf16.msra.mxu1 %v4397_v5 }
0x26a3   :  { %v3621_v39 = vsel %vm438_vm9, %v3542_v7, %v3605_v2  ;;  %v3602_v34 = vrot.slane %v3532_v37, 4  ;;  %3821 = vmatprep.subr.bf16.mxu1 %v4402_v63 }
0x26a4   :  { %3662 = vmatpush1.bf16.msra.mxu0 %v3621_v39 }
0x26a5   :  { %v3518_v11 = vpop.permute.xlu0 %3517 }
0x26a6   :  { %v3519_v43 = vsel %vm6268_vm11, %v3516_v29, %v3518_v11  ;;  %v3618_v53 = vsel %vm438_vm9, %v3518_v11, %v3603_v47  ;;  %3822 = vmatpush1.bf16.msra.mxu1 %v4400_v10 }
0x26a7   :  { %v3522_v57 = vsel %vm1750_vm12, %v5932_v41, %v3519_v43  ;;  %3663 = vmatprep.subr.bf16.mxu0 %v3618_v53 }
0x26a8   :  { %v3614_v46 = vsel %vm438_vm9, %v3522_v57, %v3602_v34 }
0x26a9   :  { %3664 = vmatpush1.bf16.msra.mxu0 %v3614_v46 }
0x26ac   :  { %3982 = vmatmul.mubr.msk.bf16.vlgmr.msra.gmra.mxu0 %vm6269_vm8, %v3508_v26 }
0x276c   :  { %v3683_v14 = vpop.f32.mrf.mxu0 }
0x276d   :  { %v3690_v13 = vmul.f32 %v3683_v14, %v5374_v38 }
0x276e   :  { %v3685_v36 = vpop.f32.mrf.mxu0 }
0x276f   :  { %v3691_v22 = vmul.f32 %v3685_v36, %v5371_v54  ;;  %v3692_v28 = vsel %vm438_vm9, %v3690_v13, 0.0 }
0x2770   :  { %v3687_v59 = vpop.f32.mrf.mxu0 }
0x2771   :  { %v3694_v50 = vsel %vm3693_vm14, %v3691_v22, 0.0 }
0x2772   :  { %v3688_v41 = vpop.f32.mrf.mxu0  ;;  %v3695_v18 = vadd.f32 %v3694_v50, %v3692_v28 }
0x2774   :  { %3696 = vadd.xlane.f32.xlu1 %v3695_v18 }
0x2785   :  { %3723 = vperm.xlu1 %4234, %v3510_v51  }
0x27fd   :  { %v3697_v61 = vpop.xlane.xlu1 %3696 }
0x27fe   :  { %v3698_v6 = vmul.f32 0.0078125, %v3697_v61 }
0x2800   :  { %v3699_v16 = vsub.f32 %v3683_v14, %v3698_v6  ;;  %v3700_v29 = vsub.f32 %v3685_v36, %v3698_v6 }
0x2801   :  { %v3724_v8 = vpop.permute.xlu1 %3723 }
0x2802   :  { %v3701_v40 = vmul.f32 %v3699_v16, %v5374_v38  ;;  %v3702_v55 = vmul.f32 %v3700_v29, %v5371_v54 }
0x2804   :  { %v3703_v56 = vmul.f32 %v3701_v40, %v3701_v40  ;;  %v3704_v58 = vmul.f32 %v3702_v55, %v3702_v55 }
0x2806   :  { %v3705_v30 = vsel %vm438_vm9, %v3703_v56, 0.0  ;;  %v3706_v0 = vsel %vm3693_vm14, %v3704_v58, 0.0 }
0x2807   :  { %v3707_v31 = vadd.f32 %v3706_v0, %v3705_v30 }
0x2809   :  { %3708 = vadd.xlane.f32.xlu0 %v3707_v31 }
0x2892   :  { %v3709_v62 = vpop.xlane.xlu0 %3708 }
0x2893   :  { %v3710_v12 = vmul.f32 0.0078125, %v3709_v62 }
0x2895   :  { %v3711_v27 = vadd.f32 1e-05, %v3710_v12 }
0x2897   :  { %4421 = vrsqrt.f32 %v3711_v27 }
0x28a4   :  { %v4422_v23 = vpop.eup %4421 }
0x28a5   :  { %v3713_v24 = vmul.f32 %v4422_v23, %v3509_v17 }
0x28a7   :  { %3716 = vperm.xlu0 %4233, %v3713_v24  }
0x2922   :  { %v3717_v48 = vpop.permute.xlu0 %3716 }
0x2923   :  { %v3719_v9 = vmul.f32 %v3717_v48, %v3701_v40  ;;  %v3720_v49 = vmul.f32 %v3717_v48, %v3702_v55 }
0x2925   :  { %v3726_v60 = vadd.f32 %v3724_v8, %v3719_v9  ;;  %v3727_v15 = vadd.f32 %v3724_v8, %v3720_v49 }
0x2927   :  { %v3728_v21 = vmax.f32 %v3726_v60, 0.0  ;;  %v3729_v32 = vmax.f32 %v3727_v15, 0.0 }
0x2929   :  { %v3730_v20 = vmul.f32 %v3728_v21, %v5374_v38  ;;  %v3731_v2 = vmul.f32 %v3729_v32, %v5371_v54 }
0x292b   :  { %v3744_v35 = vrot.slane %v3730_v20, 4  ;;  %v3745_v33 = vrot.slane %v3731_v2, 4 }
0x292d   :  { %v4310_v52 = vpack.i.bf16 %v3745_v33, %v3744_v35 }
0x292f   :  { %4311 = vrot.lane.b32.xlu1 %v4310_v52, %s6270_s23 }
0x29a1   :  { %v4312_v45 = vpop.permute.xlu1 %4311 }
0x29a2   :  { %v4314_v7 = vunpack.i.h.bf16 %v4312_v45  ;;  %v4313_v37 = vunpack.i.l.bf16 %v4312_v45 }
0x29a4   :  { %v3750_v39 = vsel %vm2238_vm4, %v4313_v37, %v4314_v7 }
0x29a5   :  { %v3752_v47 = vsel %vm438_vm9, %v3730_v20, %v3750_v39 }
0x29a6   :  { %v3753_v11 = vpack.c.bf16 %v3752_v47, %v3752_v47 }
0x29a8   :  { %3993 = vmatmul.mubr.msk.bf16.vlgmr.msra.gmra.mxu1 %vm1750_vm12, %v3753_v11 }
0x2a68   :  { %v3841_v54 = vpop.f32.mrf.mxu1 }
0x2a69   :  { %v3850_v34 = vrot.slane %v3841_v54, 4 }
0x2a6a   :  { %v3843_v38 = vpop.f32.mrf.mxu1 }
0x2a6b   :  { %v3851_v43 = vrot.slane %v3843_v38, 4  ;;  %v3852_v53 = vcombine.low %v3841_v54, %v3843_v38 }
0x2a6c   :  { %v3845_v57 = vpop.f32.mrf.mxu1 }
0x2a6d   :  { %3854 = vst [vmem:[%s3900_s30] sm:$0xff] %v3852_v53  ;;  %v3855_v46 = vcombine.low %v3850_v34, %v3851_v43 }
0x2a6e   :  { %v3846_v26 = vpop.f32.mrf.mxu1 }
0x2a6f   :  { %3994 = vst [vmem:[%s3900_s30 + $0x8] sm:$0xff] %v3855_v46 }

</bundles_post_ra>
